<compile_context>
chip_gen: v5e
topology: v5e:2x2
jax: 0.10.0
libtpu: 0.0.40
codegen_flags: <defaults>
</compile_context>

<pallas_src>
import functools

import jax
import jax.numpy as jnp
import numpy as np
from jax.experimental import pallas as pl
from jax.experimental.pallas import tpu as pltpu


# ------------------------------ Fused kernel -------------------------------- #

def _tcn_fused_kernel(*refs, n_in, B, L, cfg):
    """Whole TCN forward for the whole batch in one kernel.

    refs = [x2d, (w1,b1,w2,b2[,wd,bd]) per block..., fc_w, fc_b, out, slab]
      x2d : (B*L, C0)            activations, batch folded into rows
      w*  : (n_used*Cin, Cout)   flattened, unused (fully-padded) taps pre-sliced
      out : (B*L, pred_len)
      slab: VMEM scratch (B*L, max_ncols) used as the im2col buffer
    cfg: static tuple of (dilation, cin1, n1, cin2, n2, has_down) per block.
    """
    in_refs = refs[:n_in]
    o_ref = refs[n_in]
    slab_ref = refs[n_in + 1]

    it = iter(in_refs)
    x_ref = next(it)
    h = x_ref[...].astype(jnp.float32)                     # (B*L, C0)

    def causal_conv(h, w_ref, b_ref, d, cin, n_used):
        # im2col: column block `idx` holds h shifted down by (n_used-1-idx)*d
        # rows per batch element (zeros above == causal left pad + chomp).
        ncols = n_used * cin
        slab_ref[:, :ncols] = jnp.zeros((B * L, ncols), jnp.float32)
        for idx in range(n_used):
            shift = (n_used - 1 - idx) * d
            c0 = idx * cin
            if shift == 0:
                slab_ref[:, c0:c0 + cin] = h
            else:
                for b in range(B):
                    slab_ref[b * L + shift:(b + 1) * L, c0:c0 + cin] = \
                        h[b * L:(b + 1) * L - shift, :]
        acc = jnp.dot(slab_ref[:, :ncols], w_ref[...],
                      preferred_element_type=jnp.float32)
        return jnp.maximum(acc + b_ref[...], 0.0)          # bias + ReLU

    for (d, cin1, n1, cin2, n2, has_down) in cfg:
        w1_ref, b1_ref = next(it), next(it)
        w2_ref, b2_ref = next(it), next(it)
        inp = h
        h = causal_conv(h, w1_ref, b1_ref, d, cin1, n1)    # conv1+chomp+relu
        h = causal_conv(h, w2_ref, b2_ref, d, cin2, n2)    # conv2+chomp+relu
        if has_down:                                       # 1x1 downsample
            wd_ref, bd_ref = next(it), next(it)
            res = jnp.dot(inp, wd_ref[...],
                          preferred_element_type=jnp.float32) + bd_ref[...]
        else:
            res = inp
        h = jnp.maximum(h + res, 0.0)                      # residual + relu

    fc_w_ref, fc_b_ref = next(it), next(it)                # final Linear
    y = jnp.dot(h, fc_w_ref[...],
                preferred_element_type=jnp.float32) + fc_b_ref[...]
    o_ref[...] = y.astype(o_ref.dtype)


# ------------------------------- Model forward ------------------------------ #

@jax.jit
def tcn_forward(params, x_enc):
    """x_enc: (B, seq_len, enc_in) in PyTorch NCW. Returns (B, pred_len, enc_in)."""
    B, seq_len, enc_in = x_enc.shape
    L = enc_in
    # (B, C, L) -> (B, L, C) -> (B*L, C): batch folded into matmul rows.
    x2d = jnp.transpose(x_enc, (0, 2, 1)).reshape(B * L, seq_len)

    inputs = [x2d]
    cfg = []
    max_ncols = 1
    for i, blk in enumerate(params["blocks"]):
        d = 2 ** i
        K, cin1, cout = blk["w1"].shape
        n1 = min(K, (L - 1) // d + 1)                       # taps that can reach data
        w1u = blk["w1"].reshape(K * cin1, cout)[(K - n1) * cin1:, :]
        K2, cin2, _ = blk["w2"].shape
        n2 = min(K2, (L - 1) // d + 1)
        w2u = blk["w2"].reshape(K2 * cin2, cout)[(K2 - n2) * cin2:, :]
        has_down = "wd" in blk
        inputs += [w1u, blk["b1"], w2u, blk["b2"]]
        if has_down:
            inputs += [blk["wd"], blk["bd"]]
        cfg.append((d, cin1, n1, cin2, n2, has_down))
        max_ncols = max(max_ncols, n1 * cin1, n2 * cin2)
    inputs += [params["fc1_w"], params["fc1_b"]]

    pred_len = params["fc1_w"].shape[1]
    n_in = len(inputs)

    kernel = functools.partial(_tcn_fused_kernel, n_in=n_in, B=B, L=L,
                               cfg=tuple(cfg))

    y2d = pl.pallas_call(
        kernel,
        out_shape=jax.ShapeDtypeStruct((B * L, pred_len), jnp.float32),
        grid=(1,),
        in_specs=[pl.BlockSpec(a.shape, lambda i: (0, 0)) for a in inputs],
        out_specs=pl.BlockSpec((B * L, pred_len), lambda i: (0, 0)),
        scratch_shapes=[pltpu.VMEM((B * L, max_ncols), jnp.float32)],
        compiler_params=pltpu.CompilerParams(
            dimension_semantics=("arbitrary",)),
    )(*inputs)

    # (B*enc_in, pred_len) -> (B, pred_len, enc_in); tiny one-time host transpose.
    return jnp.transpose(y2d.reshape(B, enc_in, pred_len), (0, 2, 1))


# ------------------------------ Pure-JAX reference -------------------------- #

def ref_forward(params, x_enc):
    h = x_enc                                               # (B, C, L)
    for i, blk in enumerate(params["blocks"]):
        d = 2 ** i
        K = blk["w1"].shape[0]
        pad = (K - 1) * d
        inp = h

        def conv(a, w, b):
            wt = jnp.transpose(w, (2, 1, 0))                # (Cout, Cin, K)
            y = jax.lax.conv_general_dilated(
                a, wt, window_strides=(1,), padding=[(pad, pad)],
                rhs_dilation=(d,), dimension_numbers=("NCW", "OIW", "NCW"))
            y = y[:, :, :a.shape[2]]                        # Chomp1d
            return y + jnp.reshape(b, (1, -1, 1))

        o = jnp.maximum(conv(h, blk["w1"], blk["b1"]), 0.0)
        o = jnp.maximum(conv(o, blk["w2"], blk["b2"]), 0.0)
        if "wd" in blk:
            res = jnp.einsum("bcl,cd->bdl", inp, blk["wd"]) \
                + jnp.reshape(blk["bd"], (1, -1, 1))
        else:
            res = inp
        h = jnp.maximum(o + res, 0.0)
    y = jnp.einsum("bdl,dp->bpl", h, params["fc1_w"]) \
        + jnp.reshape(params["fc1_b"], (1, -1, 1))
    return y


# ----------------------------------- main ----------------------------------- #

def init_params(key, seq_len, enc_in, d_model, pred_len, K):
    keys = iter(jax.random.split(key, 64))

    def nrm(shape, scale):
        return scale * jax.random.normal(next(keys), shape, jnp.float32)

    blocks = []
    for i in range(4):
        cin = seq_len if i == 0 else d_model
        blk = {
            "w1": nrm((K, cin, d_model), 0.01),             # conv weights ~ N(0, 0.01)
            "b1": nrm((1, d_model), 0.02),
            "w2": nrm((K, d_model, d_model), 0.01),
            "b2": nrm((1, d_model), 0.02),
        }
        if cin != d_model:                                  # downsample 1x1 conv
            blk["wd"] = nrm((cin, d_model), 0.01)
            blk["bd"] = nrm((1, d_model), 0.02)
        blocks.append(blk)
    return {
        "blocks": blocks,
        "fc1_w": nrm((d_model, pred_len), 0.1),
        "fc1_b": nrm((1, pred_len), 0.1),
    }


if __name__ == "__main__":
    B, seq_len, enc_in, d_model, pred_len = 2, 8, 16, 32, 4
    K = 10  # kernel_size from the module

    key = jax.random.PRNGKey(0)
    kp, kx = jax.random.split(key)
    params = init_params(kp, seq_len, enc_in, d_model, pred_len, K)

    # x_enc in PyTorch NCW: (B, C=seq_len, L=enc_in)
    x_enc = jax.random.normal(kx, (B, seq_len, enc_in), jnp.float32)

    y = tcn_forward(params, x_enc)
    y = jax.block_until_ready(y)
    assert y.shape == (B, pred_len, enc_in)

    y_ref = ref_forward(params, x_enc)
    np.testing.assert_allclose(np.asarray(y), np.asarray(y_ref),
                               rtol=1e-4, atol=1e-5)

    print("KERNEL_OK")
</pallas_src>

<mosaic_0001>
module attributes {stable_mosaic.version = 11 : i64} {
  func.func @_tcn_fused_kernel(%arg0: i32, %arg1: memref<32x8xf32, #tpu.memory_space<vmem>>, %arg2: memref<80x32xf32, #tpu.memory_space<vmem>>, %arg3: memref<1x32xf32, #tpu.memory_space<vmem>>, %arg4: memref<320x32xf32, #tpu.memory_space<vmem>>, %arg5: memref<1x32xf32, #tpu.memory_space<vmem>>, %arg6: memref<8x32xf32, #tpu.memory_space<vmem>>, %arg7: memref<1x32xf32, #tpu.memory_space<vmem>>, %arg8: memref<256x32xf32, #tpu.memory_space<vmem>>, %arg9: memref<1x32xf32, #tpu.memory_space<vmem>>, %arg10: memref<256x32xf32, #tpu.memory_space<vmem>>, %arg11: memref<1x32xf32, #tpu.memory_space<vmem>>, %arg12: memref<128x32xf32, #tpu.memory_space<vmem>>, %arg13: memref<1x32xf32, #tpu.memory_space<vmem>>, %arg14: memref<128x32xf32, #tpu.memory_space<vmem>>, %arg15: memref<1x32xf32, #tpu.memory_space<vmem>>, %arg16: memref<64x32xf32, #tpu.memory_space<vmem>>, %arg17: memref<1x32xf32, #tpu.memory_space<vmem>>, %arg18: memref<64x32xf32, #tpu.memory_space<vmem>>, %arg19: memref<1x32xf32, #tpu.memory_space<vmem>>, %arg20: memref<32x4xf32, #tpu.memory_space<vmem>>, %arg21: memref<1x4xf32, #tpu.memory_space<vmem>>, %arg22: memref<32x4xf32, #tpu.memory_space<vmem>>, %arg23: memref<32x320xf32, #tpu.memory_space<vmem>>) attributes {dimension_semantics = [#tpu.dimension_semantics<arbitrary>], iteration_bounds = array<i64: 1>, scalar_prefetch = 0 : i64, scratch_operands = 1 : i64, tpu.core_type = #tpu.core_type<tc>, window_params = [{pipeline_mode = #tpu.pipeline_mode<synchronous>, transform_indices = @transform_0, window_bounds = array<i64: 32, 8>}, {pipeline_mode = #tpu.pipeline_mode<synchronous>, transform_indices = @transform_1, window_bounds = array<i64: 80, 32>}, {pipeline_mode = #tpu.pipeline_mode<synchronous>, transform_indices = @transform_2, window_bounds = array<i64: 1, 32>}, {pipeline_mode = #tpu.pipeline_mode<synchronous>, transform_indices = @transform_3, window_bounds = array<i64: 320, 32>}, {pipeline_mode = #tpu.pipeline_mode<synchronous>, transform_indices = @transform_4, window_bounds = array<i64: 1, 32>}, {pipeline_mode = #tpu.pipeline_mode<synchronous>, transform_indices = @transform_5, window_bounds = array<i64: 8, 32>}, {pipeline_mode = #tpu.pipeline_mode<synchronous>, transform_indices = @transform_6, window_bounds = array<i64: 1, 32>}, {pipeline_mode = #tpu.pipeline_mode<synchronous>, transform_indices = @transform_7, window_bounds = array<i64: 256, 32>}, {pipeline_mode = #tpu.pipeline_mode<synchronous>, transform_indices = @transform_8, window_bounds = array<i64: 1, 32>}, {pipeline_mode = #tpu.pipeline_mode<synchronous>, transform_indices = @transform_9, window_bounds = array<i64: 256, 32>}, {pipeline_mode = #tpu.pipeline_mode<synchronous>, transform_indices = @transform_10, window_bounds = array<i64: 1, 32>}, {pipeline_mode = #tpu.pipeline_mode<synchronous>, transform_indices = @transform_11, window_bounds = array<i64: 128, 32>}, {pipeline_mode = #tpu.pipeline_mode<synchronous>, transform_indices = @transform_12, window_bounds = array<i64: 1, 32>}, {pipeline_mode = #tpu.pipeline_mode<synchronous>, transform_indices = @transform_13, window_bounds = array<i64: 128, 32>}, {pipeline_mode = #tpu.pipeline_mode<synchronous>, transform_indices = @transform_14, window_bounds = array<i64: 1, 32>}, {pipeline_mode = #tpu.pipeline_mode<synchronous>, transform_indices = @transform_15, window_bounds = array<i64: 64, 32>}, {pipeline_mode = #tpu.pipeline_mode<synchronous>, transform_indices = @transform_16, window_bounds = array<i64: 1, 32>}, {pipeline_mode = #tpu.pipeline_mode<synchronous>, transform_indices = @transform_17, window_bounds = array<i64: 64, 32>}, {pipeline_mode = #tpu.pipeline_mode<synchronous>, transform_indices = @transform_18, window_bounds = array<i64: 1, 32>}, {pipeline_mode = #tpu.pipeline_mode<synchronous>, transform_indices = @transform_19, window_bounds = array<i64: 32, 4>}, {pipeline_mode = #tpu.pipeline_mode<synchronous>, transform_indices = @transform_20, window_bounds = array<i64: 1, 4>}, {pipeline_mode = #tpu.pipeline_mode<synchronous>, transform_indices = @transform_21, window_bounds = array<i64: 32, 4>}]} {
    %c0 = arith.constant 0 : index
    %c0_0 = arith.constant 0 : index
    %0 = vector.load %arg1[%c0, %c0_0] : memref<32x8xf32, #tpu.memory_space<vmem>>, vector<32x8xf32>
    %cst = arith.constant 0.000000e+00 : f32
    %1 = vector.broadcast %cst : f32 to vector<32x80xf32>
    %c0_1 = arith.constant 0 : index
    %c0_2 = arith.constant 0 : index
    %2 = vector.load %arg23[%c0_1, %c0_2] : memref<32x320xf32, #tpu.memory_space<vmem>>, vector<32x80xf32>
    tpu.vector_store %arg23[%c0_1, %c0_2], %1 {strides = array<i32>} : memref<32x320xf32, #tpu.memory_space<vmem>>, vector<32x80xf32>,
    %3 = vector.extract_strided_slice %0 {offsets = [0, 0], sizes = [7, 8], strides = [1, 1]} : vector<32x8xf32> to vector<7x8xf32>
    %c9 = arith.constant 9 : index
    %c0_3 = arith.constant 0 : index
    %4 = vector.load %arg23[%c9, %c0_3] : memref<32x320xf32, #tpu.memory_space<vmem>>, vector<7x8xf32>
    tpu.vector_store %arg23[%c9, %c0_3], %3 {strides = array<i32>} : memref<32x320xf32, #tpu.memory_space<vmem>>, vector<7x8xf32>,
    %5 = vector.extract_strided_slice %0 {offsets = [16, 0], sizes = [7, 8], strides = [1, 1]} : vector<32x8xf32> to vector<7x8xf32>
    %c25 = arith.constant 25 : index
    %c0_4 = arith.constant 0 : index
    %6 = vector.load %arg23[%c25, %c0_4] : memref<32x320xf32, #tpu.memory_space<vmem>>, vector<7x8xf32>
    tpu.vector_store %arg23[%c25, %c0_4], %5 {strides = array<i32>} : memref<32x320xf32, #tpu.memory_space<vmem>>, vector<7x8xf32>,
    %7 = vector.extract_strided_slice %0 {offsets = [0, 0], sizes = [8, 8], strides = [1, 1]} : vector<32x8xf32> to vector<8x8xf32>
    %c8 = arith.constant 8 : index
    %c8_5 = arith.constant 8 : index
    %8 = vector.load %arg23[%c8, %c8_5] : memref<32x320xf32, #tpu.memory_space<vmem>>, vector<8x8xf32>
    tpu.vector_store %arg23[%c8, %c8_5], %7 {strides = array<i32>} : memref<32x320xf32, #tpu.memory_space<vmem>>, vector<8x8xf32>,
    %9 = vector.extract_strided_slice %0 {offsets = [16, 0], sizes = [8, 8], strides = [1, 1]} : vector<32x8xf32> to vector<8x8xf32>
    %c24 = arith.constant 24 : index
    %c8_6 = arith.constant 8 : index
    %10 = vector.load %arg23[%c24, %c8_6] : memref<32x320xf32, #tpu.memory_space<vmem>>, vector<8x8xf32>
    tpu.vector_store %arg23[%c24, %c8_6], %9 {strides = array<i32>} : memref<32x320xf32, #tpu.memory_space<vmem>>, vector<8x8xf32>,
    %11 = vector.extract_strided_slice %0 {offsets = [0, 0], sizes = [9, 8], strides = [1, 1]} : vector<32x8xf32> to vector<9x8xf32>
    %c7 = arith.constant 7 : index
    %c16 = arith.constant 16 : index
    %12 = vector.load %arg23[%c7, %c16] : memref<32x320xf32, #tpu.memory_space<vmem>>, vector<9x8xf32>
    tpu.vector_store %arg23[%c7, %c16], %11 {strides = array<i32>} : memref<32x320xf32, #tpu.memory_space<vmem>>, vector<9x8xf32>,
    %13 = vector.extract_strided_slice %0 {offsets = [16, 0], sizes = [9, 8], strides = [1, 1]} : vector<32x8xf32> to vector<9x8xf32>
    %c23 = arith.constant 23 : index
    %c16_7 = arith.constant 16 : index
    %14 = vector.load %arg23[%c23, %c16_7] : memref<32x320xf32, #tpu.memory_space<vmem>>, vector<9x8xf32>
    tpu.vector_store %arg23[%c23, %c16_7], %13 {strides = array<i32>} : memref<32x320xf32, #tpu.memory_space<vmem>>, vector<9x8xf32>,
    %15 = vector.extract_strided_slice %0 {offsets = [0, 0], sizes = [10, 8], strides = [1, 1]} : vector<32x8xf32> to vector<10x8xf32>
    %c6 = arith.constant 6 : index
    %c24_8 = arith.constant 24 : index
    %16 = vector.load %arg23[%c6, %c24_8] : memref<32x320xf32, #tpu.memory_space<vmem>>, vector<10x8xf32>
    tpu.vector_store %arg23[%c6, %c24_8], %15 {strides = array<i32>} : memref<32x320xf32, #tpu.memory_space<vmem>>, vector<10x8xf32>,
    %17 = vector.extract_strided_slice %0 {offsets = [16, 0], sizes = [10, 8], strides = [1, 1]} : vector<32x8xf32> to vector<10x8xf32>
    %c22 = arith.constant 22 : index
    %c24_9 = arith.constant 24 : index
    %18 = vector.load %arg23[%c22, %c24_9] : memref<32x320xf32, #tpu.memory_space<vmem>>, vector<10x8xf32>
    tpu.vector_store %arg23[%c22, %c24_9], %17 {strides = array<i32>} : memref<32x320xf32, #tpu.memory_space<vmem>>, vector<10x8xf32>,
    %19 = vector.extract_strided_slice %0 {offsets = [0, 0], sizes = [11, 8], strides = [1, 1]} : vector<32x8xf32> to vector<11x8xf32>
    %c5 = arith.constant 5 : index
    %c32 = arith.constant 32 : index
    %20 = vector.load %arg23[%c5, %c32] : memref<32x320xf32, #tpu.memory_space<vmem>>, vector<11x8xf32>
    tpu.vector_store %arg23[%c5, %c32], %19 {strides = array<i32>} : memref<32x320xf32, #tpu.memory_space<vmem>>, vector<11x8xf32>,
    %21 = vector.extract_strided_slice %0 {offsets = [16, 0], sizes = [11, 8], strides = [1, 1]} : vector<32x8xf32> to vector<11x8xf32>
    %c21 = arith.constant 21 : index
    %c32_10 = arith.constant 32 : index
    %22 = vector.load %arg23[%c21, %c32_10] : memref<32x320xf32, #tpu.memory_space<vmem>>, vector<11x8xf32>
    tpu.vector_store %arg23[%c21, %c32_10], %21 {strides = array<i32>} : memref<32x320xf32, #tpu.memory_space<vmem>>, vector<11x8xf32>,
    %23 = vector.extract_strided_slice %0 {offsets = [0, 0], sizes = [12, 8], strides = [1, 1]} : vector<32x8xf32> to vector<12x8xf32>
    %c4 = arith.constant 4 : index
    %c40 = arith.constant 40 : index
    %24 = vector.load %arg23[%c4, %c40] : memref<32x320xf32, #tpu.memory_space<vmem>>, vector<12x8xf32>
    tpu.vector_store %arg23[%c4, %c40], %23 {strides = array<i32>} : memref<32x320xf32, #tpu.memory_space<vmem>>, vector<12x8xf32>,
    %25 = vector.extract_strided_slice %0 {offsets = [16, 0], sizes = [12, 8], strides = [1, 1]} : vector<32x8xf32> to vector<12x8xf32>
    %c20 = arith.constant 20 : index
    %c40_11 = arith.constant 40 : index
    %26 = vector.load %arg23[%c20, %c40_11] : memref<32x320xf32, #tpu.memory_space<vmem>>, vector<12x8xf32>
    tpu.vector_store %arg23[%c20, %c40_11], %25 {strides = array<i32>} : memref<32x320xf32, #tpu.memory_space<vmem>>, vector<12x8xf32>,
    %27 = vector.extract_strided_slice %0 {offsets = [0, 0], sizes = [13, 8], strides = [1, 1]} : vector<32x8xf32> to vector<13x8xf32>
    %c3 = arith.constant 3 : index
    %c48 = arith.constant 48 : index
    %28 = vector.load %arg23[%c3, %c48] : memref<32x320xf32, #tpu.memory_space<vmem>>, vector<13x8xf32>
    tpu.vector_store %arg23[%c3, %c48], %27 {strides = array<i32>} : memref<32x320xf32, #tpu.memory_space<vmem>>, vector<13x8xf32>,
    %29 = vector.extract_strided_slice %0 {offsets = [16, 0], sizes = [13, 8], strides = [1, 1]} : vector<32x8xf32> to vector<13x8xf32>
    %c19 = arith.constant 19 : index
    %c48_12 = arith.constant 48 : index
    %30 = vector.load %arg23[%c19, %c48_12] : memref<32x320xf32, #tpu.memory_space<vmem>>, vector<13x8xf32>
    tpu.vector_store %arg23[%c19, %c48_12], %29 {strides = array<i32>} : memref<32x320xf32, #tpu.memory_space<vmem>>, vector<13x8xf32>,
    %31 = vector.extract_strided_slice %0 {offsets = [0, 0], sizes = [14, 8], strides = [1, 1]} : vector<32x8xf32> to vector<14x8xf32>
    %c2 = arith.constant 2 : index
    %c56 = arith.constant 56 : index
    %32 = vector.load %arg23[%c2, %c56] : memref<32x320xf32, #tpu.memory_space<vmem>>, vector<14x8xf32>
    tpu.vector_store %arg23[%c2, %c56], %31 {strides = array<i32>} : memref<32x320xf32, #tpu.memory_space<vmem>>, vector<14x8xf32>,
    %33 = vector.extract_strided_slice %0 {offsets = [16, 0], sizes = [14, 8], strides = [1, 1]} : vector<32x8xf32> to vector<14x8xf32>
    %c18 = arith.constant 18 : index
    %c56_13 = arith.constant 56 : index
    %34 = vector.load %arg23[%c18, %c56_13] : memref<32x320xf32, #tpu.memory_space<vmem>>, vector<14x8xf32>
    tpu.vector_store %arg23[%c18, %c56_13], %33 {strides = array<i32>} : memref<32x320xf32, #tpu.memory_space<vmem>>, vector<14x8xf32>,
    %35 = vector.extract_strided_slice %0 {offsets = [0, 0], sizes = [15, 8], strides = [1, 1]} : vector<32x8xf32> to vector<15x8xf32>
    %c1 = arith.constant 1 : index
    %c64 = arith.constant 64 : index
    %36 = vector.load %arg23[%c1, %c64] : memref<32x320xf32, #tpu.memory_space<vmem>>, vector<15x8xf32>
    tpu.vector_store %arg23[%c1, %c64], %35 {strides = array<i32>} : memref<32x320xf32, #tpu.memory_space<vmem>>, vector<15x8xf32>,
    %37 = vector.extract_strided_slice %0 {offsets = [16, 0], sizes = [15, 8], strides = [1, 1]} : vector<32x8xf32> to vector<15x8xf32>
    %c17 = arith.constant 17 : index
    %c64_14 = arith.constant 64 : index
    %38 = vector.load %arg23[%c17, %c64_14] : memref<32x320xf32, #tpu.memory_space<vmem>>, vector<15x8xf32>
    tpu.vector_store %arg23[%c17, %c64_14], %37 {strides = array<i32>} : memref<32x320xf32, #tpu.memory_space<vmem>>, vector<15x8xf32>,
    %c0_15 = arith.constant 0 : index
    %c72 = arith.constant 72 : index
    %39 = vector.load %arg23[%c0_15, %c72] : memref<32x320xf32, #tpu.memory_space<vmem>>, vector<32x8xf32>
    tpu.vector_store %arg23[%c0_15, %c72], %0 {strides = array<i32>} : memref<32x320xf32, #tpu.memory_space<vmem>>, vector<32x8xf32>,
    %c0_16 = arith.constant 0 : index
    %c0_17 = arith.constant 0 : index
    %40 = vector.load %arg23[%c0_16, %c0_17] : memref<32x320xf32, #tpu.memory_space<vmem>>, vector<32x80xf32>
    %c0_18 = arith.constant 0 : index
    %c0_19 = arith.constant 0 : index
    %41 = vector.load %arg2[%c0_18, %c0_19] : memref<80x32xf32, #tpu.memory_space<vmem>>, vector<80x32xf32>
    %cst_20 = arith.constant dense<0.000000e+00> : vector<32x32xf32>
    %42 = tpu.matmul %40, %41, %cst_20 {dimension_numbers = #tpu.dot_dimension_numbers<[1], [0], [0], [1], [0, 0, 1, 1], [], []>} : vector<32x80xf32>, vector<80x32xf32>, vector<32x32xf32> -> vector<32x32xf32>
    %c0_21 = arith.constant 0 : index
    %c0_22 = arith.constant 0 : index
    %43 = vector.load %arg3[%c0_21, %c0_22] : memref<1x32xf32, #tpu.memory_space<vmem>>, vector<1x32xf32>
    %44 = vector.broadcast %43 : vector<1x32xf32> to vector<32x32xf32>
    %45 = arith.addf %42, %44 : vector<32x32xf32>
    %cst_23 = arith.constant 0.000000e+00 : f32
    %46 = vector.broadcast %cst_23 : f32 to vector<32x32xf32>
    %47 = arith.maximumf %45, %46 : vector<32x32xf32>
    %cst_24 = arith.constant 0.000000e+00 : f32
    %48 = vector.broadcast %cst_24 : f32 to vector<32x320xf32>
    %c0_25 = arith.constant 0 : index
    %c0_26 = arith.constant 0 : index
    %49 = vector.load %arg23[%c0_25, %c0_26] : memref<32x320xf32, #tpu.memory_space<vmem>>, vector<32x320xf32>
    tpu.vector_store %arg23[%c0_25, %c0_26], %48 {strides = array<i32>} : memref<32x320xf32, #tpu.memory_space<vmem>>, vector<32x320xf32>,
    %50 = vector.extract_strided_slice %47 {offsets = [0, 0], sizes = [7, 32], strides = [1, 1]} : vector<32x32xf32> to vector<7x32xf32>
    %c9_27 = arith.constant 9 : index
    %c0_28 = arith.constant 0 : index
    %51 = vector.load %arg23[%c9_27, %c0_28] : memref<32x320xf32, #tpu.memory_space<vmem>>, vector<7x32xf32>
    tpu.vector_store %arg23[%c9_27, %c0_28], %50 {strides = array<i32>} : memref<32x320xf32, #tpu.memory_space<vmem>>, vector<7x32xf32>,
    %52 = vector.extract_strided_slice %47 {offsets = [16, 0], sizes = [7, 32], strides = [1, 1]} : vector<32x32xf32> to vector<7x32xf32>
    %c25_29 = arith.constant 25 : index
    %c0_30 = arith.constant 0 : index
    %53 = vector.load %arg23[%c25_29, %c0_30] : memref<32x320xf32, #tpu.memory_space<vmem>>, vector<7x32xf32>
    tpu.vector_store %arg23[%c25_29, %c0_30], %52 {strides = array<i32>} : memref<32x320xf32, #tpu.memory_space<vmem>>, vector<7x32xf32>,
    %54 = vector.extract_strided_slice %47 {offsets = [0, 0], sizes = [8, 32], strides = [1, 1]} : vector<32x32xf32> to vector<8x32xf32>
    %c8_31 = arith.constant 8 : index
    %c32_32 = arith.constant 32 : index
    %55 = vector.load %arg23[%c8_31, %c32_32] : memref<32x320xf32, #tpu.memory_space<vmem>>, vector<8x32xf32>
    tpu.vector_store %arg23[%c8_31, %c32_32], %54 {strides = array<i32>} : memref<32x320xf32, #tpu.memory_space<vmem>>, vector<8x32xf32>,
    %56 = vector.extract_strided_slice %47 {offsets = [16, 0], sizes = [8, 32], strides = [1, 1]} : vector<32x32xf32> to vector<8x32xf32>
    %c24_33 = arith.constant 24 : index
    %c32_34 = arith.constant 32 : index
    %57 = vector.load %arg23[%c24_33, %c32_34] : memref<32x320xf32, #tpu.memory_space<vmem>>, vector<8x32xf32>
    tpu.vector_store %arg23[%c24_33, %c32_34], %56 {strides = array<i32>} : memref<32x320xf32, #tpu.memory_space<vmem>>, vector<8x32xf32>,
    %58 = vector.extract_strided_slice %47 {offsets = [0, 0], sizes = [9, 32], strides = [1, 1]} : vector<32x32xf32> to vector<9x32xf32>
    %c7_35 = arith.constant 7 : index
    %c64_36 = arith.constant 64 : index
    %59 = vector.load %arg23[%c7_35, %c64_36] : memref<32x320xf32, #tpu.memory_space<vmem>>, vector<9x32xf32>
    tpu.vector_store %arg23[%c7_35, %c64_36], %58 {strides = array<i32>} : memref<32x320xf32, #tpu.memory_space<vmem>>, vector<9x32xf32>,
    %60 = vector.extract_strided_slice %47 {offsets = [16, 0], sizes = [9, 32], strides = [1, 1]} : vector<32x32xf32> to vector<9x32xf32>
    %c23_37 = arith.constant 23 : index
    %c64_38 = arith.constant 64 : index
    %61 = vector.load %arg23[%c23_37, %c64_38] : memref<32x320xf32, #tpu.memory_space<vmem>>, vector<9x32xf32>
    tpu.vector_store %arg23[%c23_37, %c64_38], %60 {strides = array<i32>} : memref<32x320xf32, #tpu.memory_space<vmem>>, vector<9x32xf32>,
    %62 = vector.extract_strided_slice %47 {offsets = [0, 0], sizes = [10, 32], strides = [1, 1]} : vector<32x32xf32> to vector<10x32xf32>
    %c6_39 = arith.constant 6 : index
    %c96 = arith.constant 96 : index
    %63 = vector.load %arg23[%c6_39, %c96] : memref<32x320xf32, #tpu.memory_space<vmem>>, vector<10x32xf32>
    tpu.vector_store %arg23[%c6_39, %c96], %62 {strides = array<i32>} : memref<32x320xf32, #tpu.memory_space<vmem>>, vector<10x32xf32>,
    %64 = vector.extract_strided_slice %47 {offsets = [16, 0], sizes = [10, 32], strides = [1, 1]} : vector<32x32xf32> to vector<10x32xf32>
    %c22_40 = arith.constant 22 : index
    %c96_41 = arith.constant 96 : index
    %65 = vector.load %arg23[%c22_40, %c96_41] : memref<32x320xf32, #tpu.memory_space<vmem>>, vector<10x32xf32>
    tpu.vector_store %arg23[%c22_40, %c96_41], %64 {strides = array<i32>} : memref<32x320xf32, #tpu.memory_space<vmem>>, vector<10x32xf32>,
    %66 = vector.extract_strided_slice %47 {offsets = [0, 0], sizes = [11, 32], strides = [1, 1]} : vector<32x32xf32> to vector<11x32xf32>
    %c5_42 = arith.constant 5 : index
    %c128 = arith.constant 128 : index
    %67 = vector.load %arg23[%c5_42, %c128] : memref<32x320xf32, #tpu.memory_space<vmem>>, vector<11x32xf32>
    tpu.vector_store %arg23[%c5_42, %c128], %66 {strides = array<i32>} : memref<32x320xf32, #tpu.memory_space<vmem>>, vector<11x32xf32>,
    %68 = vector.extract_strided_slice %47 {offsets = [16, 0], sizes = [11, 32], strides = [1, 1]} : vector<32x32xf32> to vector<11x32xf32>
    %c21_43 = arith.constant 21 : index
    %c128_44 = arith.constant 128 : index
    %69 = vector.load %arg23[%c21_43, %c128_44] : memref<32x320xf32, #tpu.memory_space<vmem>>, vector<11x32xf32>
    tpu.vector_store %arg23[%c21_43, %c128_44], %68 {strides = array<i32>} : memref<32x320xf32, #tpu.memory_space<vmem>>, vector<11x32xf32>,
    %70 = vector.extract_strided_slice %47 {offsets = [0, 0], sizes = [12, 32], strides = [1, 1]} : vector<32x32xf32> to vector<12x32xf32>
    %c4_45 = arith.constant 4 : index
    %c160 = arith.constant 160 : index
    %71 = vector.load %arg23[%c4_45, %c160] : memref<32x320xf32, #tpu.memory_space<vmem>>, vector<12x32xf32>
    tpu.vector_store %arg23[%c4_45, %c160], %70 {strides = array<i32>} : memref<32x320xf32, #tpu.memory_space<vmem>>, vector<12x32xf32>,
    %72 = vector.extract_strided_slice %47 {offsets = [16, 0], sizes = [12, 32], strides = [1, 1]} : vector<32x32xf32> to vector<12x32xf32>
    %c20_46 = arith.constant 20 : index
    %c160_47 = arith.constant 160 : index
    %73 = vector.load %arg23[%c20_46, %c160_47] : memref<32x320xf32, #tpu.memory_space<vmem>>, vector<12x32xf32>
    tpu.vector_store %arg23[%c20_46, %c160_47], %72 {strides = array<i32>} : memref<32x320xf32, #tpu.memory_space<vmem>>, vector<12x32xf32>,
    %74 = vector.extract_strided_slice %47 {offsets = [0, 0], sizes = [13, 32], strides = [1, 1]} : vector<32x32xf32> to vector<13x32xf32>
    %c3_48 = arith.constant 3 : index
    %c192 = arith.constant 192 : index
    %75 = vector.load %arg23[%c3_48, %c192] : memref<32x320xf32, #tpu.memory_space<vmem>>, vector<13x32xf32>
    tpu.vector_store %arg23[%c3_48, %c192], %74 {strides = array<i32>} : memref<32x320xf32, #tpu.memory_space<vmem>>, vector<13x32xf32>,
    %76 = vector.extract_strided_slice %47 {offsets = [16, 0], sizes = [13, 32], strides = [1, 1]} : vector<32x32xf32> to vector<13x32xf32>
    %c19_49 = arith.constant 19 : index
    %c192_50 = arith.constant 192 : index
    %77 = vector.load %arg23[%c19_49, %c192_50] : memref<32x320xf32, #tpu.memory_space<vmem>>, vector<13x32xf32>
    tpu.vector_store %arg23[%c19_49, %c192_50], %76 {strides = array<i32>} : memref<32x320xf32, #tpu.memory_space<vmem>>, vector<13x32xf32>,
    %78 = vector.extract_strided_slice %47 {offsets = [0, 0], sizes = [14, 32], strides = [1, 1]} : vector<32x32xf32> to vector<14x32xf32>
    %c2_51 = arith.constant 2 : index
    %c224 = arith.constant 224 : index
    %79 = vector.load %arg23[%c2_51, %c224] : memref<32x320xf32, #tpu.memory_space<vmem>>, vector<14x32xf32>
    tpu.vector_store %arg23[%c2_51, %c224], %78 {strides = array<i32>} : memref<32x320xf32, #tpu.memory_space<vmem>>, vector<14x32xf32>,
    %80 = vector.extract_strided_slice %47 {offsets = [16, 0], sizes = [14, 32], strides = [1, 1]} : vector<32x32xf32> to vector<14x32xf32>
    %c18_52 = arith.constant 18 : index
    %c224_53 = arith.constant 224 : index
    %81 = vector.load %arg23[%c18_52, %c224_53] : memref<32x320xf32, #tpu.memory_space<vmem>>, vector<14x32xf32>
    tpu.vector_store %arg23[%c18_52, %c224_53], %80 {strides = array<i32>} : memref<32x320xf32, #tpu.memory_space<vmem>>, vector<14x32xf32>,
    %82 = vector.extract_strided_slice %47 {offsets = [0, 0], sizes = [15, 32], strides = [1, 1]} : vector<32x32xf32> to vector<15x32xf32>
    %c1_54 = arith.constant 1 : index
    %c256 = arith.constant 256 : index
    %83 = vector.load %arg23[%c1_54, %c256] : memref<32x320xf32, #tpu.memory_space<vmem>>, vector<15x32xf32>
    tpu.vector_store %arg23[%c1_54, %c256], %82 {strides = array<i32>} : memref<32x320xf32, #tpu.memory_space<vmem>>, vector<15x32xf32>,
    %84 = vector.extract_strided_slice %47 {offsets = [16, 0], sizes = [15, 32], strides = [1, 1]} : vector<32x32xf32> to vector<15x32xf32>
    %c17_55 = arith.constant 17 : index
    %c256_56 = arith.constant 256 : index
    %85 = vector.load %arg23[%c17_55, %c256_56] : memref<32x320xf32, #tpu.memory_space<vmem>>, vector<15x32xf32>
    tpu.vector_store %arg23[%c17_55, %c256_56], %84 {strides = array<i32>} : memref<32x320xf32, #tpu.memory_space<vmem>>, vector<15x32xf32>,
    %c0_57 = arith.constant 0 : index
    %c288 = arith.constant 288 : index
    %86 = vector.load %arg23[%c0_57, %c288] : memref<32x320xf32, #tpu.memory_space<vmem>>, vector<32x32xf32>
    tpu.vector_store %arg23[%c0_57, %c288], %47 {strides = array<i32>} : memref<32x320xf32, #tpu.memory_space<vmem>>, vector<32x32xf32>,
    %c0_58 = arith.constant 0 : index
    %c0_59 = arith.constant 0 : index
    %87 = vector.load %arg23[%c0_58, %c0_59] : memref<32x320xf32, #tpu.memory_space<vmem>>, vector<32x320xf32>
    %c0_60 = arith.constant 0 : index
    %c0_61 = arith.constant 0 : index
    %88 = vector.load %arg4[%c0_60, %c0_61] : memref<320x32xf32, #tpu.memory_space<vmem>>, vector<320x32xf32>
    %cst_62 = arith.constant dense<0.000000e+00> : vector<32x32xf32>
    %89 = tpu.matmul %87, %88, %cst_62 {dimension_numbers = #tpu.dot_dimension_numbers<[1], [0], [0], [1], [0, 0, 1, 1], [], []>} : vector<32x320xf32>, vector<320x32xf32>, vector<32x32xf32> -> vector<32x32xf32>
    %c0_63 = arith.constant 0 : index
    %c0_64 = arith.constant 0 : index
    %90 = vector.load %arg5[%c0_63, %c0_64] : memref<1x32xf32, #tpu.memory_space<vmem>>, vector<1x32xf32>
    %91 = vector.broadcast %90 : vector<1x32xf32> to vector<32x32xf32>
    %92 = arith.addf %89, %91 : vector<32x32xf32>
    %cst_65 = arith.constant 0.000000e+00 : f32
    %93 = vector.broadcast %cst_65 : f32 to vector<32x32xf32>
    %94 = arith.maximumf %92, %93 : vector<32x32xf32>
    %c0_66 = arith.constant 0 : index
    %c0_67 = arith.constant 0 : index
    %95 = vector.load %arg6[%c0_66, %c0_67] : memref<8x32xf32, #tpu.memory_space<vmem>>, vector<8x32xf32>
    %cst_68 = arith.constant dense<0.000000e+00> : vector<32x32xf32>
    %96 = tpu.matmul %0, %95, %cst_68 {dimension_numbers = #tpu.dot_dimension_numbers<[1], [0], [0], [1], [0, 0, 1, 1], [], []>} : vector<32x8xf32>, vector<8x32xf32>, vector<32x32xf32> -> vector<32x32xf32>
    %c0_69 = arith.constant 0 : index
    %c0_70 = arith.constant 0 : index
    %97 = vector.load %arg7[%c0_69, %c0_70] : memref<1x32xf32, #tpu.memory_space<vmem>>, vector<1x32xf32>
    %98 = vector.broadcast %97 : vector<1x32xf32> to vector<32x32xf32>
    %99 = arith.addf %96, %98 : vector<32x32xf32>
    %100 = arith.addf %94, %99 : vector<32x32xf32>
    %cst_71 = arith.constant 0.000000e+00 : f32
    %101 = vector.broadcast %cst_71 : f32 to vector<32x32xf32>
    %102 = arith.maximumf %100, %101 : vector<32x32xf32>
    %cst_72 = arith.constant 0.000000e+00 : f32
    %103 = vector.broadcast %cst_72 : f32 to vector<32x256xf32>
    %c0_73 = arith.constant 0 : index
    %c0_74 = arith.constant 0 : index
    %104 = vector.load %arg23[%c0_73, %c0_74] : memref<32x320xf32, #tpu.memory_space<vmem>>, vector<32x256xf32>
    tpu.vector_store %arg23[%c0_73, %c0_74], %103 {strides = array<i32>} : memref<32x320xf32, #tpu.memory_space<vmem>>, vector<32x256xf32>,
    %105 = vector.extract_strided_slice %102 {offsets = [0, 0], sizes = [2, 32], strides = [1, 1]} : vector<32x32xf32> to vector<2x32xf32>
    %c14 = arith.constant 14 : index
    %c0_75 = arith.constant 0 : index
    %106 = vector.load %arg23[%c14, %c0_75] : memref<32x320xf32, #tpu.memory_space<vmem>>, vector<2x32xf32>
    tpu.vector_store %arg23[%c14, %c0_75], %105 {strides = array<i32>} : memref<32x320xf32, #tpu.memory_space<vmem>>, vector<2x32xf32>,
    %107 = vector.extract_strided_slice %102 {offsets = [16, 0], sizes = [2, 32], strides = [1, 1]} : vector<32x32xf32> to vector<2x32xf32>
    %c30 = arith.constant 30 : index
    %c0_76 = arith.constant 0 : index
    %108 = vector.load %arg23[%c30, %c0_76] : memref<32x320xf32, #tpu.memory_space<vmem>>, vector<2x32xf32>
    tpu.vector_store %arg23[%c30, %c0_76], %107 {strides = array<i32>} : memref<32x320xf32, #tpu.memory_space<vmem>>, vector<2x32xf32>,
    %109 = vector.extract_strided_slice %102 {offsets = [0, 0], sizes = [4, 32], strides = [1, 1]} : vector<32x32xf32> to vector<4x32xf32>
    %c12 = arith.constant 12 : index
    %c32_77 = arith.constant 32 : index
    %110 = vector.load %arg23[%c12, %c32_77] : memref<32x320xf32, #tpu.memory_space<vmem>>, vector<4x32xf32>
    tpu.vector_store %arg23[%c12, %c32_77], %109 {strides = array<i32>} : memref<32x320xf32, #tpu.memory_space<vmem>>, vector<4x32xf32>,
    %111 = vector.extract_strided_slice %102 {offsets = [16, 0], sizes = [4, 32], strides = [1, 1]} : vector<32x32xf32> to vector<4x32xf32>
    %c28 = arith.constant 28 : index
    %c32_78 = arith.constant 32 : index
    %112 = vector.load %arg23[%c28, %c32_78] : memref<32x320xf32, #tpu.memory_space<vmem>>, vector<4x32xf32>
    tpu.vector_store %arg23[%c28, %c32_78], %111 {strides = array<i32>} : memref<32x320xf32, #tpu.memory_space<vmem>>, vector<4x32xf32>,
    %113 = vector.extract_strided_slice %102 {offsets = [0, 0], sizes = [6, 32], strides = [1, 1]} : vector<32x32xf32> to vector<6x32xf32>
    %c10 = arith.constant 10 : index
    %c64_79 = arith.constant 64 : index
    %114 = vector.load %arg23[%c10, %c64_79] : memref<32x320xf32, #tpu.memory_space<vmem>>, vector<6x32xf32>
    tpu.vector_store %arg23[%c10, %c64_79], %113 {strides = array<i32>} : memref<32x320xf32, #tpu.memory_space<vmem>>, vector<6x32xf32>,
    %115 = vector.extract_strided_slice %102 {offsets = [16, 0], sizes = [6, 32], strides = [1, 1]} : vector<32x32xf32> to vector<6x32xf32>
    %c26 = arith.constant 26 : index
    %c64_80 = arith.constant 64 : index
    %116 = vector.load %arg23[%c26, %c64_80] : memref<32x320xf32, #tpu.memory_space<vmem>>, vector<6x32xf32>
    tpu.vector_store %arg23[%c26, %c64_80], %115 {strides = array<i32>} : memref<32x320xf32, #tpu.memory_space<vmem>>, vector<6x32xf32>,
    %117 = vector.extract_strided_slice %102 {offsets = [0, 0], sizes = [8, 32], strides = [1, 1]} : vector<32x32xf32> to vector<8x32xf32>
    %c8_81 = arith.constant 8 : index
    %c96_82 = arith.constant 96 : index
    %118 = vector.load %arg23[%c8_81, %c96_82] : memref<32x320xf32, #tpu.memory_space<vmem>>, vector<8x32xf32>
    tpu.vector_store %arg23[%c8_81, %c96_82], %117 {strides = array<i32>} : memref<32x320xf32, #tpu.memory_space<vmem>>, vector<8x32xf32>,
    %119 = vector.extract_strided_slice %102 {offsets = [16, 0], sizes = [8, 32], strides = [1, 1]} : vector<32x32xf32> to vector<8x32xf32>
    %c24_83 = arith.constant 24 : index
    %c96_84 = arith.constant 96 : index
    %120 = vector.load %arg23[%c24_83, %c96_84] : memref<32x320xf32, #tpu.memory_space<vmem>>, vector<8x32xf32>
    tpu.vector_store %arg23[%c24_83, %c96_84], %119 {strides = array<i32>} : memref<32x320xf32, #tpu.memory_space<vmem>>, vector<8x32xf32>,
    %121 = vector.extract_strided_slice %102 {offsets = [0, 0], sizes = [10, 32], strides = [1, 1]} : vector<32x32xf32> to vector<10x32xf32>
    %c6_85 = arith.constant 6 : index
    %c128_86 = arith.constant 128 : index
    %122 = vector.load %arg23[%c6_85, %c128_86] : memref<32x320xf32, #tpu.memory_space<vmem>>, vector<10x32xf32>
    tpu.vector_store %arg23[%c6_85, %c128_86], %121 {strides = array<i32>} : memref<32x320xf32, #tpu.memory_space<vmem>>, vector<10x32xf32>,
    %123 = vector.extract_strided_slice %102 {offsets = [16, 0], sizes = [10, 32], strides = [1, 1]} : vector<32x32xf32> to vector<10x32xf32>
    %c22_87 = arith.constant 22 : index
    %c128_88 = arith.constant 128 : index
    %124 = vector.load %arg23[%c22_87, %c128_88] : memref<32x320xf32, #tpu.memory_space<vmem>>, vector<10x32xf32>
    tpu.vector_store %arg23[%c22_87, %c128_88], %123 {strides = array<i32>} : memref<32x320xf32, #tpu.memory_space<vmem>>, vector<10x32xf32>,
    %125 = vector.extract_strided_slice %102 {offsets = [0, 0], sizes = [12, 32], strides = [1, 1]} : vector<32x32xf32> to vector<12x32xf32>
    %c4_89 = arith.constant 4 : index
    %c160_90 = arith.constant 160 : index
    %126 = vector.load %arg23[%c4_89, %c160_90] : memref<32x320xf32, #tpu.memory_space<vmem>>, vector<12x32xf32>
    tpu.vector_store %arg23[%c4_89, %c160_90], %125 {strides = array<i32>} : memref<32x320xf32, #tpu.memory_space<vmem>>, vector<12x32xf32>,
    %127 = vector.extract_strided_slice %102 {offsets = [16, 0], sizes = [12, 32], strides = [1, 1]} : vector<32x32xf32> to vector<12x32xf32>
    %c20_91 = arith.constant 20 : index
    %c160_92 = arith.constant 160 : index
    %128 = vector.load %arg23[%c20_91, %c160_92] : memref<32x320xf32, #tpu.memory_space<vmem>>, vector<12x32xf32>
    tpu.vector_store %arg23[%c20_91, %c160_92], %127 {strides = array<i32>} : memref<32x320xf32, #tpu.memory_space<vmem>>, vector<12x32xf32>,
    %129 = vector.extract_strided_slice %102 {offsets = [0, 0], sizes = [14, 32], strides = [1, 1]} : vector<32x32xf32> to vector<14x32xf32>
    %c2_93 = arith.constant 2 : index
    %c192_94 = arith.constant 192 : index
    %130 = vector.load %arg23[%c2_93, %c192_94] : memref<32x320xf32, #tpu.memory_space<vmem>>, vector<14x32xf32>
    tpu.vector_store %arg23[%c2_93, %c192_94], %129 {strides = array<i32>} : memref<32x320xf32, #tpu.memory_space<vmem>>, vector<14x32xf32>,
    %131 = vector.extract_strided_slice %102 {offsets = [16, 0], sizes = [14, 32], strides = [1, 1]} : vector<32x32xf32> to vector<14x32xf32>
    %c18_95 = arith.constant 18 : index
    %c192_96 = arith.constant 192 : index
    %132 = vector.load %arg23[%c18_95, %c192_96] : memref<32x320xf32, #tpu.memory_space<vmem>>, vector<14x32xf32>
    tpu.vector_store %arg23[%c18_95, %c192_96], %131 {strides = array<i32>} : memref<32x320xf32, #tpu.memory_space<vmem>>, vector<14x32xf32>,
    %c0_97 = arith.constant 0 : index
    %c224_98 = arith.constant 224 : index
    %133 = vector.load %arg23[%c0_97, %c224_98] : memref<32x320xf32, #tpu.memory_space<vmem>>, vector<32x32xf32>
    tpu.vector_store %arg23[%c0_97, %c224_98], %102 {strides = array<i32>} : memref<32x320xf32, #tpu.memory_space<vmem>>, vector<32x32xf32>,
    %c0_99 = arith.constant 0 : index
    %c0_100 = arith.constant 0 : index
    %134 = vector.load %arg23[%c0_99, %c0_100] : memref<32x320xf32, #tpu.memory_space<vmem>>, vector<32x256xf32>
    %c0_101 = arith.constant 0 : index
    %c0_102 = arith.constant 0 : index
    %135 = vector.load %arg8[%c0_101, %c0_102] : memref<256x32xf32, #tpu.memory_space<vmem>>, vector<256x32xf32>
    %cst_103 = arith.constant dense<0.000000e+00> : vector<32x32xf32>
    %136 = tpu.matmul %134, %135, %cst_103 {dimension_numbers = #tpu.dot_dimension_numbers<[1], [0], [0], [1], [0, 0, 1, 1], [], []>} : vector<32x256xf32>, vector<256x32xf32>, vector<32x32xf32> -> vector<32x32xf32>
    %c0_104 = arith.constant 0 : index
    %c0_105 = arith.constant 0 : index
    %137 = vector.load %arg9[%c0_104, %c0_105] : memref<1x32xf32, #tpu.memory_space<vmem>>, vector<1x32xf32>
    %138 = vector.broadcast %137 : vector<1x32xf32> to vector<32x32xf32>
    %139 = arith.addf %136, %138 : vector<32x32xf32>
    %cst_106 = arith.constant 0.000000e+00 : f32
    %140 = vector.broadcast %cst_106 : f32 to vector<32x32xf32>
    %141 = arith.maximumf %139, %140 : vector<32x32xf32>
    %cst_107 = arith.constant 0.000000e+00 : f32
    %142 = vector.broadcast %cst_107 : f32 to vector<32x256xf32>
    %c0_108 = arith.constant 0 : index
    %c0_109 = arith.constant 0 : index
    %143 = vector.load %arg23[%c0_108, %c0_109] : memref<32x320xf32, #tpu.memory_space<vmem>>, vector<32x256xf32>
    tpu.vector_store %arg23[%c0_108, %c0_109], %142 {strides = array<i32>} : memref<32x320xf32, #tpu.memory_space<vmem>>, vector<32x256xf32>,
    %144 = vector.extract_strided_slice %141 {offsets = [0, 0], sizes = [2, 32], strides = [1, 1]} : vector<32x32xf32> to vector<2x32xf32>
    %c14_110 = arith.constant 14 : index
    %c0_111 = arith.constant 0 : index
    %145 = vector.load %arg23[%c14_110, %c0_111] : memref<32x320xf32, #tpu.memory_space<vmem>>, vector<2x32xf32>
    tpu.vector_store %arg23[%c14_110, %c0_111], %144 {strides = array<i32>} : memref<32x320xf32, #tpu.memory_space<vmem>>, vector<2x32xf32>,
    %146 = vector.extract_strided_slice %141 {offsets = [16, 0], sizes = [2, 32], strides = [1, 1]} : vector<32x32xf32> to vector<2x32xf32>
    %c30_112 = arith.constant 30 : index
    %c0_113 = arith.constant 0 : index
    %147 = vector.load %arg23[%c30_112, %c0_113] : memref<32x320xf32, #tpu.memory_space<vmem>>, vector<2x32xf32>
    tpu.vector_store %arg23[%c30_112, %c0_113], %146 {strides = array<i32>} : memref<32x320xf32, #tpu.memory_space<vmem>>, vector<2x32xf32>,
    %148 = vector.extract_strided_slice %141 {offsets = [0, 0], sizes = [4, 32], strides = [1, 1]} : vector<32x32xf32> to vector<4x32xf32>
    %c12_114 = arith.constant 12 : index
    %c32_115 = arith.constant 32 : index
    %149 = vector.load %arg23[%c12_114, %c32_115] : memref<32x320xf32, #tpu.memory_space<vmem>>, vector<4x32xf32>
    tpu.vector_store %arg23[%c12_114, %c32_115], %148 {strides = array<i32>} : memref<32x320xf32, #tpu.memory_space<vmem>>, vector<4x32xf32>,
    %150 = vector.extract_strided_slice %141 {offsets = [16, 0], sizes = [4, 32], strides = [1, 1]} : vector<32x32xf32> to vector<4x32xf32>
    %c28_116 = arith.constant 28 : index
    %c32_117 = arith.constant 32 : index
    %151 = vector.load %arg23[%c28_116, %c32_117] : memref<32x320xf32, #tpu.memory_space<vmem>>, vector<4x32xf32>
    tpu.vector_store %arg23[%c28_116, %c32_117], %150 {strides = array<i32>} : memref<32x320xf32, #tpu.memory_space<vmem>>, vector<4x32xf32>,
    %152 = vector.extract_strided_slice %141 {offsets = [0, 0], sizes = [6, 32], strides = [1, 1]} : vector<32x32xf32> to vector<6x32xf32>
    %c10_118 = arith.constant 10 : index
    %c64_119 = arith.constant 64 : index
    %153 = vector.load %arg23[%c10_118, %c64_119] : memref<32x320xf32, #tpu.memory_space<vmem>>, vector<6x32xf32>
    tpu.vector_store %arg23[%c10_118, %c64_119], %152 {strides = array<i32>} : memref<32x320xf32, #tpu.memory_space<vmem>>, vector<6x32xf32>,
    %154 = vector.extract_strided_slice %141 {offsets = [16, 0], sizes = [6, 32], strides = [1, 1]} : vector<32x32xf32> to vector<6x32xf32>
    %c26_120 = arith.constant 26 : index
    %c64_121 = arith.constant 64 : index
    %155 = vector.load %arg23[%c26_120, %c64_121] : memref<32x320xf32, #tpu.memory_space<vmem>>, vector<6x32xf32>
    tpu.vector_store %arg23[%c26_120, %c64_121], %154 {strides = array<i32>} : memref<32x320xf32, #tpu.memory_space<vmem>>, vector<6x32xf32>,
    %156 = vector.extract_strided_slice %141 {offsets = [0, 0], sizes = [8, 32], strides = [1, 1]} : vector<32x32xf32> to vector<8x32xf32>
    %c8_122 = arith.constant 8 : index
    %c96_123 = arith.constant 96 : index
    %157 = vector.load %arg23[%c8_122, %c96_123] : memref<32x320xf32, #tpu.memory_space<vmem>>, vector<8x32xf32>
    tpu.vector_store %arg23[%c8_122, %c96_123], %156 {strides = array<i32>} : memref<32x320xf32, #tpu.memory_space<vmem>>, vector<8x32xf32>,
    %158 = vector.extract_strided_slice %141 {offsets = [16, 0], sizes = [8, 32], strides = [1, 1]} : vector<32x32xf32> to vector<8x32xf32>
    %c24_124 = arith.constant 24 : index
    %c96_125 = arith.constant 96 : index
    %159 = vector.load %arg23[%c24_124, %c96_125] : memref<32x320xf32, #tpu.memory_space<vmem>>, vector<8x32xf32>
    tpu.vector_store %arg23[%c24_124, %c96_125], %158 {strides = array<i32>} : memref<32x320xf32, #tpu.memory_space<vmem>>, vector<8x32xf32>,
    %160 = vector.extract_strided_slice %141 {offsets = [0, 0], sizes = [10, 32], strides = [1, 1]} : vector<32x32xf32> to vector<10x32xf32>
    %c6_126 = arith.constant 6 : index
    %c128_127 = arith.constant 128 : index
    %161 = vector.load %arg23[%c6_126, %c128_127] : memref<32x320xf32, #tpu.memory_space<vmem>>, vector<10x32xf32>
    tpu.vector_store %arg23[%c6_126, %c128_127], %160 {strides = array<i32>} : memref<32x320xf32, #tpu.memory_space<vmem>>, vector<10x32xf32>,
    %162 = vector.extract_strided_slice %141 {offsets = [16, 0], sizes = [10, 32], strides = [1, 1]} : vector<32x32xf32> to vector<10x32xf32>
    %c22_128 = arith.constant 22 : index
    %c128_129 = arith.constant 128 : index
    %163 = vector.load %arg23[%c22_128, %c128_129] : memref<32x320xf32, #tpu.memory_space<vmem>>, vector<10x32xf32>
    tpu.vector_store %arg23[%c22_128, %c128_129], %162 {strides = array<i32>} : memref<32x320xf32, #tpu.memory_space<vmem>>, vector<10x32xf32>,
    %164 = vector.extract_strided_slice %141 {offsets = [0, 0], sizes = [12, 32], strides = [1, 1]} : vector<32x32xf32> to vector<12x32xf32>
    %c4_130 = arith.constant 4 : index
    %c160_131 = arith.constant 160 : index
    %165 = vector.load %arg23[%c4_130, %c160_131] : memref<32x320xf32, #tpu.memory_space<vmem>>, vector<12x32xf32>
    tpu.vector_store %arg23[%c4_130, %c160_131], %164 {strides = array<i32>} : memref<32x320xf32, #tpu.memory_space<vmem>>, vector<12x32xf32>,
    %166 = vector.extract_strided_slice %141 {offsets = [16, 0], sizes = [12, 32], strides = [1, 1]} : vector<32x32xf32> to vector<12x32xf32>
    %c20_132 = arith.constant 20 : index
    %c160_133 = arith.constant 160 : index
    %167 = vector.load %arg23[%c20_132, %c160_133] : memref<32x320xf32, #tpu.memory_space<vmem>>, vector<12x32xf32>
    tpu.vector_store %arg23[%c20_132, %c160_133], %166 {strides = array<i32>} : memref<32x320xf32, #tpu.memory_space<vmem>>, vector<12x32xf32>,
    %168 = vector.extract_strided_slice %141 {offsets = [0, 0], sizes = [14, 32], strides = [1, 1]} : vector<32x32xf32> to vector<14x32xf32>
    %c2_134 = arith.constant 2 : index
    %c192_135 = arith.constant 192 : index
    %169 = vector.load %arg23[%c2_134, %c192_135] : memref<32x320xf32, #tpu.memory_space<vmem>>, vector<14x32xf32>
    tpu.vector_store %arg23[%c2_134, %c192_135], %168 {strides = array<i32>} : memref<32x320xf32, #tpu.memory_space<vmem>>, vector<14x32xf32>,
    %170 = vector.extract_strided_slice %141 {offsets = [16, 0], sizes = [14, 32], strides = [1, 1]} : vector<32x32xf32> to vector<14x32xf32>
    %c18_136 = arith.constant 18 : index
    %c192_137 = arith.constant 192 : index
    %171 = vector.load %arg23[%c18_136, %c192_137] : memref<32x320xf32, #tpu.memory_space<vmem>>, vector<14x32xf32>
    tpu.vector_store %arg23[%c18_136, %c192_137], %170 {strides = array<i32>} : memref<32x320xf32, #tpu.memory_space<vmem>>, vector<14x32xf32>,
    %c0_138 = arith.constant 0 : index
    %c224_139 = arith.constant 224 : index
    %172 = vector.load %arg23[%c0_138, %c224_139] : memref<32x320xf32, #tpu.memory_space<vmem>>, vector<32x32xf32>
    tpu.vector_store %arg23[%c0_138, %c224_139], %141 {strides = array<i32>} : memref<32x320xf32, #tpu.memory_space<vmem>>, vector<32x32xf32>,
    %c0_140 = arith.constant 0 : index
    %c0_141 = arith.constant 0 : index
    %173 = vector.load %arg23[%c0_140, %c0_141] : memref<32x320xf32, #tpu.memory_space<vmem>>, vector<32x256xf32>
    %c0_142 = arith.constant 0 : index
    %c0_143 = arith.constant 0 : index
    %174 = vector.load %arg10[%c0_142, %c0_143] : memref<256x32xf32, #tpu.memory_space<vmem>>, vector<256x32xf32>
    %cst_144 = arith.constant dense<0.000000e+00> : vector<32x32xf32>
    %175 = tpu.matmul %173, %174, %cst_144 {dimension_numbers = #tpu.dot_dimension_numbers<[1], [0], [0], [1], [0, 0, 1, 1], [], []>} : vector<32x256xf32>, vector<256x32xf32>, vector<32x32xf32> -> vector<32x32xf32>
    %c0_145 = arith.constant 0 : index
    %c0_146 = arith.constant 0 : index
    %176 = vector.load %arg11[%c0_145, %c0_146] : memref<1x32xf32, #tpu.memory_space<vmem>>, vector<1x32xf32>
    %177 = vector.broadcast %176 : vector<1x32xf32> to vector<32x32xf32>
    %178 = arith.addf %175, %177 : vector<32x32xf32>
    %cst_147 = arith.constant 0.000000e+00 : f32
    %179 = vector.broadcast %cst_147 : f32 to vector<32x32xf32>
    %180 = arith.maximumf %178, %179 : vector<32x32xf32>
    %181 = arith.addf %180, %102 : vector<32x32xf32>
    %cst_148 = arith.constant 0.000000e+00 : f32
    %182 = vector.broadcast %cst_148 : f32 to vector<32x32xf32>
    %183 = arith.maximumf %181, %182 : vector<32x32xf32>
    %cst_149 = arith.constant 0.000000e+00 : f32
    %184 = vector.broadcast %cst_149 : f32 to vector<32x128xf32>
    %c0_150 = arith.constant 0 : index
    %c0_151 = arith.constant 0 : index
    %185 = vector.load %arg23[%c0_150, %c0_151] : memref<32x320xf32, #tpu.memory_space<vmem>>, vector<32x128xf32>
    tpu.vector_store %arg23[%c0_150, %c0_151], %184 {strides = array<i32>} : memref<32x320xf32, #tpu.memory_space<vmem>>, vector<32x128xf32>,
    %186 = vector.extract_strided_slice %183 {offsets = [0, 0], sizes = [4, 32], strides = [1, 1]} : vector<32x32xf32> to vector<4x32xf32>
    %c12_152 = arith.constant 12 : index
    %c0_153 = arith.constant 0 : index
    %187 = vector.load %arg23[%c12_152, %c0_153] : memref<32x320xf32, #tpu.memory_space<vmem>>, vector<4x32xf32>
    tpu.vector_store %arg23[%c12_152, %c0_153], %186 {strides = array<i32>} : memref<32x320xf32, #tpu.memory_space<vmem>>, vector<4x32xf32>,
    %188 = vector.extract_strided_slice %183 {offsets = [16, 0], sizes = [4, 32], strides = [1, 1]} : vector<32x32xf32> to vector<4x32xf32>
    %c28_154 = arith.constant 28 : index
    %c0_155 = arith.constant 0 : index
    %189 = vector.load %arg23[%c28_154, %c0_155] : memref<32x320xf32, #tpu.memory_space<vmem>>, vector<4x32xf32>
    tpu.vector_store %arg23[%c28_154, %c0_155], %188 {strides = array<i32>} : memref<32x320xf32, #tpu.memory_space<vmem>>, vector<4x32xf32>,
    %190 = vector.extract_strided_slice %183 {offsets = [0, 0], sizes = [8, 32], strides = [1, 1]} : vector<32x32xf32> to vector<8x32xf32>
    %c8_156 = arith.constant 8 : index
    %c32_157 = arith.constant 32 : index
    %191 = vector.load %arg23[%c8_156, %c32_157] : memref<32x320xf32, #tpu.memory_space<vmem>>, vector<8x32xf32>
    tpu.vector_store %arg23[%c8_156, %c32_157], %190 {strides = array<i32>} : memref<32x320xf32, #tpu.memory_space<vmem>>, vector<8x32xf32>,
    %192 = vector.extract_strided_slice %183 {offsets = [16, 0], sizes = [8, 32], strides = [1, 1]} : vector<32x32xf32> to vector<8x32xf32>
    %c24_158 = arith.constant 24 : index
    %c32_159 = arith.constant 32 : index
    %193 = vector.load %arg23[%c24_158, %c32_159] : memref<32x320xf32, #tpu.memory_space<vmem>>, vector<8x32xf32>
    tpu.vector_store %arg23[%c24_158, %c32_159], %192 {strides = array<i32>} : memref<32x320xf32, #tpu.memory_space<vmem>>, vector<8x32xf32>,
    %194 = vector.extract_strided_slice %183 {offsets = [0, 0], sizes = [12, 32], strides = [1, 1]} : vector<32x32xf32> to vector<12x32xf32>
    %c4_160 = arith.constant 4 : index
    %c64_161 = arith.constant 64 : index
    %195 = vector.load %arg23[%c4_160, %c64_161] : memref<32x320xf32, #tpu.memory_space<vmem>>, vector<12x32xf32>
    tpu.vector_store %arg23[%c4_160, %c64_161], %194 {strides = array<i32>} : memref<32x320xf32, #tpu.memory_space<vmem>>, vector<12x32xf32>,
    %196 = vector.extract_strided_slice %183 {offsets = [16, 0], sizes = [12, 32], strides = [1, 1]} : vector<32x32xf32> to vector<12x32xf32>
    %c20_162 = arith.constant 20 : index
    %c64_163 = arith.constant 64 : index
    %197 = vector.load %arg23[%c20_162, %c64_163] : memref<32x320xf32, #tpu.memory_space<vmem>>, vector<12x32xf32>
    tpu.vector_store %arg23[%c20_162, %c64_163], %196 {strides = array<i32>} : memref<32x320xf32, #tpu.memory_space<vmem>>, vector<12x32xf32>,
    %c0_164 = arith.constant 0 : index
    %c96_165 = arith.constant 96 : index
    %198 = vector.load %arg23[%c0_164, %c96_165] : memref<32x320xf32, #tpu.memory_space<vmem>>, vector<32x32xf32>
    tpu.vector_store %arg23[%c0_164, %c96_165], %183 {strides = array<i32>} : memref<32x320xf32, #tpu.memory_space<vmem>>, vector<32x32xf32>,
    %c0_166 = arith.constant 0 : index
    %c0_167 = arith.constant 0 : index
    %199 = vector.load %arg23[%c0_166, %c0_167] : memref<32x320xf32, #tpu.memory_space<vmem>>, vector<32x128xf32>
    %c0_168 = arith.constant 0 : index
    %c0_169 = arith.constant 0 : index
    %200 = vector.load %arg12[%c0_168, %c0_169] : memref<128x32xf32, #tpu.memory_space<vmem>>, vector<128x32xf32>
    %cst_170 = arith.constant dense<0.000000e+00> : vector<32x32xf32>
    %201 = tpu.matmul %199, %200, %cst_170 {dimension_numbers = #tpu.dot_dimension_numbers<[1], [0], [0], [1], [0, 0, 1, 1], [], []>} : vector<32x128xf32>, vector<128x32xf32>, vector<32x32xf32> -> vector<32x32xf32>
    %c0_171 = arith.constant 0 : index
    %c0_172 = arith.constant 0 : index
    %202 = vector.load %arg13[%c0_171, %c0_172] : memref<1x32xf32, #tpu.memory_space<vmem>>, vector<1x32xf32>
    %203 = vector.broadcast %202 : vector<1x32xf32> to vector<32x32xf32>
    %204 = arith.addf %201, %203 : vector<32x32xf32>
    %cst_173 = arith.constant 0.000000e+00 : f32
    %205 = vector.broadcast %cst_173 : f32 to vector<32x32xf32>
    %206 = arith.maximumf %204, %205 : vector<32x32xf32>
    %cst_174 = arith.constant 0.000000e+00 : f32
    %207 = vector.broadcast %cst_174 : f32 to vector<32x128xf32>
    %c0_175 = arith.constant 0 : index
    %c0_176 = arith.constant 0 : index
    %208 = vector.load %arg23[%c0_175, %c0_176] : memref<32x320xf32, #tpu.memory_space<vmem>>, vector<32x128xf32>
    tpu.vector_store %arg23[%c0_175, %c0_176], %207 {strides = array<i32>} : memref<32x320xf32, #tpu.memory_space<vmem>>, vector<32x128xf32>,
    %209 = vector.extract_strided_slice %206 {offsets = [0, 0], sizes = [4, 32], strides = [1, 1]} : vector<32x32xf32> to vector<4x32xf32>
    %c12_177 = arith.constant 12 : index
    %c0_178 = arith.constant 0 : index
    %210 = vector.load %arg23[%c12_177, %c0_178] : memref<32x320xf32, #tpu.memory_space<vmem>>, vector<4x32xf32>
    tpu.vector_store %arg23[%c12_177, %c0_178], %209 {strides = array<i32>} : memref<32x320xf32, #tpu.memory_space<vmem>>, vector<4x32xf32>,
    %211 = vector.extract_strided_slice %206 {offsets = [16, 0], sizes = [4, 32], strides = [1, 1]} : vector<32x32xf32> to vector<4x32xf32>
    %c28_179 = arith.constant 28 : index
    %c0_180 = arith.constant 0 : index
    %212 = vector.load %arg23[%c28_179, %c0_180] : memref<32x320xf32, #tpu.memory_space<vmem>>, vector<4x32xf32>
    tpu.vector_store %arg23[%c28_179, %c0_180], %211 {strides = array<i32>} : memref<32x320xf32, #tpu.memory_space<vmem>>, vector<4x32xf32>,
    %213 = vector.extract_strided_slice %206 {offsets = [0, 0], sizes = [8, 32], strides = [1, 1]} : vector<32x32xf32> to vector<8x32xf32>
    %c8_181 = arith.constant 8 : index
    %c32_182 = arith.constant 32 : index
    %214 = vector.load %arg23[%c8_181, %c32_182] : memref<32x320xf32, #tpu.memory_space<vmem>>, vector<8x32xf32>
    tpu.vector_store %arg23[%c8_181, %c32_182], %213 {strides = array<i32>} : memref<32x320xf32, #tpu.memory_space<vmem>>, vector<8x32xf32>,
    %215 = vector.extract_strided_slice %206 {offsets = [16, 0], sizes = [8, 32], strides = [1, 1]} : vector<32x32xf32> to vector<8x32xf32>
    %c24_183 = arith.constant 24 : index
    %c32_184 = arith.constant 32 : index
    %216 = vector.load %arg23[%c24_183, %c32_184] : memref<32x320xf32, #tpu.memory_space<vmem>>, vector<8x32xf32>
    tpu.vector_store %arg23[%c24_183, %c32_184], %215 {strides = array<i32>} : memref<32x320xf32, #tpu.memory_space<vmem>>, vector<8x32xf32>,
    %217 = vector.extract_strided_slice %206 {offsets = [0, 0], sizes = [12, 32], strides = [1, 1]} : vector<32x32xf32> to vector<12x32xf32>
    %c4_185 = arith.constant 4 : index
    %c64_186 = arith.constant 64 : index
    %218 = vector.load %arg23[%c4_185, %c64_186] : memref<32x320xf32, #tpu.memory_space<vmem>>, vector<12x32xf32>
    tpu.vector_store %arg23[%c4_185, %c64_186], %217 {strides = array<i32>} : memref<32x320xf32, #tpu.memory_space<vmem>>, vector<12x32xf32>,
    %219 = vector.extract_strided_slice %206 {offsets = [16, 0], sizes = [12, 32], strides = [1, 1]} : vector<32x32xf32> to vector<12x32xf32>
    %c20_187 = arith.constant 20 : index
    %c64_188 = arith.constant 64 : index
    %220 = vector.load %arg23[%c20_187, %c64_188] : memref<32x320xf32, #tpu.memory_space<vmem>>, vector<12x32xf32>
    tpu.vector_store %arg23[%c20_187, %c64_188], %219 {strides = array<i32>} : memref<32x320xf32, #tpu.memory_space<vmem>>, vector<12x32xf32>,
    %c0_189 = arith.constant 0 : index
    %c96_190 = arith.constant 96 : index
    %221 = vector.load %arg23[%c0_189, %c96_190] : memref<32x320xf32, #tpu.memory_space<vmem>>, vector<32x32xf32>
    tpu.vector_store %arg23[%c0_189, %c96_190], %206 {strides = array<i32>} : memref<32x320xf32, #tpu.memory_space<vmem>>, vector<32x32xf32>,
    %c0_191 = arith.constant 0 : index
    %c0_192 = arith.constant 0 : index
    %222 = vector.load %arg23[%c0_191, %c0_192] : memref<32x320xf32, #tpu.memory_space<vmem>>, vector<32x128xf32>
    %c0_193 = arith.constant 0 : index
    %c0_194 = arith.constant 0 : index
    %223 = vector.load %arg14[%c0_193, %c0_194] : memref<128x32xf32, #tpu.memory_space<vmem>>, vector<128x32xf32>
    %cst_195 = arith.constant dense<0.000000e+00> : vector<32x32xf32>
    %224 = tpu.matmul %222, %223, %cst_195 {dimension_numbers = #tpu.dot_dimension_numbers<[1], [0], [0], [1], [0, 0, 1, 1], [], []>} : vector<32x128xf32>, vector<128x32xf32>, vector<32x32xf32> -> vector<32x32xf32>
    %c0_196 = arith.constant 0 : index
    %c0_197 = arith.constant 0 : index
    %225 = vector.load %arg15[%c0_196, %c0_197] : memref<1x32xf32, #tpu.memory_space<vmem>>, vector<1x32xf32>
    %226 = vector.broadcast %225 : vector<1x32xf32> to vector<32x32xf32>
    %227 = arith.addf %224, %226 : vector<32x32xf32>
    %cst_198 = arith.constant 0.000000e+00 : f32
    %228 = vector.broadcast %cst_198 : f32 to vector<32x32xf32>
    %229 = arith.maximumf %227, %228 : vector<32x32xf32>
    %230 = arith.addf %229, %183 : vector<32x32xf32>
    %cst_199 = arith.constant 0.000000e+00 : f32
    %231 = vector.broadcast %cst_199 : f32 to vector<32x32xf32>
    %232 = arith.maximumf %230, %231 : vector<32x32xf32>
    %cst_200 = arith.constant 0.000000e+00 : f32
    %233 = vector.broadcast %cst_200 : f32 to vector<32x64xf32>
    %c0_201 = arith.constant 0 : index
    %c0_202 = arith.constant 0 : index
    %234 = vector.load %arg23[%c0_201, %c0_202] : memref<32x320xf32, #tpu.memory_space<vmem>>, vector<32x64xf32>
    tpu.vector_store %arg23[%c0_201, %c0_202], %233 {strides = array<i32>} : memref<32x320xf32, #tpu.memory_space<vmem>>, vector<32x64xf32>,
    %235 = vector.extract_strided_slice %232 {offsets = [0, 0], sizes = [8, 32], strides = [1, 1]} : vector<32x32xf32> to vector<8x32xf32>
    %c8_203 = arith.constant 8 : index
    %c0_204 = arith.constant 0 : index
    %236 = vector.load %arg23[%c8_203, %c0_204] : memref<32x320xf32, #tpu.memory_space<vmem>>, vector<8x32xf32>
    tpu.vector_store %arg23[%c8_203, %c0_204], %235 {strides = array<i32>} : memref<32x320xf32, #tpu.memory_space<vmem>>, vector<8x32xf32>,
    %237 = vector.extract_strided_slice %232 {offsets = [16, 0], sizes = [8, 32], strides = [1, 1]} : vector<32x32xf32> to vector<8x32xf32>
    %c24_205 = arith.constant 24 : index
    %c0_206 = arith.constant 0 : index
    %238 = vector.load %arg23[%c24_205, %c0_206] : memref<32x320xf32, #tpu.memory_space<vmem>>, vector<8x32xf32>
    tpu.vector_store %arg23[%c24_205, %c0_206], %237 {strides = array<i32>} : memref<32x320xf32, #tpu.memory_space<vmem>>, vector<8x32xf32>,
    %c0_207 = arith.constant 0 : index
    %c32_208 = arith.constant 32 : index
    %239 = vector.load %arg23[%c0_207, %c32_208] : memref<32x320xf32, #tpu.memory_space<vmem>>, vector<32x32xf32>
    tpu.vector_store %arg23[%c0_207, %c32_208], %232 {strides = array<i32>} : memref<32x320xf32, #tpu.memory_space<vmem>>, vector<32x32xf32>,
    %c0_209 = arith.constant 0 : index
    %c0_210 = arith.constant 0 : index
    %240 = vector.load %arg23[%c0_209, %c0_210] : memref<32x320xf32, #tpu.memory_space<vmem>>, vector<32x64xf32>
    %c0_211 = arith.constant 0 : index
    %c0_212 = arith.constant 0 : index
    %241 = vector.load %arg16[%c0_211, %c0_212] : memref<64x32xf32, #tpu.memory_space<vmem>>, vector<64x32xf32>
    %cst_213 = arith.constant dense<0.000000e+00> : vector<32x32xf32>
    %242 = tpu.matmul %240, %241, %cst_213 {dimension_numbers = #tpu.dot_dimension_numbers<[1], [0], [0], [1], [0, 0, 1, 1], [], []>} : vector<32x64xf32>, vector<64x32xf32>, vector<32x32xf32> -> vector<32x32xf32>
    %c0_214 = arith.constant 0 : index
    %c0_215 = arith.constant 0 : index
    %243 = vector.load %arg17[%c0_214, %c0_215] : memref<1x32xf32, #tpu.memory_space<vmem>>, vector<1x32xf32>
    %244 = vector.broadcast %243 : vector<1x32xf32> to vector<32x32xf32>
    %245 = arith.addf %242, %244 : vector<32x32xf32>
    %cst_216 = arith.constant 0.000000e+00 : f32
    %246 = vector.broadcast %cst_216 : f32 to vector<32x32xf32>
    %247 = arith.maximumf %245, %246 : vector<32x32xf32>
    %cst_217 = arith.constant 0.000000e+00 : f32
    %248 = vector.broadcast %cst_217 : f32 to vector<32x64xf32>
    %c0_218 = arith.constant 0 : index
    %c0_219 = arith.constant 0 : index
    %249 = vector.load %arg23[%c0_218, %c0_219] : memref<32x320xf32, #tpu.memory_space<vmem>>, vector<32x64xf32>
    tpu.vector_store %arg23[%c0_218, %c0_219], %248 {strides = array<i32>} : memref<32x320xf32, #tpu.memory_space<vmem>>, vector<32x64xf32>,
    %250 = vector.extract_strided_slice %247 {offsets = [0, 0], sizes = [8, 32], strides = [1, 1]} : vector<32x32xf32> to vector<8x32xf32>
    %c8_220 = arith.constant 8 : index
    %c0_221 = arith.constant 0 : index
    %251 = vector.load %arg23[%c8_220, %c0_221] : memref<32x320xf32, #tpu.memory_space<vmem>>, vector<8x32xf32>
    tpu.vector_store %arg23[%c8_220, %c0_221], %250 {strides = array<i32>} : memref<32x320xf32, #tpu.memory_space<vmem>>, vector<8x32xf32>,
    %252 = vector.extract_strided_slice %247 {offsets = [16, 0], sizes = [8, 32], strides = [1, 1]} : vector<32x32xf32> to vector<8x32xf32>
    %c24_222 = arith.constant 24 : index
    %c0_223 = arith.constant 0 : index
    %253 = vector.load %arg23[%c24_222, %c0_223] : memref<32x320xf32, #tpu.memory_space<vmem>>, vector<8x32xf32>
    tpu.vector_store %arg23[%c24_222, %c0_223], %252 {strides = array<i32>} : memref<32x320xf32, #tpu.memory_space<vmem>>, vector<8x32xf32>,
    %c0_224 = arith.constant 0 : index
    %c32_225 = arith.constant 32 : index
    %254 = vector.load %arg23[%c0_224, %c32_225] : memref<32x320xf32, #tpu.memory_space<vmem>>, vector<32x32xf32>
    tpu.vector_store %arg23[%c0_224, %c32_225], %247 {strides = array<i32>} : memref<32x320xf32, #tpu.memory_space<vmem>>, vector<32x32xf32>,
    %c0_226 = arith.constant 0 : index
    %c0_227 = arith.constant 0 : index
    %255 = vector.load %arg23[%c0_226, %c0_227] : memref<32x320xf32, #tpu.memory_space<vmem>>, vector<32x64xf32>
    %c0_228 = arith.constant 0 : index
    %c0_229 = arith.constant 0 : index
    %256 = vector.load %arg18[%c0_228, %c0_229] : memref<64x32xf32, #tpu.memory_space<vmem>>, vector<64x32xf32>
    %cst_230 = arith.constant dense<0.000000e+00> : vector<32x32xf32>
    %257 = tpu.matmul %255, %256, %cst_230 {dimension_numbers = #tpu.dot_dimension_numbers<[1], [0], [0], [1], [0, 0, 1, 1], [], []>} : vector<32x64xf32>, vector<64x32xf32>, vector<32x32xf32> -> vector<32x32xf32>
    %c0_231 = arith.constant 0 : index
    %c0_232 = arith.constant 0 : index
    %258 = vector.load %arg19[%c0_231, %c0_232] : memref<1x32xf32, #tpu.memory_space<vmem>>, vector<1x32xf32>
    %259 = vector.broadcast %258 : vector<1x32xf32> to vector<32x32xf32>
    %260 = arith.addf %257, %259 : vector<32x32xf32>
    %cst_233 = arith.constant 0.000000e+00 : f32
    %261 = vector.broadcast %cst_233 : f32 to vector<32x32xf32>
    %262 = arith.maximumf %260, %261 : vector<32x32xf32>
    %263 = arith.addf %262, %232 : vector<32x32xf32>
    %cst_234 = arith.constant 0.000000e+00 : f32
    %264 = vector.broadcast %cst_234 : f32 to vector<32x32xf32>
    %265 = arith.maximumf %263, %264 : vector<32x32xf32>
    %c0_235 = arith.constant 0 : index
    %c0_236 = arith.constant 0 : index
    %266 = vector.load %arg20[%c0_235, %c0_236] : memref<32x4xf32, #tpu.memory_space<vmem>>, vector<32x4xf32>
    %cst_237 = arith.constant dense<0.000000e+00> : vector<32x4xf32>
    %267 = tpu.matmul %265, %266, %cst_237 {dimension_numbers = #tpu.dot_dimension_numbers<[1], [0], [0], [1], [0, 0, 1, 1], [], []>} : vector<32x32xf32>, vector<32x4xf32>, vector<32x4xf32> -> vector<32x4xf32>
    %c0_238 = arith.constant 0 : index
    %c0_239 = arith.constant 0 : index
    %268 = vector.load %arg21[%c0_238, %c0_239] : memref<1x4xf32, #tpu.memory_space<vmem>>, vector<1x4xf32>
    %269 = vector.broadcast %268 : vector<1x4xf32> to vector<32x4xf32>
    %270 = arith.addf %267, %269 : vector<32x4xf32>
    %c0_240 = arith.constant 0 : index
    %c0_241 = arith.constant 0 : index
    %271 = vector.load %arg22[%c0_240, %c0_241] : memref<32x4xf32, #tpu.memory_space<vmem>>, vector<32x4xf32>
    tpu.vector_store %arg22[%c0_240, %c0_241], %270 {strides = array<i32>} : memref<32x4xf32, #tpu.memory_space<vmem>>, vector<32x4xf32>,
    return
  }
  func.func @transform_0(%arg0: i32) -> (i32, i32) {
    %c0_i32 = arith.constant 0 : i32
    %c0_i32_0 = arith.constant 0 : i32
    %c0_i32_1 = arith.constant 0 : i32
    return %c0_i32, %c0_i32_0 : i32, i32
  }
  func.func @transform_1(%arg0: i32) -> (i32, i32) {
    %c0_i32 = arith.constant 0 : i32
    %c0_i32_0 = arith.constant 0 : i32
    %c0_i32_1 = arith.constant 0 : i32
    return %c0_i32, %c0_i32_0 : i32, i32
  }
  func.func @transform_2(%arg0: i32) -> (i32, i32) {
    %c0_i32 = arith.constant 0 : i32
    %c0_i32_0 = arith.constant 0 : i32
    %c0_i32_1 = arith.constant 0 : i32
    return %c0_i32, %c0_i32_0 : i32, i32
  }
  func.func @transform_3(%arg0: i32) -> (i32, i32) {
    %c0_i32 = arith.constant 0 : i32
    %c0_i32_0 = arith.constant 0 : i32
    %c0_i32_1 = arith.constant 0 : i32
    return %c0_i32, %c0_i32_0 : i32, i32
  }
  func.func @transform_4(%arg0: i32) -> (i32, i32) {
    %c0_i32 = arith.constant 0 : i32
    %c0_i32_0 = arith.constant 0 : i32
    %c0_i32_1 = arith.constant 0 : i32
    return %c0_i32, %c0_i32_0 : i32, i32
  }
  func.func @transform_5(%arg0: i32) -> (i32, i32) {
    %c0_i32 = arith.constant 0 : i32
    %c0_i32_0 = arith.constant 0 : i32
    %c0_i32_1 = arith.constant 0 : i32
    return %c0_i32, %c0_i32_0 : i32, i32
  }
  func.func @transform_6(%arg0: i32) -> (i32, i32) {
    %c0_i32 = arith.constant 0 : i32
    %c0_i32_0 = arith.constant 0 : i32
    %c0_i32_1 = arith.constant 0 : i32
    return %c0_i32, %c0_i32_0 : i32, i32
  }
  func.func @transform_7(%arg0: i32) -> (i32, i32) {
    %c0_i32 = arith.constant 0 : i32
    %c0_i32_0 = arith.constant 0 : i32
    %c0_i32_1 = arith.constant 0 : i32
    return %c0_i32, %c0_i32_0 : i32, i32
  }
  func.func @transform_8(%arg0: i32) -> (i32, i32) {
    %c0_i32 = arith.constant 0 : i32
    %c0_i32_0 = arith.constant 0 : i32
    %c0_i32_1 = arith.constant 0 : i32
    return %c0_i32, %c0_i32_0 : i32, i32
  }
  func.func @transform_9(%arg0: i32) -> (i32, i32) {
    %c0_i32 = arith.constant 0 : i32
    %c0_i32_0 = arith.constant 0 : i32
    %c0_i32_1 = arith.constant 0 : i32
    return %c0_i32, %c0_i32_0 : i32, i32
  }
  func.func @transform_10(%arg0: i32) -> (i32, i32) {
    %c0_i32 = arith.constant 0 : i32
    %c0_i32_0 = arith.constant 0 : i32
    %c0_i32_1 = arith.constant 0 : i32
    return %c0_i32, %c0_i32_0 : i32, i32
  }
  func.func @transform_11(%arg0: i32) -> (i32, i32) {
    %c0_i32 = arith.constant 0 : i32
    %c0_i32_0 = arith.constant 0 : i32
    %c0_i32_1 = arith.constant 0 : i32
    return %c0_i32, %c0_i32_0 : i32, i32
  }
  func.func @transform_12(%arg0: i32) -> (i32, i32) {
    %c0_i32 = arith.constant 0 : i32
    %c0_i32_0 = arith.constant 0 : i32
    %c0_i32_1 = arith.constant 0 : i32
    return %c0_i32, %c0_i32_0 : i32, i32
  }
  func.func @transform_13(%arg0: i32) -> (i32, i32) {
    %c0_i32 = arith.constant 0 : i32
    %c0_i32_0 = arith.constant 0 : i32
    %c0_i32_1 = arith.constant 0 : i32
    return %c0_i32, %c0_i32_0 : i32, i32
  }
  func.func @transform_14(%arg0: i32) -> (i32, i32) {
    %c0_i32 = arith.constant 0 : i32
    %c0_i32_0 = arith.constant 0 : i32
    %c0_i32_1 = arith.constant 0 : i32
    return %c0_i32, %c0_i32_0 : i32, i32
  }
  func.func @transform_15(%arg0: i32) -> (i32, i32) {
    %c0_i32 = arith.constant 0 : i32
    %c0_i32_0 = arith.constant 0 : i32
    %c0_i32_1 = arith.constant 0 : i32
    return %c0_i32, %c0_i32_0 : i32, i32
  }
  func.func @transform_16(%arg0: i32) -> (i32, i32) {
    %c0_i32 = arith.constant 0 : i32
    %c0_i32_0 = arith.constant 0 : i32
    %c0_i32_1 = arith.constant 0 : i32
    return %c0_i32, %c0_i32_0 : i32, i32
  }
  func.func @transform_17(%arg0: i32) -> (i32, i32) {
    %c0_i32 = arith.constant 0 : i32
    %c0_i32_0 = arith.constant 0 : i32
    %c0_i32_1 = arith.constant 0 : i32
    return %c0_i32, %c0_i32_0 : i32, i32
  }
  func.func @transform_18(%arg0: i32) -> (i32, i32) {
    %c0_i32 = arith.constant 0 : i32
    %c0_i32_0 = arith.constant 0 : i32
    %c0_i32_1 = arith.constant 0 : i32
    return %c0_i32, %c0_i32_0 : i32, i32
  }
  func.func @transform_19(%arg0: i32) -> (i32, i32) {
    %c0_i32 = arith.constant 0 : i32
    %c0_i32_0 = arith.constant 0 : i32
    %c0_i32_1 = arith.constant 0 : i32
    return %c0_i32, %c0_i32_0 : i32, i32
  }
  func.func @transform_20(%arg0: i32) -> (i32, i32) {
    %c0_i32 = arith.constant 0 : i32
    %c0_i32_0 = arith.constant 0 : i32
    %c0_i32_1 = arith.constant 0 : i32
    return %c0_i32, %c0_i32_0 : i32, i32
  }
  func.func @transform_21(%arg0: i32) -> (i32, i32) {
    %c0_i32 = arith.constant 0 : i32
    %c0_i32_0 = arith.constant 0 : i32
    %c0_i32_1 = arith.constant 0 : i32
    return %c0_i32, %c0_i32_0 : i32, i32
  }
}

</mosaic_0001>

<bundles_post_ra>
// kernel: tcn_forward.1
= control target key start
LH: loop header
LB: loop body
LE: loop exit
PB: predicated region body
PF: predicated region fallthrough
CT: control target
= control target key end

     0   :  { %s1685_s27 = smov 32   ;;  %s1687_s28 = smov 48   ;;  %vm2972_vm0 = vcmask 1045504   ;;  %vm2970_vm1 = vcmask 1046528   ;;  %vm2974_vm2 = vcmask 1044480   ;;  %vm2973_vm3 = vcmask 1042432   ;;  %s2945_s0 = inlined_call_operand.vmem [shape: f32[32,8], index: 0, kind: input, shape index: {}]   ;;  %s2946_s1 = inlined_call_operand.vmem [shape: f32[80,32], index: 1, kind: input, shape index: {}]   ;;  %s2947_s2 = inlined_call_operand.vmem [shape: f32[1,32], index: 2, kind: input, shape index: {}]   ;;  %s2948_s3 = inlined_call_operand.vmem [shape: f32[320,32], index: 3, kind: input, shape index: {}]   ;;  %s2949_s4 = inlined_call_operand.vmem [shape: f32[1,32], index: 4, kind: input, shape index: {}]   ;;  %s2950_s5 = inlined_call_operand.vmem [shape: f32[8,32], index: 5, kind: input, shape index: {}]   ;;  %s2951_s6 = inlined_call_operand.vmem [shape: f32[1,32], index: 6, kind: input, shape index: {}]   ;;  %s2952_s7 = inlined_call_operand.vmem [shape: f32[256,32], index: 7, kind: input, shape index: {}]   ;;  %s2953_s8 = inlined_call_operand.vmem [shape: f32[1,32], index: 8, kind: input, shape index: {}]   ;;  %s2954_s9 = inlined_call_operand.vmem [shape: f32[256,32], index: 9, kind: input, shape index: {}]   ;;  %s2955_s10 = inlined_call_operand.vmem [shape: f32[1,32], index: 10, kind: input, shape index: {}]   ;;  %s2956_s12 = inlined_call_operand.vmem [shape: f32[1,32], index: 12, kind: input, shape index: {}]   ;;  %s2957_s11 = inlined_call_operand.vmem [shape: f32[128,32], index: 11, kind: input, shape index: {}]   ;;  %s2958_s13 = inlined_call_operand.vmem [shape: f32[128,32], index: 13, kind: input, shape index: {}]   ;;  %s2959_s14 = inlined_call_operand.vmem [shape: f32[1,32], index: 14, kind: input, shape index: {}]   ;;  %s2960_s15 = inlined_call_operand.vmem [shape: f32[64,32], index: 15, kind: input, shape index: {}]   ;;  %s2961_s16 = inlined_call_operand.vmem [shape: f32[1,32], index: 16, kind: input, shape index: {}]   ;;  %s2962_s18 = inlined_call_operand.vmem [shape: f32[1,32], index: 18, kind: input, shape index: {}]   ;;  %s2963_s17 = inlined_call_operand.vmem [shape: f32[64,32], index: 17, kind: input, shape index: {}]   ;;  %s2964_s19 = inlined_call_operand.vmem [shape: f32[32,4], index: 19, kind: input, shape index: {}]   ;;  %s2965_s20 = inlined_call_operand.vmem [shape: f32[1,4], index: 20, kind: input, shape index: {}]   ;;  %s2966_s21 = inlined_call_operand.vmem [shape: f32[32,4], index: 21, kind: output, shape index: {}]  }
   0x1   :  { %2977 = sst [smem:[#allocation3_spill]] %s2945_s0  ;;  %s1688_s29 = smov 40   ;;  %vm2976_vm4 = vcmask 1043456   ;;  %vm2971_vm5 = vcmask 1041408   ;;  %vm2975_vm6 = vcmask 1040384   ;;  %vm72_vm7 = vcmask 654336  }
   0x2   :  { %2978 = sst [smem:[#allocation4_spill]] %s2946_s1  ;;  %s1689_s0 = smov 24   ;;  %v1694_v46 = vmov 0.0   ;;  %vm80_vm8 = vcmask 64513   ;;  %vm106_vm9 = vcmask 195719   ;;  %vm132_vm10 = vcmask 261318  }
   0x3   :  { %2979 = sst [smem:[#allocation5_spill]] %s2947_s2  ;;  %s1691_s22 = smov 8   ;;  %73 = vst.msk [vmem:[#allocation2] sm:$0xff] %vm72_vm7, %v1694_v46  ;;  %vm157_vm11 = vcmask 326917   ;;  %vm182_vm12 = vcmask 392516   ;;  %vm207_vm13 = vcmask 458115  }
   0x4   :  { %2980 = sst [smem:[#allocation6_spill]] %s2948_s3  ;;  %s1686_s3 = smov 16   ;;  %74 = vst.msk [vmem:[#allocation2 + $0x18] sm:$0xff] %vm72_vm7, %v1694_v46  ;;  %vm232_vm14 = vcmask 523714   ;;  %vm89_vm15 = vcmask 130112  }
   0x5   :  { %2981 = sst [smem:[#allocation7_spill]] %s2949_s4  ;;  %s1690_s4 = smov 56   ;;  %75 = vst.msk [vmem:[#allocation2 + $0x30] sm:$0xff] %vm72_vm7, %v1694_v46 }
   0x6   :  { %2982 = sst [smem:[#allocation8_spill]] %s2950_s5  ;;  %s1692_s23 = smov 64   ;;  %76 = vst.msk [vmem:[#allocation2 + $0x48] sm:$0xff] %vm72_vm7, %v1694_v46 }
   0x7   :  { %s2983_s26 = sld [smem:[#allocation3_spill]]  ;;  %s1693_s1 = smov 72   ;;  %351 = vst [vmem:[#allocation2 + $0x8] sm:$0xff] %v1694_v46 }
   0x8   :  { %355 = vst [vmem:[#allocation2 + $0x20] sm:$0xff] %v1694_v46  ;;  %s2985_s2 = sld [smem:[#allocation5_spill]]  ;;  %s1695_s25 = smov 96  }
   0x9   :  { %358 = vst [vmem:[#allocation2 + $0x38] sm:$0xff] %v1694_v46  ;;  %s3002_s24 = sld [smem:[#allocation7_spill]] }
   0xa   :  { %361 = vst [vmem:[#allocation2 + $0x50] sm:$0xff] %v1694_v46 }
   0xd   :  { %v1809_v0 = vld [vmem:[%s2983_s26] sm:$0xff]  ;;  %v1829_v8 = vld [vmem:[%s2983_s26 + $0x8] sm:$0xff]  ;;  %v1859_v22 = vld [vmem:[%s2983_s26 + $0x10] sm:$0xff] }
   0xe   :  { %v148_v1 = vrot.slane %v1809_v0, 3  ;;  %v97_v2 = vrot.slane %v1809_v0, 1  ;;  %v198_v3 = vrot.slane %v1809_v0, 5  ;;  %v173_v4 = vrot.slane %v1809_v0, 4  ;;  %v1882_v31 = vld [vmem:[%s2983_s26 + $0x18] sm:$0xff] }
   0xf   :  { %v123_v5 = vrot.slane %v1809_v0, 2  ;;  %v223_v6 = vrot.slane %v1809_v0, 6  ;;  %v1824_v7 = vrot.slane %v1809_v0, 7  ;;  %v124_v9 = vrot.slane %v1829_v8, 2 }
  0x10   :  { %151 = vrot.lane.b32.xlu1 %v148_v1, %s1685_s27  ;;  %100 = vrot.lane.b32.xlu0 %v97_v2, %s1686_s3  ;;  %v98_v10 = vrot.slane %v1829_v8, 1  ;;  %v149_v11 = vrot.slane %v1829_v8, 3  ;;  %v199_v15 = vrot.slane %v1829_v8, 5  ;;  %v174_v16 = vrot.slane %v1829_v8, 4 }
  0x11   :  { %201 = vrot.lane.b32.xlu2 %v198_v3, %s1687_s28  ;;  %v125_v12 = vsel %vm2972_vm0, %v123_v5, %v124_v9  ;;  %v224_v17 = vrot.slane %v1829_v8, 6  ;;  %v248_v21 = vrot.slane %v1829_v8, 7  ;;  %v111_v24 = vrot.slane %v1859_v22, 1  ;;  %81 = vst.msk [vmem:[#allocation2 + $0x18] sm:$0xfe] %vm80_vm8, %v1824_v7 }
  0x12   :  { %v99_v13 = vsel %vm2970_vm1, %v97_v2, %v98_v10  ;;  %v150_v14 = vsel %vm2974_vm2, %v148_v1, %v149_v11  ;;  %v200_v18 = vsel %vm2973_vm3, %v198_v3, %v199_v15  ;;  %v175_v19 = vsel %vm2976_vm4, %v173_v4, %v174_v16 }
  0x13   :  { %v225_v20 = vsel %vm2971_vm5, %v223_v6, %v224_v17  ;;  %v249_v23 = vsel %vm2975_vm6, %v1824_v7, %v248_v21  ;;  %v161_v25 = vrot.slane %v1859_v22, 3  ;;  %v136_v26 = vrot.slane %v1859_v22, 2 }
  0x14   :  { %v186_v27 = vrot.slane %v1859_v22, 4  ;;  %v236_v28 = vrot.slane %v1859_v22, 6  ;;  %v211_v29 = vrot.slane %v1859_v22, 5  ;;  %v83_v30 = vrot.slane %v1859_v22, 7 }
  0x15   :  { %v112_v32 = vrot.slane %v1882_v31, 1  ;;  %v137_v34 = vrot.slane %v1882_v31, 2  ;;  %v162_v35 = vrot.slane %v1882_v31, 3  ;;  %v187_v36 = vrot.slane %v1882_v31, 4 }
  0x16   :  { %v212_v40 = vrot.slane %v1882_v31, 5  ;;  %v237_v41 = vrot.slane %v1882_v31, 6  ;;  %v260_v42 = vrot.slane %v1882_v31, 7  ;;  %85 = vst.msk [vmem:[#allocation2 + $0x48] sm:$0xfe] %vm80_vm8, %v83_v30  ;;  %vm256_vm8 = vcmask 589313  }
  0x17   :  { %v113_v33 = vsel %vm2970_vm1, %v111_v24, %v112_v32  ;;  %v138_v37 = vsel %vm2972_vm0, %v136_v26, %v137_v34  ;;  %v163_v38 = vsel %vm2974_vm2, %v161_v25, %v162_v35  ;;  %v188_v39 = vsel %vm2976_vm4, %v186_v27, %v187_v36  ;;  %v2008_v35 = vld [vmem:[%s2985_s2] ss:$0 sm:$0xff] }
  0x18   :  { %176 = vrot.lane.b32.xlu1 %v173_v4, %s1688_s29  ;;  %126 = vrot.lane.b32.xlu0 %v123_v5, %s1689_s0  ;;  %v213_v43 = vsel %vm2973_vm3, %v211_v29, %v212_v40  ;;  %v238_v44 = vsel %vm2971_vm5, %v236_v28, %v237_v41  ;;  %v261_v45 = vsel %vm2975_vm6, %v83_v30, %v260_v42  ;;  %vm282_vm1 = vcmask 654912  }
  0x19   :  { %226 = vrot.lane.b32.xlu2 %v223_v6, %s1690_s4  ;;  %vm108_vm5 = vcmask 195712   ;;  %vm134_vm0 = vcmask 261312   ;;  %vm159_vm3 = vcmask 326912   ;;  %vm184_vm2 = vcmask 392512  }
  0x1a   :  { %vm209_vm6 = vcmask 458112   ;;  %vm258_vm4 = vcmask 589312  }
  0x20   :  { %86 = vrot.lane.b32.xlu1 %v1809_v0, %s1691_s22  ;;  %250 = vrot.lane.b32.xlu0 %v1824_v7, %s1692_s23 }
  0x21   :  { %270 = vrot.lane.b32.xlu2 %v1809_v0, %s1693_s1 }
  0x28   :  { %128 = vrot.lane.b32.xlu1 %v125_v12, %s1689_s0  ;;  %102 = vrot.lane.b32.xlu0 %v99_v13, %s1686_s3 }
  0x29   :  { %153 = vrot.lane.b32.xlu2 %v150_v14, %s1685_s27 }
  0x30   :  { %203 = vrot.lane.b32.xlu1 %v200_v18, %s1687_s28  ;;  %178 = vrot.lane.b32.xlu0 %v175_v19, %s1688_s29 }
  0x31   :  { %228 = vrot.lane.b32.xlu2 %v225_v20, %s1690_s4 }
  0x38   :  { %272 = vrot.lane.b32.xlu1 %v1829_v8, %s1693_s1  ;;  %252 = vrot.lane.b32.xlu0 %v249_v23, %s1692_s23 }
  0x39   :  { %114 = vrot.lane.b32.xlu2 %v111_v24, %s1686_s3 }
  0x40   :  { %164 = vrot.lane.b32.xlu1 %v161_v25, %s1685_s27  ;;  %139 = vrot.lane.b32.xlu0 %v136_v26, %s1689_s0 }
  0x41   :  { %189 = vrot.lane.b32.xlu2 %v186_v27, %s1688_s29 }
  0x48   :  { %239 = vrot.lane.b32.xlu1 %v236_v28, %s1690_s4  ;;  %214 = vrot.lane.b32.xlu0 %v211_v29, %s1687_s28 }
  0x49   :  { %262 = vrot.lane.b32.xlu2 %v83_v30, %s1692_s23 }
  0x50   :  { %274 = vrot.lane.b32.xlu1 %v1859_v22, %s1693_s1  ;;  %91 = vrot.lane.b32.xlu0 %v1859_v22, %s1691_s22 }
  0x51   :  { %116 = vrot.lane.b32.xlu2 %v113_v33, %s1686_s3  ;;  %s2992_s3 = sld [smem:[#allocation6_spill]] }
  0x58   :  { %141 = vrot.lane.b32.xlu0 %v138_v37, %s1689_s0  ;;  %166 = vrot.lane.b32.xlu1 %v163_v38, %s1685_s27 }
  0x59   :  { %191 = vrot.lane.b32.xlu2 %v188_v39, %s1688_s29  ;;  %s2984_s29 = sld [smem:[#allocation4_spill]] }
  0x5f   :  { %v300_v47 = vld [vmem:[%s2984_s29 + $0x48] sm:$0xff]  ;;  %v299_v48 = vld [vmem:[%s2984_s29 + $0x40] sm:$0xff]  ;;  %v298_v50 = vld [vmem:[%s2984_s29 + $0x38] sm:$0xff] }
  0x60   :  { %216 = vrot.lane.b32.xlu0 %v213_v43, %s1687_s28  ;;  %241 = vrot.lane.b32.xlu1 %v238_v44, %s1690_s4  ;;  %v297_v51 = vld [vmem:[%s2984_s29 + $0x30] sm:$0xff]  ;;  %v296_v52 = vld [vmem:[%s2984_s29 + $0x28] sm:$0xff]  ;;  %s3001_s4 = sld [smem:[#allocation8_spill]] }
  0x61   :  { %264 = vrot.lane.b32.xlu2 %v261_v45, %s1692_s23  ;;  %323 = vmatpush.msra.mxu0 %v300_v47  ;;  %v295_v54 = vld [vmem:[%s2984_s29 + $0x20] sm:$0xff]  ;;  %v294_v55 = vld [vmem:[%s2984_s29 + $0x18] sm:$0xff]  ;;  %v293_v56 = vld [vmem:[%s2984_s29 + $0x10] sm:$0xff] }
  0x62   :  { %v292_v57 = vld [vmem:[%s2984_s29 + $0x8] sm:$0xff]  ;;  %v291_v59 = vld [vmem:[%s2984_s29] sm:$0xff] }
  0x63   :  { %324 = vmatpush.msra.mxu0 %v299_v48 }
  0x65   :  { %325 = vmatpush.msra.mxu0 %v298_v50 }
  0x67   :  { %326 = vmatpush.msra.mxu0 %v297_v51 }
  0x68   :  { %276 = vrot.lane.b32.xlu0 %v1882_v31, %s1693_s1 }
  0x69   :  { %327 = vmatpush.msra.mxu0 %v296_v52 }
  0x6b   :  { %v202_v49 = vpop.permute.xlu2 %201  ;;  %328 = vmatpush.msra.mxu0 %v295_v54 }
  0x6d   :  { %329 = vmatpush.msra.mxu0 %v294_v55 }
  0x6f   :  { %330 = vmatpush.msra.mxu0 %v293_v56 }
  0x71   :  { %331 = vmatpush.msra.mxu0 %v292_v57 }
  0x73   :  { %v227_v53 = vpop.permute.xlu2 %226  ;;  %332 = vmatpush.msra.mxu0 %v291_v59 }
  0x7b   :  { %v271_v58 = vpop.permute.xlu2 %270 }
  0x82   :  { %v152_v60 = vpop.permute.xlu1 %151  ;;  %v101_v61 = vpop.permute.xlu0 %100 }
  0x83   :  { %107 = vst.msk [vmem:[#allocation2] sm:$0x80] %vm106_vm9, %v101_v61  ;;  %v154_v62 = vpop.permute.xlu2 %153 }
  0x8a   :  { %v177_v63 = vpop.permute.xlu1 %176  ;;  %v127_v1 = vpop.permute.xlu0 %126 }
  0x8b   :  { %133 = vst.msk [vmem:[#allocation2] sm:$0xc0] %vm132_vm10, %v127_v1  ;;  %v229_v2 = vpop.permute.xlu2 %228 }
  0x8c   :  { %158 = vst.msk [vmem:[#allocation2] sm:$0xe0] %vm157_vm11, %v152_v60 }
  0x8d   :  { %183 = vst.msk [vmem:[#allocation2] sm:$0xf0] %vm182_vm12, %v177_v63 }
  0x8e   :  { %208 = vst.msk [vmem:[#allocation2] sm:$0xf8] %vm207_vm13, %v202_v49 }
  0x8f   :  { %233 = vst.msk [vmem:[#allocation2] sm:$0xfc] %vm232_vm14, %v227_v53 }
  0x92   :  { %v87_v3 = vpop.permute.xlu1 %86  ;;  %v251_v4 = vpop.permute.xlu0 %250 }
  0x93   :  { %90 = vst.msk [vmem:[#allocation2 + $0x18] sm:$0xff] %vm89_vm15, %v87_v3  ;;  %v115_v5 = vpop.permute.xlu2 %114 }
  0x94   :  { %257 = vst.msk [vmem:[#allocation2] sm:$0xfe] %vm256_vm8, %v251_v4 }
  0x95   :  { %283 = vst.msk [vmem:[#allocation2] sm:$0xff] %vm282_vm1, %v271_v58 }
  0x96   :  { %120 = vst.msk [vmem:[#allocation2 + $0x30] sm:$0x80] %vm106_vm9, %v115_v5  ;;  %vm234_vm9 = vcmask 523712  }
  0x9a   :  { %v129_v6 = vpop.permute.xlu1 %128  ;;  %v103_v7 = vpop.permute.xlu0 %102 }
  0x9b   :  { %109 = vst.msk [vmem:[#allocation2 + $0x18] sm:$0xff] %vm108_vm5, %v103_v7  ;;  %v190_v12 = vpop.permute.xlu2 %189  ;;  %v563_v7 = vld [vmem:[%s2992_s3 + $0x78] sm:$0xff] }
  0x9c   :  { %v287_v9 = vld [vmem:[#allocation2] sm:$0xff]  ;;  %135 = vst.msk [vmem:[#allocation2 + $0x18] sm:$0xff] %vm134_vm0, %v129_v6  ;;  %v579_v6 = vld [vmem:[%s2992_s3 + $0xf8] sm:$0xff]  ;;  %604 = vmatpush.msra.mxu1 %v563_v7  ;;  %v549_v7 = vld [vmem:[%s2992_s3 + $0x8] sm:$0xff] }
  0x9d   :  { %1636 = vmatmul.msk.f32.vlgmr.msra.gmra.mxu0 %vm72_vm7, %v287_v9  ;;  %350 = vst [vmem:[#allocation2] sm:$0xff] %v1694_v46  ;;  %v578_v9 = vld [vmem:[%s2992_s3 + $0xf0] sm:$0xff]  ;;  %633 = vmatpush.msra.mxu2 %v579_v6  ;;  %v565_v6 = vld [vmem:[%s2992_s3 + $0x88] sm:$0xff] }
  0x9e   :  { %160 = vst.msk [vmem:[#allocation2 + $0x18] sm:$0xff] %vm159_vm3, %v154_v62 }
  0x9f   :  { %634 = vmatpush.msra.mxu2 %v578_v9 }
  0xa2   :  { %v204_v10 = vpop.permute.xlu1 %203  ;;  %v179_v11 = vpop.permute.xlu0 %178 }
  0xa3   :  { %185 = vst.msk [vmem:[#allocation2 + $0x18] sm:$0xff] %vm184_vm2, %v179_v11  ;;  %v263_v18 = vpop.permute.xlu2 %262 }
  0xa4   :  { %210 = vst.msk [vmem:[#allocation2 + $0x18] sm:$0xff] %vm209_vm6, %v204_v10 }
  0xa5   :  { %235 = vst.msk [vmem:[#allocation2 + $0x18] sm:$0xff] %vm234_vm9, %v229_v2 }
  0xaa   :  { %v273_v13 = vpop.permute.xlu1 %272  ;;  %v253_v14 = vpop.permute.xlu0 %252 }
  0xab   :  { %259 = vst.msk [vmem:[#allocation2 + $0x18] sm:$0xff] %vm258_vm4, %v253_v14  ;;  %v117_v21 = vpop.permute.xlu2 %116 }
  0xac   :  { %284 = vst.msk [vmem:[#allocation2 + $0x18] sm:$0xff] %vm282_vm1, %v273_v13 }
  0xb2   :  { %v165_v15 = vpop.permute.xlu1 %164  ;;  %v140_v16 = vpop.permute.xlu0 %139 }
  0xb3   :  { %145 = vst.msk [vmem:[#allocation2 + $0x30] sm:$0xc0] %vm132_vm10, %v140_v16  ;;  %v288_v17 = vld [vmem:[#allocation2 + $0x18] sm:$0xff]  ;;  %v192_v25 = vpop.permute.xlu2 %191  ;;  %vm2990_vm10 = vcmask 1045504   ;;  %v577_v16 = vld [vmem:[%s2992_s3 + $0xe8] sm:$0xff] }
  0xb4   :  { %170 = vst.msk [vmem:[#allocation2 + $0x30] sm:$0xe0] %vm157_vm11, %v165_v15  ;;  %1637 = vmatmul.msk.f32.gmra.mxu0 %vm72_vm7, %v288_v17  ;;  %vm2991_vm11 = vcmask 1041408   ;;  %v562_v15 = vld [vmem:[%s2992_s3 + $0x70] sm:$0xff]  ;;  %635 = vmatpush.msra.mxu2 %v577_v16  ;;  %v561_v17 = vld [vmem:[%s2992_s3 + $0x68] sm:$0xff] }
  0xb5   :  { %354 = vst [vmem:[#allocation2 + $0x18] sm:$0xff] %v1694_v46  ;;  %605 = vmatpush.msra.mxu1 %v562_v15 }
  0xb6   :  { %195 = vst.msk [vmem:[#allocation2 + $0x30] sm:$0xf0] %vm182_vm12, %v190_v12 }
  0xb7   :  { %606 = vmatpush.msra.mxu1 %v561_v17 }
  0xba   :  { %v240_v19 = vpop.permute.xlu1 %239  ;;  %v215_v20 = vpop.permute.xlu0 %214 }
  0xbb   :  { %220 = vst.msk [vmem:[#allocation2 + $0x30] sm:$0xf8] %vm207_vm13, %v215_v20  ;;  %v265_v29 = vpop.permute.xlu2 %264 }
  0xbc   :  { %245 = vst.msk [vmem:[#allocation2 + $0x30] sm:$0xfc] %vm232_vm14, %v240_v19 }
  0xbd   :  { %268 = vst.msk [vmem:[#allocation2 + $0x30] sm:$0xfe] %vm256_vm8, %v263_v18  ;;  %v576_v18 = vld [vmem:[%s2992_s3 + $0xe0] sm:$0xff]  ;;  %vm2997_vm8 = vcmask 1046528  }
  0xbe   :  { %636 = vmatpush.msra.mxu2 %v576_v18 }
  0xc2   :  { %v275_v23 = vpop.permute.xlu1 %274  ;;  %v92_v24 = vpop.permute.xlu0 %91 }
  0xc3   :  { %285 = vst.msk [vmem:[#allocation2 + $0x30] sm:$0xff] %vm282_vm1, %v275_v23  ;;  %v587_v23 = vld [vmem:[%s2992_s3 + $0x138] sm:$0xff] }
  0xc4   :  { %94 = vst.msk [vmem:[#allocation2 + $0x48] sm:$0xff] %vm89_vm15, %v92_v24  ;;  %670 = vmatpush.msra.mxu3 %v587_v23 }
  0xc5   :  { %121 = vst.msk [vmem:[#allocation2 + $0x48] sm:$0xff] %vm108_vm5, %v117_v21  ;;  %vm2987_vm5 = vcmask 1040384   ;;  %v560_v21 = vld [vmem:[%s2992_s3 + $0x60] sm:$0xff] }
  0xc6   :  { %607 = vmatpush.msra.mxu1 %v560_v21  ;;  %vm2995_vm14 = vmmov %vm2987_vm5 }
  0xca   :  { %v142_v26 = vpop.permute.xlu0 %141  ;;  %v289_v27 = vld [vmem:[#allocation2 + $0x30] sm:$0xff]  ;;  %v167_v28 = vpop.permute.xlu1 %166 }
  0xcb   :  { %146 = vst.msk [vmem:[#allocation2 + $0x48] sm:$0xff] %vm134_vm0, %v142_v26  ;;  %1638 = vmatmul.msk.f32.gmra.mxu0 %vm72_vm7, %v289_v27  ;;  %vm352_vm0 = vcmask 523264   ;;  %v575_v26 = vld [vmem:[%s2992_s3 + $0xd8] sm:$0xff]  ;;  %v586_v27 = vld [vmem:[%s2992_s3 + $0x130] sm:$0xff] }
  0xcc   :  { %357 = vst [vmem:[#allocation2 + $0x30] sm:$0xff] %v1694_v46  ;;  %637 = vmatpush.msra.mxu2 %v575_v26  ;;  %671 = vmatpush.msra.mxu3 %v586_v27 }
  0xcd   :  { %171 = vst.msk [vmem:[#allocation2 + $0x48] sm:$0xff] %vm159_vm3, %v167_v28  ;;  %vm438_vm3 = vcmask 261120  }
  0xce   :  { %196 = vst.msk [vmem:[#allocation2 + $0x48] sm:$0xff] %vm184_vm2, %v192_v25  ;;  %vm366_vm2 = vcmask 261121  }
  0xcf   :  { %353 = vst.msk [vmem:[#allocation2 + $0x10] sm:$0xff] %vm352_vm0, %v1694_v46 }
  0xd0   :  { %356 = vst.msk [vmem:[#allocation2 + $0x28] sm:$0xff] %vm352_vm0, %v1694_v46 }
  0xd1   :  { %359 = vst.msk [vmem:[#allocation2 + $0x40] sm:$0xff] %vm352_vm0, %v1694_v46 }
  0xd2   :  { %v217_v30 = vpop.permute.xlu0 %216  ;;  %v242_v32 = vpop.permute.xlu1 %241  ;;  %362 = vst.msk [vmem:[#allocation2 + $0x58] sm:$0xff] %vm352_vm0, %v1694_v46 }
  0xd3   :  { %221 = vst.msk [vmem:[#allocation2 + $0x48] sm:$0xff] %vm209_vm6, %v217_v30  ;;  %vm2988_vm6 = vcmask 1044480   ;;  %v559_v30 = vld [vmem:[%s2992_s3 + $0x58] sm:$0xff] }
  0xd4   :  { %246 = vst.msk [vmem:[#allocation2 + $0x48] sm:$0xff] %vm234_vm9, %v242_v32  ;;  %vm2994_vm13 = vmmov %vm2988_vm6  ;;  %608 = vmatpush.msra.mxu1 %v559_v30 }
  0xd5   :  { %269 = vst.msk [vmem:[#allocation2 + $0x48] sm:$0xff] %vm258_vm4, %v265_v29  ;;  %vm2986_vm4 = vcmask 1043456   ;;  %vm2998_vm9 = vmmov %vm2997_vm8 }
  0xd6   :  { %vm2993_vm12 = vmmov %vm2986_vm4 }
  0xda   :  { %v277_v33 = vpop.permute.xlu0 %276 }
  0xdb   :  { %286 = vst.msk [vmem:[#allocation2 + $0x48] sm:$0xff] %vm282_vm1, %v277_v33  ;;  %vm436_vm1 = vcmask 261125  }
  0xe2   :  { %v290_v34 = vld [vmem:[#allocation2 + $0x48] sm:$0xff] }
  0xe3   :  { %1639 = vmatmul.msk.f32.gmra.mxu0 %vm72_vm7, %v290_v34  ;;  %360 = vst [vmem:[#allocation2 + $0x48] sm:$0xff] %v1694_v46  ;;  %vm2989_vm7 = vcmask 1042432  }
  0xe4   :  { %vm2996_vm15 = vmmov %vm2989_vm7 }
 0x11a   :  { %v334_v36 = vpop.f32.mrf.mxu0 }
 0x11b   :  { %v335_v37 = vadd.f32 %v2008_v35, %v334_v36  ;;  %v558_v36 = vld [vmem:[%s2992_s3 + $0x50] sm:$0xff] }
 0x11c   :  { %609 = vmatpush.msra.mxu1 %v558_v36 }
 0x11d   :  { %v2011_v38 = vmax.f32 %v335_v37, 0.0 }
 0x11f   :  { %372 = vrot.lane.b32.xlu1 %v2011_v38, %s1685_s27  ;;  %v470_v39 = vrot.slane %v2011_v38, 5  ;;  %v447_v40 = vrot.slane %v2011_v38, 4  ;;  %v431_v41 = vrot.slane %v2011_v38, 3  ;;  %v364_v42 = vrot.slane %v2011_v38, 7 }
 0x120   :  { %v493_v43 = vrot.slane %v2011_v38, 6  ;;  %v407_v44 = vrot.slane %v2011_v38, 2  ;;  %v382_v55 = vrot.slane %v2011_v38, 1  ;;  %v557_v38 = vld [vmem:[%s2992_s3 + $0x48] sm:$0xff] }
 0x121   :  { %473 = vrot.lane.b32.xlu0 %v470_v39, %s1692_s23  ;;  %450 = vrot.lane.b32.xlu2 %v447_v40, %s1685_s27  ;;  %437 = vst.msk [vmem:[#allocation2 + $0x8] sm:$0xe0] %vm436_vm1, %v431_v41 }
 0x122   :  { %367 = vst.msk [vmem:[#allocation2 + $0x18] sm:$0xfe] %vm366_vm2, %v364_v42  ;;  %610 = vmatpush.msra.mxu1 %v557_v38 }
 0x123   :  { %519 = vst.msk [vmem:[#allocation2 + $0x10] sm:$0xfe] %vm366_vm2, %v364_v42 }
 0x127   :  { %496 = vrot.lane.b32.xlu1 %v493_v43, %s1695_s25 }
 0x129   :  { %410 = vrot.lane.b32.xlu0 %v407_v44, %s1695_s25 }
 0x131   :  { %v337_v45 = vpop.f32.mrf.mxu0 }
 0x132   :  { %v338_v47 = vadd.f32 %v2008_v35, %v337_v45 }
 0x134   :  { %v2029_v48 = vmax.f32 %v338_v47, 0.0 }
 0x136   :  { %526 = vrot.lane.b32.xlu2 %v2029_v48, %s1685_s27  ;;  %v448_v49 = vrot.slane %v2029_v48, 4  ;;  %v516_v50 = vrot.slane %v2029_v48, 7  ;;  %v432_v51 = vrot.slane %v2029_v48, 3  ;;  %v471_v56 = vrot.slane %v2029_v48, 5 }
 0x137   :  { %v408_v60 = vrot.slane %v2029_v48, 2  ;;  %v494_v2 = vrot.slane %v2029_v48, 6  ;;  %v383_v25 = vrot.slane %v2029_v48, 1  ;;  %v556_v48 = vld [vmem:[%s2992_s3 + $0x40] sm:$0xff] }
 0x138   :  { %v449_v52 = vsel %vm2986_vm4, %v447_v40, %v448_v49  ;;  %v517_v53 = vsel %vm2987_vm5, %v364_v42, %v516_v50  ;;  %v433_v54 = vsel %vm2988_vm6, %v431_v41, %v432_v51  ;;  %v472_v57 = vsel %vm2989_vm7, %v470_v39, %v471_v56  ;;  %v585_v40 = vld [vmem:[%s2992_s3 + $0x128] sm:$0xff]  ;;  %v584_v42 = vld [vmem:[%s2992_s3 + $0x120] sm:$0xff]  ;;  %v571_v49 = vld [vmem:[%s2992_s3 + $0xb8] sm:$0xff]  ;;  %611 = vmatpush.msra.mxu1 %v556_v48 }
 0x139   :  { %452 = vrot.lane.b32.xlu1 %v449_v52, %s1685_s27  ;;  %520 = vst.msk [vmem:[#allocation2 + $0x28] sm:$0xff] %vm438_vm3, %v517_v53  ;;  %v409_v62 = vsel %vm2990_vm10, %v407_v44, %v408_v60  ;;  %v495_v4 = vsel %vm2991_vm11, %v493_v43, %v494_v2  ;;  %v384_v39 = vsel %vm2997_vm8, %v382_v55, %v383_v25  ;;  %v573_v41 = vld [vmem:[%s2992_s3 + $0xc8] sm:$0xff]  ;;  %v572_v44 = vld [vmem:[%s2992_s3 + $0xc0] sm:$0xff]  ;;  %v583_v50 = vld [vmem:[%s2992_s3 + $0x118] sm:$0xff]  ;;  %vm375_vm5 = vcmask 523520  }
 0x13a   :  { %439 = vst.msk [vmem:[#allocation2 + $0x20] sm:$0xff] %vm438_vm3, %v433_v54  ;;  %672 = vmatpush.msra.mxu3 %v585_v40  ;;  %v555_v52 = vld [vmem:[%s2992_s3 + $0x38] sm:$0xff]  ;;  %v570_v53 = vld [vmem:[%s2992_s3 + $0xb0] sm:$0xff]  ;;  %v569_v56 = vld [vmem:[%s2992_s3 + $0xa8] sm:$0xff]  ;;  %vm479_vm6 = vcmask 785923   ;;  %vm391_vm7 = vcmask 785927  }
 0x13b   :  { %v582_v54 = vld [vmem:[%s2992_s3 + $0x110] sm:$0xff]  ;;  %612 = vmatpush.msra.mxu1 %v555_v52  ;;  %v580_v60 = vld [vmem:[%s2992_s3 + $0x100] sm:$0xff]  ;;  %v551_v2 = vld [vmem:[%s2992_s3 + $0x18] sm:$0xff] }
 0x13c   :  { %673 = vmatpush.msra.mxu3 %v584_v42  ;;  %vm3000_vm4 = vmmov %vm2991_vm11  ;;  %vm416_vm11 = vcmask 1048326  }
 0x13d   :  { %vm3003_vm8 = vmmov %vm3000_vm4 }
 0x13e   :  { %385 = vrot.lane.b32.xlu2 %v382_v55, %s1692_s23  ;;  %v554_v55 = vld [vmem:[%s2992_s3 + $0x30] sm:$0xff]  ;;  %674 = vmatpush.msra.mxu3 %v583_v50 }
 0x13f   :  { %613 = vmatpush.msra.mxu1 %v554_v55 }
 0x140   :  { %675 = vmatpush.msra.mxu3 %v582_v54 }
 0x146   :  { %475 = vrot.lane.b32.xlu2 %v472_v57, %s1692_s23  ;;  %v581_v57 = vld [vmem:[%s2992_s3 + $0x108] sm:$0xff] }
 0x147   :  { %676 = vmatpush.msra.mxu3 %v581_v57 }
 0x148   :  { %v340_v58 = vpop.f32.mrf.mxu0 }
 0x149   :  { %v341_v59 = vadd.f32 %v2008_v35, %v340_v58  ;;  %v553_v58 = vld [vmem:[%s2992_s3 + $0x28] sm:$0xff]  ;;  %677 = vmatpush.msra.mxu3 %v580_v60 }
 0x14a   :  { %614 = vmatpush.msra.mxu1 %v553_v58 }
 0x14b   :  { %v2051_v61 = vmax.f32 %v341_v59, 0.0  ;;  %v568_v59 = vld [vmem:[%s2992_s3 + $0xa0] sm:$0xff] }
 0x14d   :  { %377 = vrot.lane.b32.xlu0 %v2051_v61, %s1685_s27  ;;  %v369_v63 = vrot.slane %v2051_v61, 7  ;;  %v440_v1 = vrot.slane %v2051_v61, 3  ;;  %v505_v3 = vrot.slane %v2051_v61, 6  ;;  %v459_v5 = vrot.slane %v2051_v61, 4 }
 0x14e   :  { %412 = vrot.lane.b32.xlu2 %v409_v62, %s1695_s25  ;;  %v396_v13 = vrot.slane %v2051_v61, 1  ;;  %v482_v32 = vrot.slane %v2051_v61, 5  ;;  %v420_v47 = vrot.slane %v2051_v61, 2 }
 0x14f   :  { %371 = vst.msk [vmem:[#allocation2 + $0x48] sm:$0xfe] %vm366_vm2, %v369_v63 }
 0x150   :  { %524 = vst.msk [vmem:[#allocation2 + $0x40] sm:$0xfe] %vm366_vm2, %v369_v63  ;;  %vm456_vm2 = vcmask 523524  }
 0x151   :  { %445 = vst.msk [vmem:[#allocation2 + $0x38] sm:$0xe0] %vm436_vm1, %v440_v1  ;;  %vm2999_vm1 = vmmov %vm2990_vm10  ;;  %vm502_vm10 = vcmask 1048322  }
 0x155   :  { %498 = vrot.lane.b32.xlu0 %v495_v4, %s1695_s25  ;;  %v566_v4 = vld [vmem:[%s2992_s3 + $0x90] sm:$0xff] }
 0x156   :  { %508 = vrot.lane.b32.xlu2 %v505_v3, %s1695_s25 }
 0x15d   :  { %462 = vrot.lane.b32.xlu0 %v459_v5, %s1685_s27 }
 0x160   :  { %v343_v10 = vpop.f32.mrf.mxu0 }
 0x161   :  { %v344_v11 = vadd.f32 %v2008_v35, %v343_v10  ;;  %v574_v35 = vld [vmem:[%s2992_s3 + $0xd0] sm:$0xff]  ;;  %v564_v10 = vld [vmem:[%s2992_s3 + $0x80] sm:$0xff] }
 0x162   :  { %638 = vmatpush.msra.mxu2 %v574_v35 }
 0x163   :  { %v2081_v12 = vmax.f32 %v344_v11, 0.0  ;;  %v548_v11 = vld [vmem:[%s2992_s3] sm:$0xff] }
 0x164   :  { %639 = vmatpush.msra.mxu2 %v573_v41 }
 0x165   :  { %399 = vrot.lane.b32.xlu0 %v396_v13, %s1692_s23  ;;  %528 = vrot.lane.b32.xlu1 %v2081_v12, %s1685_s27  ;;  %v460_v14 = vrot.slane %v2081_v12, 4  ;;  %v441_v19 = vrot.slane %v2081_v12, 3  ;;  %v483_v24 = vrot.slane %v2081_v12, 5  ;;  %v521_v29 = vrot.slane %v2081_v12, 7 }
 0x166   :  { %v397_v34 = vrot.slane %v2081_v12, 1  ;;  %v421_v45 = vrot.slane %v2081_v12, 2  ;;  %640 = vmatpush.msra.mxu2 %v572_v44  ;;  %v506_v9 = vrot.slane %v2081_v12, 6 }
 0x167   :  { %v461_v20 = vsel %vm2993_vm12, %v459_v5, %v460_v14  ;;  %v442_v28 = vsel %vm2994_vm13, %v440_v1, %v441_v19  ;;  %v522_v33 = vsel %vm2995_vm14, %v369_v63, %v521_v29  ;;  %v484_v37 = vsel %vm2996_vm15, %v482_v32, %v483_v24  ;;  %v552_v63 = vld [vmem:[%s2992_s3 + $0x20] sm:$0xff]  ;;  %v567_v1 = vld [vmem:[%s2992_s3 + $0x98] sm:$0xff]  ;;  %v550_v5 = vld [vmem:[%s2992_s3 + $0x10] sm:$0xff] }
 0x168   :  { %464 = vrot.lane.b32.xlu2 %v461_v20, %s1685_s27  ;;  %446 = vst.msk [vmem:[#allocation2 + $0x50] sm:$0xff] %vm438_vm3, %v442_v28  ;;  %v398_v43 = vsel %vm2998_vm9, %v396_v13, %v397_v34  ;;  %v422_v51 = vsel %vm2999_vm1, %v420_v47, %v421_v45  ;;  %641 = vmatpush.msra.mxu2 %v571_v49  ;;  %vm393_vm12 = vcmask 785920   ;;  %v695_v24 = vld [vmem:[%s3001_s4] sm:$0xff]  ;;  %vm418_vm13 = vcmask 1048320  }
 0x169   :  { %525 = vst.msk [vmem:[#allocation2 + $0x58] sm:$0xff] %vm438_vm3, %v522_v33  ;;  %615 = vmatpush.msra.mxu1 %v552_v63  ;;  %v507_v13 = vsel %vm3000_vm4, %v505_v3, %v506_v9  ;;  %724 = vmatpush.msrb.mxu3 %v695_v24  ;;  %vm700_vm14 = vcmask 64512   ;;  %vm757_vm15 = vcmask 261126   ;;  %vm3004_vm9 = vcmask 1043456  }
 0x16a   :  { %642 = vmatpush.msra.mxu2 %v570_v53 }
 0x16b   :  { %616 = vmatpush.msra.mxu1 %v551_v2 }
 0x16c   :  { %643 = vmatpush.msra.mxu2 %v569_v56 }
 0x16d   :  { %487 = vrot.lane.b32.xlu0 %v484_v37, %s1692_s23  ;;  %387 = vrot.lane.b32.xlu1 %v384_v39, %s1692_s23 }
 0x16e   :  { %644 = vmatpush.msra.mxu2 %v568_v59  ;;  %617 = vmatpush.msra.mxu1 %v550_v5 }
 0x170   :  { %401 = vrot.lane.b32.xlu2 %v398_v43, %s1692_s23  ;;  %645 = vmatpush.msra.mxu2 %v567_v1 }
 0x171   :  { %618 = vmatpush.msra.mxu1 %v549_v7  ;;  %v864_v7 = vld [vmem:[%s2952_s7 + $0x70] sm:$0xff] }
 0x172   :  { %646 = vmatpush.msra.mxu2 %v566_v4 }
 0x173   :  { %619 = vmatpush.msra.mxu1 %v548_v11  ;;  %v863_v11 = vld [vmem:[%s2952_s7 + $0x68] sm:$0xff] }
 0x174   :  { %647 = vmatpush.msra.mxu2 %v565_v6  ;;  %v865_v6 = vld [vmem:[%s2952_s7 + $0x78] sm:$0xff] }
 0x175   :  { %425 = vrot.lane.b32.xlu0 %v422_v51, %s1695_s25  ;;  %485 = vrot.lane.b32.xlu1 %v482_v32, %s1692_s23  ;;  %v1676_v51 = vld [vmem:[%s3002_s24] ss:$0 sm:$0xff] }
 0x176   :  { %648 = vmatpush.msra.mxu2 %v564_v10  ;;  %886 = vmatpush.msrb.mxu0 %v865_v6  ;;  %v874_v6 = vld [vmem:[%s2952_s7 + $0xc0] sm:$0xff] }
 0x178   :  { %887 = vmatpush.msrb.mxu0 %v864_v7  ;;  %v853_v7 = vld [vmem:[%s2952_s7 + $0x18] sm:$0xff] }
 0x17a   :  { %888 = vmatpush.msrb.mxu0 %v863_v11  ;;  %v872_v11 = vld [vmem:[%s2952_s7 + $0xb0] sm:$0xff] }
 0x17b   :  { %v451_v62 = vpop.permute.xlu2 %450 }
 0x17c   :  { %457 = vst.msk [vmem:[#allocation2 + $0x8] sm:$0xf0] %vm456_vm2, %v451_v62 }
 0x17d   :  { %423 = vrot.lane.b32.xlu1 %v420_v47, %s1695_s25 }
 0x185   :  { %510 = vrot.lane.b32.xlu1 %v507_v13, %s1695_s25 }
 0x190   :  { %v527_v12 = vpop.permute.xlu2 %526 }
 0x191   :  { %v373_v14 = vpop.permute.xlu1 %372  ;;  %533 = vst.msk [vmem:[#allocation2 + $0x28] sm:$0xff] %vm375_vm5, %v527_v12 }
 0x192   :  { %376 = vst.msk [vmem:[#allocation2 + $0x18] sm:$0xff] %vm375_vm5, %v373_v14 }
 0x193   :  { %532 = vst.msk [vmem:[#allocation2 + $0x10] sm:$0xff] %vm375_vm5, %v373_v14  ;;  %v474_v15 = vpop.permute.xlu0 %473 }
 0x194   :  { %480 = vst.msk [vmem:[#allocation2 + $0x8] sm:$0xf8] %vm479_vm6, %v474_v15 }
 0x198   :  { %v386_v61 = vpop.permute.xlu2 %385  ;;  %v541_v19 = vld [vmem:[#allocation2 + $0x28] sm:$0xff] }
 0x199   :  { %v497_v3 = vpop.permute.xlu1 %496  ;;  %392 = vst.msk [vmem:[#allocation2] sm:$0x80] %vm391_vm7, %v386_v61 }
 0x19a   :  { %503 = vst.msk [vmem:[#allocation2 + $0x8] sm:$0xfc] %vm502_vm10, %v497_v3  ;;  %v538_v16 = vld [vmem:[#allocation2 + $0x10] sm:$0xff] }
 0x19b   :  { %1640 = vmatmul.msk.f32.vlgmr.msra.gmra.mxu3 %vm352_vm0, %v538_v16  ;;  %v411_v17 = vpop.permute.xlu0 %410 }
 0x19c   :  { %417 = vst.msk [vmem:[#allocation2] sm:$0xc0] %vm416_vm11, %v411_v17 }
 0x1a0   :  { %v476_v21 = vpop.permute.xlu2 %475 }
 0x1a1   :  { %v537_v18 = vld [vmem:[#allocation2 + $0x8] sm:$0xff] }
 0x1a2   :  { %649 = vmatmul.f32.vlgmr.msra.gmra.mxu2 %v537_v18  ;;  %747 = vst [vmem:[#allocation2 + $0x8] sm:$0xff] %v1694_v46 }
 0x1a3   :  { %1641 = vmatmul.msk.f32.gmra.mxu3 %vm352_vm0, %v541_v19  ;;  %v536_v20 = vld [vmem:[#allocation2] sm:$0xff] }
 0x1a4   :  { %620 = vmatmul.f32.vlgmr.msra.gmra.mxu1 %v536_v20  ;;  %1156 = vst [vmem:[#allocation2] sm:$0xff] %v1694_v46 }
 0x1a8   :  { %v413_v25 = vpop.permute.xlu2 %412 }
 0x1ab   :  { %v453_v23 = vpop.permute.xlu1 %452 }
 0x1ac   :  { %458 = vst.msk [vmem:[#allocation2 + $0x20] sm:$0xff] %vm375_vm5, %v453_v23 }
 0x1ad   :  { %481 = vst.msk [vmem:[#allocation2 + $0x20] sm:$0xff] %vm393_vm12, %v476_v21 }
 0x1b0   :  { %v509_v26 = vpop.permute.xlu2 %508 }
 0x1bf   :  { %v378_v27 = vpop.permute.xlu0 %377 }
 0x1c0   :  { %380 = vst.msk [vmem:[#allocation2 + $0x48] sm:$0xff] %vm375_vm5, %v378_v27 }
 0x1c1   :  { %534 = vst.msk [vmem:[#allocation2 + $0x40] sm:$0xff] %vm375_vm5, %v378_v27 }
 0x1c2   :  { %v465_v28 = vpop.permute.xlu2 %464 }
 0x1c3   :  { %469 = vst.msk [vmem:[#allocation2 + $0x50] sm:$0xff] %vm375_vm5, %v465_v28 }
 0x1c7   :  { %v499_v29 = vpop.permute.xlu0 %498 }
 0x1c8   :  { %504 = vst.msk [vmem:[#allocation2 + $0x20] sm:$0xff] %vm418_vm13, %v499_v29  ;;  %v544_v30 = vld [vmem:[#allocation2 + $0x40] sm:$0xff] }
 0x1c9   :  { %1642 = vmatmul.msk.f32.gmra.mxu3 %vm352_vm0, %v544_v30 }
 0x1ca   :  { %v402_v32 = vpop.permute.xlu2 %401 }
 0x1cb   :  { %406 = vst.msk [vmem:[#allocation2 + $0x48] sm:$0xff] %vm393_vm12, %v402_v32 }
 0x1cf   :  { %v463_v33 = vpop.permute.xlu0 %462  ;;  %v540_v34 = vld [vmem:[#allocation2 + $0x20] sm:$0xff] }
 0x1d0   :  { %468 = vst.msk [vmem:[#allocation2 + $0x38] sm:$0xf0] %vm456_vm2, %v463_v33  ;;  %652 = vmatmul.f32.gmra.mxu2 %v540_v34 }
 0x1d1   :  { %749 = vst [vmem:[#allocation2 + $0x20] sm:$0xff] %v1694_v46 }
 0x1d7   :  { %v400_v35 = vpop.permute.xlu0 %399  ;;  %v529_v36 = vpop.permute.xlu1 %528 }
 0x1d8   :  { %405 = vst.msk [vmem:[#allocation2 + $0x30] sm:$0x80] %vm391_vm7, %v400_v35  ;;  %vm3006_vm7 = vmmov %vm2999_vm1 }
 0x1d9   :  { %535 = vst.msk [vmem:[#allocation2 + $0x58] sm:$0xff] %vm375_vm5, %v529_v36 }
 0x1df   :  { %v488_v37 = vpop.permute.xlu0 %487  ;;  %v388_v39 = vpop.permute.xlu1 %387 }
 0x1e0   :  { %492 = vst.msk [vmem:[#allocation2 + $0x50] sm:$0xff] %vm393_vm12, %v488_v37  ;;  %v547_v40 = vld [vmem:[#allocation2 + $0x58] sm:$0xff] }
 0x1e1   :  { %394 = vst.msk [vmem:[#allocation2 + $0x18] sm:$0xff] %vm393_vm12, %v388_v39  ;;  %1643 = vmatmul.msk.f32.gmra.mxu3 %vm352_vm0, %v547_v40 }
 0x1e2   :  { %419 = vst.msk [vmem:[#allocation2 + $0x18] sm:$0xff] %vm418_vm13, %v413_v25 }
 0x1e7   :  { %v426_v41 = vpop.permute.xlu0 %425  ;;  %v486_v38 = vpop.permute.xlu1 %485 }
 0x1e8   :  { %430 = vst.msk [vmem:[#allocation2 + $0x48] sm:$0xff] %vm418_vm13, %v426_v41 }
 0x1e9   :  { %491 = vst.msk [vmem:[#allocation2 + $0x38] sm:$0xf8] %vm479_vm6, %v486_v38  ;;  %1644 = vmatmul.msk.f32.vlgmr.msrb.gmra.mxu3 %vm700_vm14, %v1809_v0  ;;  %v539_v42 = vld [vmem:[#allocation2 + $0x18] sm:$0xff]  ;;  %vm3005_vm6 = vmmov %vm3004_vm9 }
 0x1ea   :  { %514 = vst.msk [vmem:[#allocation2 + $0x38] sm:$0xfc] %vm502_vm10, %v509_v26  ;;  %623 = vmatmul.f32.gmra.mxu1 %v539_v42  ;;  %vm777_vm10 = vcmask 785922  }
 0x1eb   :  { %748 = vst [vmem:[#allocation2 + $0x18] sm:$0xff] %v1694_v46 }
 0x1ef   :  { %v424_v43 = vpop.permute.xlu1 %423  ;;  %v545_v44 = vld [vmem:[#allocation2 + $0x48] sm:$0xff] }
 0x1f0   :  { %429 = vst.msk [vmem:[#allocation2 + $0x30] sm:$0xc0] %vm416_vm11, %v424_v43  ;;  %vm3007_vm11 = vmmov %vm3000_vm4 }
 0x1f1   :  { %1645 = vmatmul.msk.f32.gmra.mxu3 %vm700_vm14, %v1829_v8  ;;  %v543_v45 = vld [vmem:[#allocation2 + $0x38] sm:$0xff]  ;;  %752 = vst [vmem:[#allocation2 + $0x48] sm:$0xff] %v1694_v46 }
 0x1f2   :  { %655 = vmatmul.f32.gmra.mxu2 %v543_v45  ;;  %751 = vst [vmem:[#allocation2 + $0x38] sm:$0xff] %v1694_v46 }
 0x1f7   :  { %v511_v0 = vpop.permute.xlu1 %510  ;;  %v542_v47 = vld [vmem:[#allocation2 + $0x30] sm:$0xff] }
 0x1f8   :  { %515 = vst.msk [vmem:[#allocation2 + $0x50] sm:$0xff] %vm418_vm13, %v511_v0  ;;  %626 = vmatmul.f32.gmra.mxu1 %v542_v47 }
 0x1f9   :  { %1646 = vmatmul.msk.f32.gmra.mxu3 %vm700_vm14, %v1859_v22  ;;  %1158 = vst [vmem:[#allocation2 + $0x30] sm:$0xff] %v1694_v46 }
 0x1ff   :  { %v546_v48 = vld [vmem:[#allocation2 + $0x50] sm:$0xff] }
 0x200   :  { %629 = vmatmul.f32.gmra.mxu1 %v545_v44  ;;  %658 = vmatmul.f32.gmra.mxu2 %v546_v48  ;;  %753 = vst [vmem:[#allocation2 + $0x50] sm:$0xff] %v1694_v46 }
 0x201   :  { %1647 = vmatmul.msk.f32.gmra.mxu3 %vm700_vm14, %v1882_v31  ;;  %v2287_v31 = vld [vmem:[%s2951_s6] ss:$0 sm:$0xff]  ;;  %vm3008_vm14 = vmmov %vm3005_vm6 }
 0x21e   :  { %v679_v8 = vpop.f32.mrf.mxu3 }
 0x221   :  { %v621_v52 = vpop.f32.mrf.mxu1 }
 0x222   :  { %v622_v22 = vadd.f32 %v1676_v51, %v621_v52  ;;  %v862_v52 = vld [vmem:[%s2952_s7 + $0x60] sm:$0xff] }
 0x223   :  { %889 = vmatpush.msrb.mxu0 %v862_v52  ;;  %v1063_v52 = vld [vmem:[%s2954_s9 + $0x68] sm:$0xff] }
 0x225   :  { %v650_v53 = vpop.f32.mrf.mxu2 }
 0x226   :  { %v682_v49 = vpop.f32.mrf.mxu3  ;;  %v651_v55 = vadd.f32 %v650_v53, %v622_v22  ;;  %v861_v53 = vld [vmem:[%s2952_s7 + $0x58] sm:$0xff] }
 0x227   :  { %v881_v22 = vld [vmem:[%s2952_s7 + $0xf8] sm:$0xff]  ;;  %890 = vmatpush.msrb.mxu0 %v861_v53 }
 0x228   :  { %v680_v57 = vadd.f32 %v679_v8, %v651_v55  ;;  %915 = vmatpush.msrb.mxu1 %v881_v22  ;;  %v860_v55 = vld [vmem:[%s2952_s7 + $0x50] sm:$0xff] }
 0x229   :  { %891 = vmatpush.msrb.mxu0 %v860_v55 }
 0x22a   :  { %v691_v62 = vmax.f32 %v680_v57, 0.0  ;;  %v859_v57 = vld [vmem:[%s2952_s7 + $0x48] sm:$0xff] }
 0x22b   :  { %892 = vmatpush.msrb.mxu0 %v859_v57 }
 0x24c   :  { %v685_v50 = vpop.f32.mrf.mxu3 }
 0x253   :  { %v653_v59 = vpop.f32.mrf.mxu2 }
 0x264   :  { %v2282_v54 = vpop.f32.mrf.mxu3 }
 0x267   :  { %v624_v56 = vpop.f32.mrf.mxu1 }
 0x268   :  { %v625_v58 = vadd.f32 %v1676_v51, %v624_v56  ;;  %v879_v56 = vld [vmem:[%s2952_s7 + $0xe8] sm:$0xff] }
 0x26a   :  { %v654_v63 = vadd.f32 %v653_v59, %v625_v58  ;;  %v858_v58 = vld [vmem:[%s2952_s7 + $0x40] sm:$0xff]  ;;  %v857_v59 = vld [vmem:[%s2952_s7 + $0x38] sm:$0xff] }
 0x26b   :  { %893 = vmatpush.msrb.mxu0 %v858_v58 }
 0x26c   :  { %v726_v60 = vpop.f32.mrf.mxu3  ;;  %v683_v4 = vadd.f32 %v682_v49, %v654_v63  ;;  %v876_v63 = vld [vmem:[%s2952_s7 + $0xd0] sm:$0xff] }
 0x26d   :  { %v727_v1 = vadd.f32 %v2287_v31, %v726_v60  ;;  %v877_v60 = vld [vmem:[%s2952_s7 + $0xd8] sm:$0xff]  ;;  %894 = vmatpush.msrb.mxu0 %v857_v59 }
 0x26e   :  { %v692_v14 = vmax.f32 %v683_v4, 0.0  ;;  %v854_v4 = vld [vmem:[%s2952_s7 + $0x20] sm:$0xff] }
 0x26f   :  { %v738_v2 = vadd.f32 %v727_v1, %v691_v62  ;;  %v856_v62 = vld [vmem:[%s2952_s7 + $0x30] sm:$0xff]  ;;  %v855_v1 = vld [vmem:[%s2952_s7 + $0x28] sm:$0xff] }
 0x270   :  { %895 = vmatpush.msrb.mxu0 %v856_v62 }
 0x271   :  { %v2290_v5 = vmax.f32 %v738_v2, 0.0  ;;  %v875_v2 = vld [vmem:[%s2952_s7 + $0xc8] sm:$0xff] }
 0x272   :  { %896 = vmatpush.msrb.mxu0 %v855_v1 }
 0x273   :  { %784 = vrot.lane.b32.xlu0 %v2290_v5, %s1695_s25  ;;  %v773_v9 = vrot.slane %v2290_v5, 6  ;;  %v763_v10 = vrot.slane %v2290_v5, 4  ;;  %v755_v13 = vrot.slane %v2290_v5, 2 }
 0x274   :  { %v729_v12 = vpop.f32.mrf.mxu3  ;;  %897 = vmatpush.msrb.mxu0 %v854_v4 }
 0x275   :  { %v730_v15 = vadd.f32 %v2287_v31, %v729_v12  ;;  %774 = vrot.lane.b32.xlu2 %v773_v9, %s1692_s23  ;;  %764 = vrot.lane.b32.xlu1 %v763_v10, %s1685_s27  ;;  %v627_v61 = vpop.f32.mrf.mxu1  ;;  %758 = vst.msk [vmem:[#allocation2 + $0x18] sm:$0xc0] %vm757_vm15, %v755_v13  ;;  %v656_v17 = vpop.f32.mrf.mxu2  ;;  %v871_v12 = vld [vmem:[%s2952_s7 + $0xa8] sm:$0xff] }
 0x276   :  { %v628_v3 = vadd.f32 %v1676_v51, %v627_v61  ;;  %796 = vst.msk [vmem:[#allocation2 + $0x8] sm:$0xc0] %vm757_vm15, %v755_v13  ;;  %898 = vmatpush.msrb.mxu0 %v853_v7  ;;  %v869_v61 = vld [vmem:[%s2952_s7 + $0x98] sm:$0xff] }
 0x277   :  { %v739_v16 = vadd.f32 %v730_v15, %v692_v14  ;;  %v850_v14 = vld [vmem:[%s2952_s7] sm:$0xff] }
 0x278   :  { %v657_v18 = vadd.f32 %v656_v17, %v628_v3  ;;  %v870_v15 = vld [vmem:[%s2952_s7 + $0xa0] sm:$0xff]  ;;  %v868_v3 = vld [vmem:[%s2952_s7 + $0x90] sm:$0xff] }
 0x279   :  { %v2311_v19 = vmax.f32 %v739_v16, 0.0  ;;  %v867_v16 = vld [vmem:[%s2952_s7 + $0x88] sm:$0xff]  ;;  %v866_v17 = vld [vmem:[%s2952_s7 + $0x80] sm:$0xff] }
 0x27a   :  { %v686_v20 = vadd.f32 %v685_v50, %v657_v18 }
 0x27b   :  { %832 = vrot.lane.b32.xlu0 %v2311_v19, %s1695_s25  ;;  %v818_v21 = vrot.slane %v2311_v19, 6  ;;  %v804_v23 = vrot.slane %v2311_v19, 4  ;;  %v793_v24 = vrot.slane %v2311_v19, 2 }
 0x27c   :  { %v693_v25 = vmax.f32 %v686_v20, 0.0  ;;  %v732_v26 = vpop.f32.mrf.mxu3 }
 0x27d   :  { %v733_v27 = vadd.f32 %v2287_v31, %v732_v26  ;;  %v819_v28 = vsel %vm3003_vm8, %v773_v9, %v818_v21  ;;  %v805_v29 = vsel %vm3004_vm9, %v763_v10, %v804_v23  ;;  %v794_v30 = vsel %vm2999_vm1, %v755_v13, %v793_v24  ;;  %v630_v33 = vpop.f32.mrf.mxu1  ;;  %v873_v9 = vld [vmem:[%s2952_s7 + $0xb8] sm:$0xff]  ;;  %v852_v10 = vld [vmem:[%s2952_s7 + $0x10] sm:$0xff]  ;;  %v851_v13 = vld [vmem:[%s2952_s7 + $0x8] sm:$0xff] }
 0x27e   :  { %820 = vrot.lane.b32.xlu2 %v819_v28, %s1692_s23  ;;  %806 = vrot.lane.b32.xlu1 %v805_v29, %s1685_s27  ;;  %797 = vst.msk [vmem:[#allocation2 + $0x20] sm:$0xff] %vm438_vm3, %v794_v30  ;;  %v631_v35 = vadd.f32 %v1676_v51, %v630_v33  ;;  %vm3009_vm8 = vmmov %vm2999_vm1 }
 0x27f   :  { %v740_v32 = vadd.f32 %v733_v27, %v693_v25  ;;  %899 = vmatpush.msrb.mxu0 %v852_v10  ;;  %vm3010_vm9 = vmmov %vm3000_vm4 }
 0x280   :  { %vm3011_vm1 = vmmov %vm3005_vm6 }
 0x281   :  { %v2325_v34 = vmax.f32 %v740_v32, 0.0  ;;  %900 = vmatpush.msrb.mxu0 %v851_v13 }
 0x283   :  { %788 = vrot.lane.b32.xlu0 %v2325_v34, %s1695_s25  ;;  %v659_v36 = vpop.f32.mrf.mxu2  ;;  %v779_v37 = vrot.slane %v2325_v34, 6  ;;  %v768_v39 = vrot.slane %v2325_v34, 4  ;;  %v760_v40 = vrot.slane %v2325_v34, 2  ;;  %901 = vmatpush.msrb.mxu0 %v850_v14 }
 0x284   :  { %v660_v41 = vadd.f32 %v659_v36, %v631_v35  ;;  %v735_v38 = vpop.f32.mrf.mxu3  ;;  %902 = vmatmul.f32.vlgmr.msrb.gmra.mxu0 %v1694_v46 }
 0x285   :  { %762 = vst.msk [vmem:[#allocation2 + $0x48] sm:$0xc0] %vm757_vm15, %v760_v40  ;;  %v736_v43 = vadd.f32 %v2287_v31, %v735_v38  ;;  %v878_v31 = vld [vmem:[%s2952_s7 + $0xe0] sm:$0xff] }
 0x286   :  { %v689_v42 = vadd.f32 %v2282_v54, %v660_v41  ;;  %780 = vrot.lane.b32.xlu2 %v779_v37, %s1692_s23  ;;  %769 = vrot.lane.b32.xlu1 %v768_v39, %s1685_s27  ;;  %802 = vst.msk [vmem:[#allocation2 + $0x38] sm:$0xc0] %vm757_vm15, %v760_v40  ;;  %v880_v54 = vld [vmem:[%s2952_s7 + $0xf0] sm:$0xff]  ;;  %v1678_v41 = vld [vmem:[%s2953_s8] ss:$0 sm:$0xff] }
 0x287   :  { %916 = vmatpush.msrb.mxu1 %v880_v54 }
 0x288   :  { %v694_v44 = vmax.f32 %v689_v42, 0.0 }
 0x289   :  { %917 = vmatpush.msrb.mxu1 %v879_v56 }
 0x28a   :  { %v741_v45 = vadd.f32 %v736_v43, %v694_v44 }
 0x28b   :  { %918 = vmatpush.msrb.mxu1 %v878_v31 }
 0x28c   :  { %v2338_v0 = vmax.f32 %v741_v45, 0.0 }
 0x28d   :  { %919 = vmatpush.msrb.mxu1 %v877_v60 }
 0x28e   :  { %834 = vrot.lane.b32.xlu0 %v2338_v0, %s1695_s25  ;;  %v825_v47 = vrot.slane %v2338_v0, 6  ;;  %v811_v48 = vrot.slane %v2338_v0, 4  ;;  %v799_v8 = vrot.slane %v2338_v0, 2 }
 0x28f   :  { %920 = vmatpush.msrb.mxu1 %v876_v63 }
 0x290   :  { %v826_v49 = vsel %vm3000_vm4, %v779_v37, %v825_v47  ;;  %v812_v50 = vsel %vm3005_vm6, %v768_v39, %v811_v48  ;;  %v800_v51 = vsel %vm3006_vm7, %v760_v40, %v799_v8  ;;  %v1065_v48 = vld [vmem:[%s2954_s9 + $0x78] sm:$0xff]  ;;  %v1064_v8 = vld [vmem:[%s2954_s9 + $0x70] sm:$0xff]  ;;  %vm3012_vm4 = vmmov %vm3006_vm7  ;;  %vm1186_vm7 = vcmask 785924  }
 0x291   :  { %827 = vrot.lane.b32.xlu2 %v826_v49, %s1692_s23  ;;  %813 = vrot.lane.b32.xlu1 %v812_v50, %s1685_s27  ;;  %803 = vst.msk [vmem:[#allocation2 + $0x50] sm:$0xff] %vm438_vm3, %v800_v51  ;;  %vm3014_vm6 = vmmov %vm3011_vm1 }
 0x292   :  { %921 = vmatpush.msrb.mxu1 %v875_v2  ;;  %1086 = vmatpush.msrb.mxu2 %v1065_v48  ;;  %v1070_v48 = vld [vmem:[%s2954_s9 + $0xa0] sm:$0xff] }
 0x294   :  { %922 = vmatpush.msrb.mxu1 %v874_v6  ;;  %1087 = vmatpush.msrb.mxu2 %v1064_v8  ;;  %v1069_v8 = vld [vmem:[%s2954_s9 + $0x98] sm:$0xff] }
 0x296   :  { %923 = vmatpush.msrb.mxu1 %v873_v9  ;;  %1088 = vmatpush.msrb.mxu2 %v1063_v52 }
 0x298   :  { %924 = vmatpush.msrb.mxu1 %v872_v11 }
 0x29a   :  { %925 = vmatpush.msrb.mxu1 %v871_v12 }
 0x29c   :  { %926 = vmatpush.msrb.mxu1 %v870_v15 }
 0x29e   :  { %927 = vmatpush.msrb.mxu1 %v869_v61 }
 0x2a0   :  { %928 = vmatpush.msrb.mxu1 %v868_v3 }
 0x2a2   :  { %929 = vmatpush.msrb.mxu1 %v867_v16 }
 0x2a4   :  { %930 = vmatpush.msrb.mxu1 %v866_v17 }
 0x2cf   :  { %v775_v18 = vpop.permute.xlu2 %774 }
 0x2d8   :  { %v821_v23 = vpop.permute.xlu2 %820 }
 0x2e0   :  { %v781_v29 = vpop.permute.xlu2 %780 }
 0x2e5   :  { %v785_v21 = vpop.permute.xlu0 %784 }
 0x2e7   :  { %v765_v20 = vpop.permute.xlu1 %764 }
 0x2e8   :  { %767 = vst.msk [vmem:[#allocation2 + $0x18] sm:$0xf0] %vm456_vm2, %v765_v20 }
 0x2e9   :  { %778 = vst.msk [vmem:[#allocation2 + $0x18] sm:$0xfc] %vm777_vm10, %v775_v18 }
 0x2ea   :  { %809 = vst.msk [vmem:[#allocation2 + $0x8] sm:$0xf0] %vm456_vm2, %v765_v20  ;;  %v1062_v20 = vld [vmem:[%s2954_s9 + $0x60] sm:$0xff] }
 0x2eb   :  { %823 = vst.msk [vmem:[#allocation2 + $0x8] sm:$0xfc] %vm777_vm10, %v775_v18  ;;  %v828_v37 = vpop.permute.xlu2 %827  ;;  %1089 = vmatpush.msrb.mxu2 %v1062_v20 }
 0x2ec   :  { %787 = vst.msk [vmem:[#allocation2 + $0x18] sm:$0xff] %vm418_vm13, %v785_v21 }
 0x2ed   :  { %838 = vst.msk [vmem:[#allocation2 + $0x8] sm:$0xff] %vm418_vm13, %v785_v21  ;;  %v833_v25 = vpop.permute.xlu0 %832  ;;  %v1061_v21 = vld [vmem:[%s2954_s9 + $0x58] sm:$0xff] }
 0x2ee   :  { %1090 = vmatpush.msrb.mxu2 %v1061_v21 }
 0x2f0   :  { %v807_v24 = vpop.permute.xlu1 %806 }
 0x2f1   :  { %810 = vst.msk [vmem:[#allocation2 + $0x20] sm:$0xff] %vm375_vm5, %v807_v24  ;;  %v1080_v24 = vld [vmem:[%s2954_s9 + $0xf0] sm:$0xff] }
 0x2f2   :  { %824 = vst.msk [vmem:[#allocation2 + $0x20] sm:$0xff] %vm393_vm12, %v821_v23  ;;  %v1081_v23 = vld [vmem:[%s2954_s9 + $0xf8] sm:$0xff] }
 0x2f3   :  { %839 = vst.msk [vmem:[#allocation2 + $0x20] sm:$0xff] %vm418_vm13, %v833_v25  ;;  %v844_v26 = vld [vmem:[#allocation2 + $0x18] sm:$0xff]  ;;  %1115 = vmatpush.msra.mxu3 %v1081_v23  ;;  %v1060_v25 = vld [vmem:[%s2954_s9 + $0x50] sm:$0xff] }
 0x2f4   :  { %905 = vmatmul.f32.gmra.mxu0 %v844_v26  ;;  %950 = vst [vmem:[#allocation2 + $0x18] sm:$0xff] %v1694_v46  ;;  %v843_v27 = vld [vmem:[#allocation2 + $0x8] sm:$0xff]  ;;  %1091 = vmatpush.msrb.mxu2 %v1060_v25 }
 0x2f5   :  { %931 = vmatmul.f32.vlgmr.msrb.gmra.mxu1 %v843_v27  ;;  %949 = vst [vmem:[#allocation2 + $0x8] sm:$0xff] %v1694_v46  ;;  %v789_v32 = vpop.permute.xlu0 %788  ;;  %v1079_v26 = vld [vmem:[%s2954_s9 + $0xe8] sm:$0xff]  ;;  %1116 = vmatpush.msra.mxu3 %v1080_v24 }
 0x2f6   :  { %v1059_v27 = vld [vmem:[%s2954_s9 + $0x48] sm:$0xff] }
 0x2f7   :  { %1117 = vmatpush.msra.mxu3 %v1079_v26  ;;  %1092 = vmatpush.msrb.mxu2 %v1059_v27 }
 0x2f8   :  { %v770_v28 = vpop.permute.xlu1 %769 }
 0x2f9   :  { %772 = vst.msk [vmem:[#allocation2 + $0x48] sm:$0xf0] %vm456_vm2, %v770_v28 }
 0x2fa   :  { %783 = vst.msk [vmem:[#allocation2 + $0x48] sm:$0xfc] %vm777_vm10, %v781_v29  ;;  %v845_v30 = vld [vmem:[#allocation2 + $0x20] sm:$0xff] }
 0x2fb   :  { %816 = vst.msk [vmem:[#allocation2 + $0x38] sm:$0xf0] %vm456_vm2, %v770_v28  ;;  %v1078_v28 = vld [vmem:[%s2954_s9 + $0xe0] sm:$0xff] }
 0x2fc   :  { %830 = vst.msk [vmem:[#allocation2 + $0x38] sm:$0xfc] %vm777_vm10, %v781_v29  ;;  %908 = vmatmul.f32.gmra.mxu0 %v1694_v46  ;;  %v1058_v29 = vld [vmem:[%s2954_s9 + $0x40] sm:$0xff]  ;;  %1118 = vmatpush.msra.mxu3 %v1078_v28 }
 0x2fd   :  { %791 = vst.msk [vmem:[#allocation2 + $0x48] sm:$0xff] %vm418_vm13, %v789_v32  ;;  %934 = vmatmul.f32.gmra.mxu1 %v845_v30  ;;  %1093 = vmatpush.msrb.mxu2 %v1058_v29  ;;  %v1057_v30 = vld [vmem:[%s2954_s9 + $0x38] sm:$0xff] }
 0x2fe   :  { %840 = vst.msk [vmem:[#allocation2 + $0x38] sm:$0xff] %vm418_vm13, %v789_v32  ;;  %v1077_v32 = vld [vmem:[%s2954_s9 + $0xd8] sm:$0xff] }
 0x2ff   :  { %951 = vst [vmem:[#allocation2 + $0x20] sm:$0xff] %v1694_v46  ;;  %1119 = vmatpush.msra.mxu3 %v1077_v32  ;;  %1094 = vmatpush.msrb.mxu2 %v1057_v30 }
 0x300   :  { %v835_v39 = vpop.permute.xlu0 %834 }
 0x301   :  { %v903_v38 = vpop.f32.mrf.mxu0 }
 0x302   :  { %v904_v42 = vadd.f32 %v1678_v41, %v903_v38  ;;  %v1073_v38 = vld [vmem:[%s2954_s9 + $0xb8] sm:$0xff] }
 0x303   :  { %v814_v33 = vpop.permute.xlu1 %813 }
 0x304   :  { %v848_v35 = vld [vmem:[#allocation2 + $0x48] sm:$0xff]  ;;  %817 = vst.msk [vmem:[#allocation2 + $0x50] sm:$0xff] %vm375_vm5, %v814_v33  ;;  %v1056_v33 = vld [vmem:[%s2954_s9 + $0x30] sm:$0xff] }
 0x305   :  { %911 = vmatmul.f32.gmra.mxu0 %v848_v35  ;;  %954 = vst [vmem:[#allocation2 + $0x48] sm:$0xff] %v1694_v46  ;;  %v847_v36 = vld [vmem:[#allocation2 + $0x38] sm:$0xff]  ;;  %v1076_v35 = vld [vmem:[%s2954_s9 + $0xd0] sm:$0xff]  ;;  %1095 = vmatpush.msrb.mxu2 %v1056_v33 }
 0x306   :  { %937 = vmatmul.f32.gmra.mxu1 %v847_v36  ;;  %953 = vst [vmem:[#allocation2 + $0x38] sm:$0xff] %v1694_v46  ;;  %v1075_v36 = vld [vmem:[%s2954_s9 + $0xc8] sm:$0xff]  ;;  %1120 = vmatpush.msra.mxu3 %v1076_v35 }
 0x307   :  { %831 = vst.msk [vmem:[#allocation2 + $0x50] sm:$0xff] %vm393_vm12, %v828_v37  ;;  %v1055_v37 = vld [vmem:[%s2954_s9 + $0x28] sm:$0xff] }
 0x308   :  { %841 = vst.msk [vmem:[#allocation2 + $0x50] sm:$0xff] %vm418_vm13, %v835_v39  ;;  %v1074_v39 = vld [vmem:[%s2954_s9 + $0xc0] sm:$0xff]  ;;  %1121 = vmatpush.msra.mxu3 %v1075_v36  ;;  %1096 = vmatpush.msrb.mxu2 %v1055_v37 }
 0x30a   :  { %1122 = vmatpush.msra.mxu3 %v1074_v39 }
 0x30c   :  { %1123 = vmatpush.msra.mxu3 %v1073_v38 }
 0x30f   :  { %v849_v40 = vld [vmem:[#allocation2 + $0x50] sm:$0xff] }
 0x310   :  { %940 = vmatmul.f32.gmra.mxu1 %v849_v40  ;;  %955 = vst [vmem:[#allocation2 + $0x50] sm:$0xff] %v1694_v46  ;;  %v1054_v40 = vld [vmem:[%s2954_s9 + $0x20] sm:$0xff] }
 0x311   :  { %1097 = vmatpush.msrb.mxu2 %v1054_v40 }
 0x371   :  { %v906_v45 = vpop.f32.mrf.mxu0 }
 0x372   :  { %v932_v43 = vpop.f32.mrf.mxu1  ;;  %v907_v53 = vadd.f32 %v1678_v41, %v906_v45  ;;  %v1071_v45 = vld [vmem:[%s2954_s9 + $0xa8] sm:$0xff] }
 0x373   :  { %v933_v44 = vadd.f32 %v932_v43, %v904_v42  ;;  %v1052_v42 = vld [vmem:[%s2954_s9 + $0x10] sm:$0xff] }
 0x374   :  { %v1072_v43 = vld [vmem:[%s2954_s9 + $0xb0] sm:$0xff] }
 0x375   :  { %v944_v47 = vmax.f32 %v933_v44, 0.0  ;;  %1124 = vmatpush.msra.mxu3 %v1072_v43  ;;  %v1051_v44 = vld [vmem:[%s2954_s9 + $0x8] sm:$0xff]  ;;  %v1235_v43 = vld [vmem:[%s2957_s11 + $0x78] sm:$0xff] }
 0x376   :  { %1240 = vmatpush.msra.mxu0 %v1235_v43  ;;  %v1340_v43 = vld [vmem:[%s2958_s13 + $0x28] sm:$0xff] }
 0x377   :  { %v957_v49 = vrot.slane %v944_v47, 2  ;;  %984 = vrot.lane.b32.xlu0 %v944_v47, %s1695_s25  ;;  %v974_v50 = vrot.slane %v944_v47, 6  ;;  %v964_v51 = vrot.slane %v944_v47, 4  ;;  %1125 = vmatpush.msra.mxu3 %v1071_v45  ;;  %v1050_v47 = vld [vmem:[%s2954_s9] sm:$0xff] }
 0x378   :  { %v1232_v45 = vld [vmem:[%s2957_s11 + $0x60] sm:$0xff] }
 0x379   :  { %959 = vst.msk [vmem:[#allocation2 + $0x18] sm:$0xc0] %vm757_vm15, %v957_v49  ;;  %975 = vrot.lane.b32.xlu2 %v974_v50, %s1692_s23  ;;  %965 = vrot.lane.b32.xlu1 %v964_v51, %s1685_s27  ;;  %v909_v56 = vpop.f32.mrf.mxu0 }
 0x37a   :  { %996 = vst.msk [vmem:[#allocation2 + $0x8] sm:$0xc0] %vm757_vm15, %v957_v49  ;;  %v935_v22 = vpop.f32.mrf.mxu1  ;;  %v910_v59 = vadd.f32 %v1678_v41, %v909_v56  ;;  %1126 = vmatpush.msra.mxu3 %v1070_v48  ;;  %v1230_v48 = vld [vmem:[%s2957_s11 + $0x50] sm:$0xff] }
 0x37b   :  { %v936_v54 = vadd.f32 %v935_v22, %v907_v53 }
 0x37c   :  { %1127 = vmatpush.msra.mxu3 %v1069_v8  ;;  %v1229_v8 = vld [vmem:[%s2957_s11 + $0x48] sm:$0xff] }
 0x37d   :  { %v945_v55 = vmax.f32 %v936_v54, 0.0 }
 0x37f   :  { %v993_v57 = vrot.slane %v945_v55, 2  ;;  %1032 = vrot.lane.b32.xlu0 %v945_v55, %s1695_s25  ;;  %v1018_v58 = vrot.slane %v945_v55, 6  ;;  %v1004_v31 = vrot.slane %v945_v55, 4 }
 0x381   :  { %v1019_v60 = vsel %vm3007_vm11, %v974_v50, %v1018_v58  ;;  %v1005_v62 = vsel %vm3008_vm14, %v964_v51, %v1004_v31  ;;  %v994_v63 = vsel %vm3009_vm8, %v957_v49, %v993_v57  ;;  %v1068_v49 = vld [vmem:[%s2954_s9 + $0x90] sm:$0xff]  ;;  %v1067_v50 = vld [vmem:[%s2954_s9 + $0x88] sm:$0xff]  ;;  %v1066_v51 = vld [vmem:[%s2954_s9 + $0x80] sm:$0xff] }
 0x382   :  { %1020 = vrot.lane.b32.xlu2 %v1019_v60, %s1692_s23  ;;  %1006 = vrot.lane.b32.xlu1 %v1005_v62, %s1685_s27  ;;  %997 = vst.msk [vmem:[#allocation2 + $0x20] sm:$0xff] %vm438_vm3, %v994_v63  ;;  %v912_v10 = vpop.f32.mrf.mxu0  ;;  %vm3016_vm11 = vmmov %vm3011_vm1 }
 0x383   :  { %v938_v1 = vpop.f32.mrf.mxu1  ;;  %v913_v11 = vadd.f32 %v1678_v41, %v912_v10  ;;  %v1053_v41 = vld [vmem:[%s2954_s9 + $0x18] sm:$0xff]  ;;  %1128 = vmatpush.msra.mxu3 %v1068_v49  ;;  %v1228_v49 = vld [vmem:[%s2957_s11 + $0x40] sm:$0xff] }
 0x384   :  { %v939_v2 = vadd.f32 %v938_v1, %v910_v59  ;;  %1098 = vmatpush.msrb.mxu2 %v1053_v41 }
 0x385   :  { %1129 = vmatpush.msra.mxu3 %v1067_v50  ;;  %v1227_v50 = vld [vmem:[%s2957_s11 + $0x38] sm:$0xff] }
 0x386   :  { %v946_v4 = vmax.f32 %v939_v2, 0.0  ;;  %1099 = vmatpush.msrb.mxu2 %v1052_v42 }
 0x387   :  { %1130 = vmatpush.msra.mxu3 %v1066_v51  ;;  %v1226_v51 = vld [vmem:[%s2957_s11 + $0x30] sm:$0xff] }
 0x388   :  { %v961_v6 = vrot.slane %v946_v4, 2  ;;  %988 = vrot.lane.b32.xlu0 %v946_v4, %s1695_s25  ;;  %v979_v7 = vrot.slane %v946_v4, 6  ;;  %v969_v9 = vrot.slane %v946_v4, 4  ;;  %1100 = vmatpush.msrb.mxu2 %v1051_v44  ;;  %v1234_v44 = vld [vmem:[%s2957_s11 + $0x70] sm:$0xff] }
 0x389   :  { %1241 = vmatpush.msra.mxu0 %v1234_v44  ;;  %v1339_v44 = vld [vmem:[%s2958_s13 + $0x20] sm:$0xff] }
 0x38a   :  { %963 = vst.msk [vmem:[#allocation2 + $0x48] sm:$0xc0] %vm757_vm15, %v961_v6  ;;  %980 = vrot.lane.b32.xlu2 %v979_v7, %s1692_s23  ;;  %970 = vrot.lane.b32.xlu1 %v969_v9, %s1685_s27 }
 0x38b   :  { %1002 = vst.msk [vmem:[#allocation2 + $0x38] sm:$0xc0] %vm757_vm15, %v961_v6  ;;  %1101 = vmatpush.msrb.mxu2 %v1050_v47  ;;  %vm3013_vm15 = vmmov %vm3011_vm1  ;;  %v1231_v47 = vld [vmem:[%s2957_s11 + $0x58] sm:$0xff] }
 0x38c   :  { %1102 = vmatmul.f32.vlgmr.msrb.gmra.mxu2 %v1694_v46 }
 0x38d   :  { %v941_v13 = vpop.f32.mrf.mxu1 }
 0x38e   :  { %v942_v12 = vadd.f32 %v941_v13, %v913_v11 }
 0x390   :  { %v947_v14 = vmax.f32 %v942_v12, 0.0 }
 0x392   :  { %v999_v15 = vrot.slane %v947_v14, 2  ;;  %1034 = vrot.lane.b32.xlu0 %v947_v14, %s1695_s25  ;;  %v1025_v61 = vrot.slane %v947_v14, 6  ;;  %v1011_v3 = vrot.slane %v947_v14, 4 }
 0x394   :  { %v1026_v16 = vsel %vm3010_vm9, %v979_v7, %v1025_v61  ;;  %v1012_v17 = vsel %vm3011_vm1, %v969_v9, %v1011_v3  ;;  %v1000_v18 = vsel %vm3012_vm4, %v961_v6, %v999_v15  ;;  %v1679_v9 = vld [vmem:[%s2955_s10] ss:$0 sm:$0xff] }
 0x395   :  { %1027 = vrot.lane.b32.xlu2 %v1026_v16, %s1692_s23  ;;  %1013 = vrot.lane.b32.xlu1 %v1012_v17, %s1685_s27  ;;  %1003 = vst.msk [vmem:[#allocation2 + $0x50] sm:$0xff] %vm438_vm3, %v1000_v18 }
 0x3d3   :  { %v976_v52 = vpop.permute.xlu2 %975 }
 0x3dc   :  { %v1021_v54 = vpop.permute.xlu2 %1020 }
 0x3e4   :  { %v981_v59 = vpop.permute.xlu2 %980 }
 0x3e9   :  { %v985_v22 = vpop.permute.xlu0 %984 }
 0x3eb   :  { %v966_v53 = vpop.permute.xlu1 %965 }
 0x3ec   :  { %968 = vst.msk [vmem:[#allocation2 + $0x18] sm:$0xf0] %vm456_vm2, %v966_v53 }
 0x3ed   :  { %978 = vst.msk [vmem:[#allocation2 + $0x18] sm:$0xfc] %vm777_vm10, %v976_v52 }
 0x3ee   :  { %1009 = vst.msk [vmem:[#allocation2 + $0x8] sm:$0xf0] %vm456_vm2, %v966_v53  ;;  %v1224_v53 = vld [vmem:[%s2957_s11 + $0x20] sm:$0xff] }
 0x3ef   :  { %1023 = vst.msk [vmem:[#allocation2 + $0x8] sm:$0xfc] %vm777_vm10, %v976_v52  ;;  %v1028_v1 = vpop.permute.xlu2 %1027  ;;  %v1225_v52 = vld [vmem:[%s2957_s11 + $0x28] sm:$0xff] }
 0x3f0   :  { %1038 = vst.msk [vmem:[#allocation2 + $0x8] sm:$0xff] %vm418_vm13, %v985_v22 }
 0x3f1   :  { %987 = vst.msk [vmem:[#allocation2 + $0x18] sm:$0xff] %vm418_vm13, %v985_v22  ;;  %v1033_v56 = vpop.permute.xlu0 %1032  ;;  %v1223_v22 = vld [vmem:[%s2957_s11 + $0x18] sm:$0xff] }
 0x3f4   :  { %v1007_v55 = vpop.permute.xlu1 %1006 }
 0x3f5   :  { %1010 = vst.msk [vmem:[#allocation2 + $0x20] sm:$0xff] %vm375_vm5, %v1007_v55  ;;  %v1221_v55 = vld [vmem:[%s2957_s11 + $0x8] sm:$0xff] }
 0x3f6   :  { %1024 = vst.msk [vmem:[#allocation2 + $0x20] sm:$0xff] %vm393_vm12, %v1021_v54  ;;  %v1222_v54 = vld [vmem:[%s2957_s11 + $0x10] sm:$0xff] }
 0x3f7   :  { %1039 = vst.msk [vmem:[#allocation2 + $0x20] sm:$0xff] %vm418_vm13, %v1033_v56  ;;  %v1043_v57 = vld [vmem:[#allocation2 + $0x8] sm:$0xff] }
 0x3f8   :  { %v1044_v58 = vld [vmem:[#allocation2 + $0x18] sm:$0xff]  ;;  %1131 = vmatmul.f32.vlgmr.msra.gmra.mxu3 %v1043_v57  ;;  %v1220_v57 = vld [vmem:[%s2957_s11] sm:$0xff] }
 0x3f9   :  { %1105 = vmatmul.f32.gmra.mxu2 %v1044_v58  ;;  %1157 = vst [vmem:[#allocation2 + $0x18] sm:$0xff] %v1694_v46 }
 0x3fa   :  { %v989_v62 = vpop.permute.xlu0 %988 }
 0x3fc   :  { %v971_v31 = vpop.permute.xlu1 %970 }
 0x3fd   :  { %973 = vst.msk [vmem:[#allocation2 + $0x48] sm:$0xf0] %vm456_vm2, %v971_v31 }
 0x3fe   :  { %983 = vst.msk [vmem:[#allocation2 + $0x48] sm:$0xfc] %vm777_vm10, %v981_v59  ;;  %v1045_v60 = vld [vmem:[#allocation2 + $0x20] sm:$0xff] }
 0x3ff   :  { %1016 = vst.msk [vmem:[#allocation2 + $0x38] sm:$0xf0] %vm456_vm2, %v971_v31  ;;  %vm1163_vm2 = vcmask 261124  }
 0x400   :  { %1030 = vst.msk [vmem:[#allocation2 + $0x38] sm:$0xfc] %vm777_vm10, %v981_v59  ;;  %1134 = vmatmul.f32.gmra.mxu3 %v1045_v60  ;;  %vm3015_vm10 = vmmov %vm3011_vm1 }
 0x401   :  { %1040 = vst.msk [vmem:[#allocation2 + $0x38] sm:$0xff] %vm418_vm13, %v989_v62  ;;  %1108 = vmatmul.f32.gmra.mxu2 %v1694_v46 }
 0x402   :  { %991 = vst.msk [vmem:[#allocation2 + $0x48] sm:$0xff] %vm418_vm13, %v989_v62 }
 0x404   :  { %v1035_v6 = vpop.permute.xlu0 %1034 }
 0x407   :  { %v1014_v63 = vpop.permute.xlu1 %1013 }
 0x408   :  { %v1047_v2 = vld [vmem:[#allocation2 + $0x38] sm:$0xff]  ;;  %1017 = vst.msk [vmem:[#allocation2 + $0x50] sm:$0xff] %vm375_vm5, %v1014_v63 }
 0x409   :  { %v1048_v4 = vld [vmem:[#allocation2 + $0x48] sm:$0xff]  ;;  %1137 = vmatmul.f32.gmra.mxu3 %v1047_v2  ;;  %1031 = vst.msk [vmem:[#allocation2 + $0x50] sm:$0xff] %vm393_vm12, %v1028_v1 }
 0x40a   :  { %1111 = vmatmul.f32.gmra.mxu2 %v1048_v4  ;;  %1159 = vst [vmem:[#allocation2 + $0x48] sm:$0xff] %v1694_v46 }
 0x40b   :  { %1041 = vst.msk [vmem:[#allocation2 + $0x50] sm:$0xff] %vm418_vm13, %v1035_v6 }
 0x40f   :  { %v1103_v10 = vpop.f32.mrf.mxu2 }
 0x410   :  { %v1104_v11 = vadd.f32 %v1679_v9, %v1103_v10 }
 0x412   :  { %v1049_v7 = vld [vmem:[#allocation2 + $0x50] sm:$0xff] }
 0x413   :  { %1140 = vmatmul.f32.gmra.mxu3 %v1049_v7 }
 0x47b   :  { %v1132_v13 = vpop.f32.mrf.mxu3 }
 0x47c   :  { %v1133_v12 = vadd.f32 %v1132_v13, %v1104_v11  ;;  %v1106_v15 = vpop.f32.mrf.mxu2  ;;  %v1680_v11 = vld [vmem:[%s2956_s12] ss:$0 sm:$0xff] }
 0x47d   :  { %v1107_v3 = vadd.f32 %v1679_v9, %v1106_v15  ;;  %v1350_v15 = vld [vmem:[%s2958_s13 + $0x78] sm:$0xff] }
 0x47e   :  { %v1144_v14 = vmax.f32 %v1133_v12, 0.0  ;;  %1355 = vmatpush.msra.mxu1 %v1350_v15 }
 0x480   :  { %v1148_v61 = vadd.f32 %v1144_v14, %v2290_v5 }
 0x482   :  { %v2613_v16 = vmax.f32 %v1148_v61, 0.0 }
 0x483   :  { %v1135_v17 = vpop.f32.mrf.mxu3 }
 0x484   :  { %1169 = vrot.lane.b32.xlu0 %v2613_v16, %s1685_s27  ;;  %1200 = vrot.lane.b32.xlu2 %v2613_v16, %s1695_s25  ;;  %v1136_v18 = vadd.f32 %v1135_v17, %v1107_v3  ;;  %v1161_v20 = vrot.slane %v2613_v16, 4  ;;  %v1109_v5 = vpop.f32.mrf.mxu2 }
 0x485   :  { %v1110_v24 = vadd.f32 %v1679_v9, %v1109_v5 }
 0x486   :  { %v1145_v21 = vmax.f32 %v1136_v18, 0.0  ;;  %1180 = vrot.lane.b32.xlu1 %v1161_v20, %s1692_s23  ;;  %1164 = vst.msk [vmem:[#allocation2 + $0x18] sm:$0xf0] %vm1163_vm2, %v1161_v20 }
 0x488   :  { %v1149_v23 = vadd.f32 %v1145_v21, %v2311_v19 }
 0x48a   :  { %v2623_v25 = vmax.f32 %v1149_v23, 0.0 }
 0x48c   :  { %v1138_v26 = vpop.f32.mrf.mxu3  ;;  %1202 = vrot.lane.b32.xlu2 %v2623_v25, %s1695_s25  ;;  %v1178_v27 = vrot.slane %v2623_v25, 4 }
 0x48d   :  { %v1139_v28 = vadd.f32 %v1138_v26, %v1110_v24  ;;  %v1112_v33 = vpop.f32.mrf.mxu2 }
 0x48e   :  { %v1179_v29 = vsel %vm3013_vm15, %v1161_v20, %v1178_v27  ;;  %v1113_v19 = vadd.f32 %v1679_v9, %v1112_v33  ;;  %v1349_v33 = vld [vmem:[%s2958_s13 + $0x70] sm:$0xff] }
 0x48f   :  { %v1146_v30 = vmax.f32 %v1139_v28, 0.0  ;;  %1182 = vrot.lane.b32.xlu1 %v1179_v29, %s1692_s23  ;;  %1356 = vmatpush.msra.mxu1 %v1349_v33 }
 0x491   :  { %v1150_v32 = vadd.f32 %v1146_v30, %v2325_v34 }
 0x493   :  { %v2631_v35 = vmax.f32 %v1150_v32, 0.0 }
 0x495   :  { %1173 = vrot.lane.b32.xlu2 %v2631_v35, %s1685_s27  ;;  %v1166_v36 = vrot.slane %v2631_v35, 4 }
 0x496   :  { %v1141_v37 = vpop.f32.mrf.mxu3 }
 0x497   :  { %1192 = vrot.lane.b32.xlu0 %v1166_v36, %s1692_s23  ;;  %1204 = vrot.lane.b32.xlu1 %v2631_v35, %s1695_s25  ;;  %v1142_v39 = vadd.f32 %v1141_v37, %v1113_v19  ;;  %1168 = vst.msk [vmem:[#allocation2 + $0x48] sm:$0xf0] %vm1163_vm2, %v1166_v36  ;;  %v1348_v19 = vld [vmem:[%s2958_s13 + $0x68] sm:$0xff]  ;;  %v1346_v37 = vld [vmem:[%s2958_s13 + $0x58] sm:$0xff] }
 0x498   :  { %1357 = vmatpush.msra.mxu1 %v1348_v19 }
 0x499   :  { %v1147_v40 = vmax.f32 %v1142_v39, 0.0  ;;  %v1345_v39 = vld [vmem:[%s2958_s13 + $0x50] sm:$0xff] }
 0x49b   :  { %v1151_v34 = vadd.f32 %v1147_v40, %v2338_v0  ;;  %v1233_v0 = vld [vmem:[%s2957_s11 + $0x68] sm:$0xff] }
 0x49c   :  { %1242 = vmatpush.msra.mxu0 %v1233_v0  ;;  %v1344_v40 = vld [vmem:[%s2958_s13 + $0x48] sm:$0xff]  ;;  %v1338_v0 = vld [vmem:[%s2958_s13 + $0x18] sm:$0xff] }
 0x49d   :  { %v2641_v41 = vmax.f32 %v1151_v34, 0.0  ;;  %v1343_v34 = vld [vmem:[%s2958_s13 + $0x40] sm:$0xff] }
 0x49e   :  { %1243 = vmatpush.msra.mxu0 %v1232_v45  ;;  %v1337_v45 = vld [vmem:[%s2958_s13 + $0x10] sm:$0xff] }
 0x49f   :  { %1206 = vrot.lane.b32.xlu1 %v2641_v41, %s1695_s25  ;;  %v1190_v38 = vrot.slane %v2641_v41, 4 }
 0x4a0   :  { %1244 = vmatpush.msra.mxu0 %v1231_v47  ;;  %v1336_v47 = vld [vmem:[%s2958_s13 + $0x8] sm:$0xff] }
 0x4a1   :  { %v1191_v42 = vsel %vm3014_vm6, %v1166_v36, %v1190_v38  ;;  %v1347_v36 = vld [vmem:[%s2958_s13 + $0x60] sm:$0xff]  ;;  %v1342_v38 = vld [vmem:[%s2958_s13 + $0x38] sm:$0xff] }
 0x4a2   :  { %1194 = vrot.lane.b32.xlu0 %v1191_v42, %s1692_s23  ;;  %1245 = vmatpush.msra.mxu0 %v1230_v48  ;;  %v1341_v42 = vld [vmem:[%s2958_s13 + $0x30] sm:$0xff]  ;;  %v1335_v48 = vld [vmem:[%s2958_s13] sm:$0xff] }
 0x4a3   :  { %1358 = vmatpush.msra.mxu1 %v1347_v36 }
 0x4a4   :  { %1246 = vmatpush.msra.mxu0 %v1229_v8 }
 0x4a5   :  { %1359 = vmatpush.msra.mxu1 %v1346_v37  ;;  %v1682_v37 = vld [vmem:[%s2961_s16] ss:$0 sm:$0xff] }
 0x4a6   :  { %1247 = vmatpush.msra.mxu0 %v1228_v49 }
 0x4a7   :  { %1360 = vmatpush.msra.mxu1 %v1345_v39 }
 0x4a8   :  { %1248 = vmatpush.msra.mxu0 %v1227_v50 }
 0x4a9   :  { %1361 = vmatpush.msra.mxu1 %v1344_v40 }
 0x4aa   :  { %1249 = vmatpush.msra.mxu0 %v1226_v51 }
 0x4ab   :  { %1362 = vmatpush.msra.mxu1 %v1343_v34 }
 0x4ac   :  { %1250 = vmatpush.msra.mxu0 %v1225_v52 }
 0x4ad   :  { %1363 = vmatpush.msra.mxu1 %v1342_v38 }
 0x4ae   :  { %1251 = vmatpush.msra.mxu0 %v1224_v53 }
 0x4af   :  { %1364 = vmatpush.msra.mxu1 %v1341_v42 }
 0x4b0   :  { %1252 = vmatpush.msra.mxu0 %v1223_v22 }
 0x4b1   :  { %1365 = vmatpush.msra.mxu1 %v1340_v43 }
 0x4b2   :  { %1253 = vmatpush.msra.mxu0 %v1222_v54 }
 0x4b3   :  { %1366 = vmatpush.msra.mxu1 %v1339_v44 }
 0x4b4   :  { %1254 = vmatpush.msra.mxu0 %v1221_v55 }
 0x4b5   :  { %1367 = vmatpush.msra.mxu1 %v1338_v0 }
 0x4b6   :  { %1255 = vmatpush.msra.mxu0 %v1220_v57 }
 0x4b7   :  { %1368 = vmatpush.msra.mxu1 %v1337_v45 }
 0x4b9   :  { %1369 = vmatpush.msra.mxu1 %v1336_v47 }
 0x4bb   :  { %1370 = vmatpush.msra.mxu1 %v1335_v48 }
 0x4de   :  { %v1201_v56 = vpop.permute.xlu2 %1200 }
 0x4e6   :  { %v1203_v58 = vpop.permute.xlu2 %1202 }
 0x4ef   :  { %v1174_v31 = vpop.permute.xlu2 %1173 }
 0x4f0   :  { %1176 = vst.msk [vmem:[#allocation2 + $0x48] sm:$0xff] %vm375_vm5, %v1174_v31 }
 0x4f6   :  { %v1170_v59 = vpop.permute.xlu0 %1169 }
 0x4f7   :  { %1172 = vst.msk [vmem:[#allocation2 + $0x18] sm:$0xff] %vm375_vm5, %v1170_v59 }
 0x4f8   :  { %v1181_v60 = vpop.permute.xlu1 %1180 }
 0x4f9   :  { %1187 = vst.msk [vmem:[#allocation2] sm:$0xf0] %vm1186_vm7, %v1181_v60  ;;  %v1681_v60 = vld [vmem:[%s2959_s14] ss:$0 sm:$0xff] }
 0x4fa   :  { %1212 = vst.msk [vmem:[#allocation2] sm:$0xff] %vm418_vm13, %v1201_v56 }
 0x501   :  { %v1216_v62 = vld [vmem:[#allocation2] sm:$0xff]  ;;  %v1183_v63 = vpop.permute.xlu1 %1182 }
 0x502   :  { %1256 = vmatmul.f32.vlgmr.msra.gmra.mxu0 %v1216_v62  ;;  %1273 = vst [vmem:[#allocation2] sm:$0xff] %v1694_v46 }
 0x503   :  { %1188 = vst.msk [vmem:[#allocation2 + $0x18] sm:$0xff] %vm393_vm12, %v1183_v63 }
 0x504   :  { %1213 = vst.msk [vmem:[#allocation2 + $0x18] sm:$0xff] %vm418_vm13, %v1203_v58 }
 0x509   :  { %v1193_v1 = vpop.permute.xlu0 %1192  ;;  %v1205_v2 = vpop.permute.xlu1 %1204 }
 0x50a   :  { %1198 = vst.msk [vmem:[#allocation2 + $0x30] sm:$0xf0] %vm1186_vm7, %v1193_v1 }
 0x50b   :  { %1214 = vst.msk [vmem:[#allocation2 + $0x30] sm:$0xff] %vm418_vm13, %v1205_v2  ;;  %v1217_v4 = vld [vmem:[#allocation2 + $0x18] sm:$0xff] }
 0x50c   :  { %1259 = vmatmul.f32.gmra.mxu0 %v1217_v4  ;;  %1274 = vst [vmem:[#allocation2 + $0x18] sm:$0xff] %v1694_v46 }
 0x511   :  { %v1207_v9 = vpop.permute.xlu1 %1206 }
 0x512   :  { %v1218_v6 = vld [vmem:[#allocation2 + $0x30] sm:$0xff] }
 0x513   :  { %1275 = vst [vmem:[#allocation2 + $0x30] sm:$0xff] %v1694_v46 }
 0x514   :  { %1262 = vmatmul.f32.gmra.mxu0 %v1218_v6  ;;  %v1195_v7 = vpop.permute.xlu0 %1194  ;;  %v1433_v6 = vld [vmem:[%s2960_s15 + $0x38] sm:$0xff] }
 0x515   :  { %1199 = vst.msk [vmem:[#allocation2 + $0x48] sm:$0xff] %vm393_vm12, %v1195_v7  ;;  %v1432_v7 = vld [vmem:[%s2960_s15 + $0x30] sm:$0xff]  ;;  %1458 = vmatpush.msra.mxu2 %v1433_v6  ;;  %v1578_v6 = vld [vmem:[%s2964_s19] sm:$0xff] }
 0x516   :  { %1215 = vst.msk [vmem:[#allocation2 + $0x48] sm:$0xff] %vm418_vm13, %v1207_v9 }
 0x517   :  { %1459 = vmatpush.msra.mxu2 %v1432_v7  ;;  %v1683_v7 = vld [vmem:[%s2962_s18] ss:$0 sm:$0xff] }
 0x51d   :  { %v1219_v10 = vld [vmem:[#allocation2 + $0x48] sm:$0xff] }
 0x51e   :  { %1265 = vmatmul.f32.gmra.mxu0 %v1219_v10  ;;  %1276 = vst [vmem:[#allocation2 + $0x48] sm:$0xff] %v1694_v46 }
 0x57f   :  { %v1257_v13 = vpop.f32.mrf.mxu0 }
 0x580   :  { %v1258_v12 = vadd.f32 %v1680_v11, %v1257_v13 }
 0x582   :  { %v1269_v14 = vmax.f32 %v1258_v12, 0.0 }
 0x584   :  { %1285 = vrot.lane.b32.xlu1 %v1269_v14, %s1685_s27  ;;  %1315 = vrot.lane.b32.xlu0 %v1269_v14, %s1695_s25  ;;  %v1278_v61 = vrot.slane %v1269_v14, 4 }
 0x586   :  { %1296 = vrot.lane.b32.xlu2 %v1278_v61, %s1692_s23  ;;  %1280 = vst.msk [vmem:[#allocation2 + $0x18] sm:$0xf0] %vm1163_vm2, %v1278_v61 }
 0x589   :  { %v1260_v3 = vpop.f32.mrf.mxu0 }
 0x58a   :  { %v1261_v17 = vadd.f32 %v1680_v11, %v1260_v3 }
 0x58c   :  { %v1270_v18 = vmax.f32 %v1261_v17, 0.0 }
 0x58e   :  { %v1294_v20 = vrot.slane %v1270_v18, 4  ;;  %1317 = vrot.lane.b32.xlu0 %v1270_v18, %s1695_s25 }
 0x590   :  { %v1295_v21 = vsel %vm3015_vm10, %v1278_v61, %v1294_v20 }
 0x591   :  { %1298 = vrot.lane.b32.xlu2 %v1295_v21, %s1692_s23  ;;  %v1263_v5 = vpop.f32.mrf.mxu0 }
 0x592   :  { %v1264_v23 = vadd.f32 %v1680_v11, %v1263_v5 }
 0x594   :  { %v1271_v24 = vmax.f32 %v1264_v23, 0.0  ;;  %v1429_v23 = vld [vmem:[%s2960_s15 + $0x18] sm:$0xff] }
 0x596   :  { %1289 = vrot.lane.b32.xlu0 %v1271_v24, %s1685_s27  ;;  %v1282_v26 = vrot.slane %v1271_v24, 4 }
 0x598   :  { %1307 = vrot.lane.b32.xlu1 %v1282_v26, %s1692_s23  ;;  %1284 = vst.msk [vmem:[#allocation2 + $0x48] sm:$0xf0] %vm1163_vm2, %v1282_v26 }
 0x599   :  { %1319 = vrot.lane.b32.xlu2 %v1271_v24, %s1695_s25  ;;  %v1427_v24 = vld [vmem:[%s2960_s15 + $0x8] sm:$0xff] }
 0x59b   :  { %v1266_v27 = vpop.f32.mrf.mxu0 }
 0x59c   :  { %v1267_v28 = vadd.f32 %v1680_v11, %v1266_v27 }
 0x59e   :  { %v1272_v29 = vmax.f32 %v1267_v28, 0.0 }
 0x5a0   :  { %v1305_v30 = vrot.slane %v1272_v29, 4 }
 0x5a1   :  { %1321 = vrot.lane.b32.xlu2 %v1272_v29, %s1695_s25 }
 0x5a2   :  { %v1306_v32 = vsel %vm3016_vm11, %v1282_v26, %v1305_v30  ;;  %v1426_v26 = vld [vmem:[%s2960_s15] sm:$0xff] }
 0x5a3   :  { %1309 = vrot.lane.b32.xlu1 %v1306_v32, %s1692_s23 }
 0x5e0   :  { %v1297_v8 = vpop.permute.xlu2 %1296 }
 0x5e1   :  { %1302 = vst.msk [vmem:[#allocation2] sm:$0xf0] %vm1186_vm7, %v1297_v8  ;;  %v1520_v8 = vld [vmem:[%s2963_s17 + $0x38] sm:$0xff] }
 0x5e2   :  { %1545 = vmatpush.msrb.mxu3 %v1520_v8 }
 0x5eb   :  { %v1299_v51 = vpop.permute.xlu2 %1298 }
 0x5f3   :  { %v1320_v56 = vpop.permute.xlu2 %1319 }
 0x5f6   :  { %v1316_v49 = vpop.permute.xlu0 %1315  ;;  %v1286_v50 = vpop.permute.xlu1 %1285 }
 0x5f7   :  { %1327 = vst.msk [vmem:[#allocation2] sm:$0xff] %vm418_vm13, %v1316_v49  ;;  %v1519_v49 = vld [vmem:[%s2963_s17 + $0x30] sm:$0xff] }
 0x5f8   :  { %1288 = vst.msk [vmem:[#allocation2 + $0x18] sm:$0xff] %vm375_vm5, %v1286_v50  ;;  %v1518_v50 = vld [vmem:[%s2963_s17 + $0x28] sm:$0xff]  ;;  %1546 = vmatpush.msrb.mxu3 %v1519_v49 }
 0x5f9   :  { %1303 = vst.msk [vmem:[#allocation2 + $0x18] sm:$0xff] %vm393_vm12, %v1299_v51  ;;  %v1517_v51 = vld [vmem:[%s2963_s17 + $0x20] sm:$0xff] }
 0x5fa   :  { %1547 = vmatpush.msrb.mxu3 %v1518_v50 }
 0x5fb   :  { %v1322_v31 = vpop.permute.xlu2 %1321 }
 0x5fc   :  { %1548 = vmatpush.msrb.mxu3 %v1517_v51 }
 0x5fe   :  { %v1331_v52 = vld [vmem:[#allocation2] sm:$0xff] }
 0x5ff   :  { %1371 = vmatmul.f32.vlgmr.msra.gmra.mxu1 %v1331_v52  ;;  %1396 = vst.msk [vmem:[#allocation2] sm:$0xff] %vm352_vm0, %v1694_v46  ;;  %v1516_v52 = vld [vmem:[%s2963_s17 + $0x18] sm:$0xff] }
 0x600   :  { %v1318_v53 = vpop.permute.xlu0 %1317  ;;  %1549 = vmatpush.msrb.mxu3 %v1516_v52 }
 0x601   :  { %1328 = vst.msk [vmem:[#allocation2 + $0x18] sm:$0xff] %vm418_vm13, %v1318_v53  ;;  %v1515_v53 = vld [vmem:[%s2963_s17 + $0x10] sm:$0xff] }
 0x602   :  { %1550 = vmatpush.msrb.mxu3 %v1515_v53 }
 0x608   :  { %v1290_v22 = vpop.permute.xlu0 %1289  ;;  %v1332_v54 = vld [vmem:[#allocation2 + $0x18] sm:$0xff] }
 0x609   :  { %1292 = vst.msk [vmem:[#allocation2 + $0x48] sm:$0xff] %vm375_vm5, %v1290_v22  ;;  %1374 = vmatmul.f32.gmra.mxu1 %v1332_v54  ;;  %v1514_v22 = vld [vmem:[%s2963_s17 + $0x8] sm:$0xff]  ;;  %v1513_v54 = vld [vmem:[%s2963_s17] sm:$0xff] }
 0x60a   :  { %1397 = vst.msk [vmem:[#allocation2 + $0x18] sm:$0xff] %vm352_vm0, %v1694_v46  ;;  %v1308_v55 = vpop.permute.xlu1 %1307  ;;  %1551 = vmatpush.msrb.mxu3 %v1514_v22 }
 0x60b   :  { %1313 = vst.msk [vmem:[#allocation2 + $0x30] sm:$0xf0] %vm1186_vm7, %v1308_v55 }
 0x60c   :  { %1329 = vst.msk [vmem:[#allocation2 + $0x30] sm:$0xff] %vm418_vm13, %v1320_v56  ;;  %1552 = vmatpush.msrb.mxu3 %v1513_v54 }
 0x613   :  { %v1333_v57 = vld [vmem:[#allocation2 + $0x30] sm:$0xff] }
 0x614   :  { %1377 = vmatmul.f32.gmra.mxu1 %v1333_v57  ;;  %1398 = vst.msk [vmem:[#allocation2 + $0x30] sm:$0xff] %vm352_vm0, %v1694_v46 }
 0x615   :  { %v1310_v58 = vpop.permute.xlu1 %1309 }
 0x616   :  { %1314 = vst.msk [vmem:[#allocation2 + $0x48] sm:$0xff] %vm393_vm12, %v1310_v58  ;;  %v1581_v58 = vld [vmem:[%s2964_s19 + $0x18] sm:$0xff] }
 0x617   :  { %1330 = vst.msk [vmem:[#allocation2 + $0x48] sm:$0xff] %vm418_vm13, %v1322_v31  ;;  %1610 = vmatpush.msrb.mxu0 %v1581_v58  ;;  %1660 = vmatpush.msrb.mxu1 %v1581_v58 }
 0x61e   :  { %v1334_v59 = vld [vmem:[#allocation2 + $0x48] sm:$0xff] }
 0x61f   :  { %1380 = vmatmul.f32.gmra.mxu1 %v1334_v59  ;;  %1399 = vst.msk [vmem:[#allocation2 + $0x48] sm:$0xff] %vm352_vm0, %v1694_v46 }
 0x67c   :  { %v1372_v62 = vpop.f32.mrf.mxu1 }
 0x67d   :  { %v1373_v63 = vadd.f32 %v1681_v60, %v1372_v62 }
 0x67f   :  { %v1384_v1 = vmax.f32 %v1373_v63, 0.0 }
 0x681   :  { %v1388_v2 = vadd.f32 %v1384_v1, %v2613_v16  ;;  %v1431_v16 = vld [vmem:[%s2960_s15 + $0x28] sm:$0xff]  ;;  %v1580_v1 = vld [vmem:[%s2964_s19 + $0x10] sm:$0xff] }
 0x682   :  { %1460 = vmatpush.msra.mxu2 %v1431_v16  ;;  %1611 = vmatpush.msrb.mxu0 %v1580_v1 }
 0x683   :  { %v2797_v4 = vmax.f32 %v1388_v2, 0.0  ;;  %1661 = vmatpush.msrb.mxu1 %v1580_v1  ;;  %v1579_v2 = vld [vmem:[%s2964_s19 + $0x8] sm:$0xff] }
 0x684   :  { %1612 = vmatpush.msrb.mxu0 %v1579_v2 }
 0x685   :  { %1400 = vst.msk [vmem:[#allocation2 + $0x18] sm:$0xff] %vm438_vm3, %v2797_v4  ;;  %1406 = vrot.lane.b32.xlu0 %v2797_v4, %s1685_s27  ;;  %1662 = vmatpush.msrb.mxu1 %v1579_v2 }
 0x686   :  { %v1375_v9 = vpop.f32.mrf.mxu1  ;;  %1613 = vmatpush.msrb.mxu0 %v1578_v6 }
 0x687   :  { %v1376_v10 = vadd.f32 %v1681_v60, %v1375_v9  ;;  %1663 = vmatpush.msrb.mxu1 %v1578_v6 }
 0x689   :  { %v1385_v11 = vmax.f32 %v1376_v10, 0.0 }
 0x68b   :  { %v2813_v13 = vadd.f32 %v1385_v11, %v2623_v25 }
 0x68d   :  { %v1393_v12 = vmax.f32 %v2813_v13, 0.0  ;;  %v1684_v13 = vld [vmem:[%s2965_s20] ss:$0 sm:$0xff] }
 0x68f   :  { %1408 = vrot.lane.b32.xlu1 %v1393_v12, %s1685_s27 }
 0x691   :  { %v1378_v14 = vpop.f32.mrf.mxu1 }
 0x692   :  { %v1379_v15 = vadd.f32 %v1681_v60, %v1378_v14 }
 0x694   :  { %v1386_v61 = vmax.f32 %v1379_v15, 0.0 }
 0x696   :  { %v1390_v3 = vadd.f32 %v1386_v61, %v2631_v35  ;;  %v1430_v35 = vld [vmem:[%s2960_s15 + $0x20] sm:$0xff] }
 0x697   :  { %1461 = vmatpush.msra.mxu2 %v1430_v35 }
 0x698   :  { %v2820_v17 = vmax.f32 %v1390_v3, 0.0 }
 0x699   :  { %1462 = vmatpush.msra.mxu2 %v1429_v23 }
 0x69a   :  { %1401 = vst.msk [vmem:[#allocation2 + $0x48] sm:$0xff] %vm438_vm3, %v2820_v17  ;;  %1410 = vrot.lane.b32.xlu2 %v2820_v17, %s1685_s27 }
 0x69c   :  { %v1381_v25 = vpop.f32.mrf.mxu1 }
 0x69d   :  { %v1382_v18 = vadd.f32 %v1681_v60, %v1381_v25 }
 0x69f   :  { %v1387_v20 = vmax.f32 %v1382_v18, 0.0 }
 0x6a1   :  { %v2827_v21 = vadd.f32 %v1387_v20, %v2641_v41  ;;  %v1428_v41 = vld [vmem:[%s2960_s15 + $0x10] sm:$0xff] }
 0x6a2   :  { %1463 = vmatpush.msra.mxu2 %v1428_v41 }
 0x6a3   :  { %v1395_v5 = vmax.f32 %v2827_v21, 0.0 }
 0x6a4   :  { %1464 = vmatpush.msra.mxu2 %v1427_v24 }
 0x6a5   :  { %1412 = vrot.lane.b32.xlu0 %v1395_v5, %s1685_s27 }
 0x6a6   :  { %1465 = vmatpush.msra.mxu2 %v1426_v26 }
 0x6f4   :  { %v1411_v27 = vpop.permute.xlu2 %1410 }
 0x6f5   :  { %1420 = vst.msk [vmem:[#allocation2 + $0x30] sm:$0xff] %vm375_vm5, %v1411_v27 }
 0x6f7   :  { %v1407_v28 = vpop.permute.xlu0 %1406 }
 0x6f8   :  { %1418 = vst.msk [vmem:[#allocation2] sm:$0xff] %vm375_vm5, %v1407_v28 }
 0x6fc   :  { %v1424_v29 = vld [vmem:[#allocation2 + $0x30] sm:$0xff] }
 0x6fd   :  { %1485 = vst.msk [vmem:[#allocation2 + $0x30] sm:$0xff] %vm352_vm0, %v1694_v46 }
 0x6ff   :  { %v1422_v30 = vld [vmem:[#allocation2] sm:$0xff] }
 0x700   :  { %1648 = vmatmul.msk.f32.vlgmr.msra.gmra.mxu2 %vm352_vm0, %v1422_v30  ;;  %1483 = vst.msk [vmem:[#allocation2] sm:$0xff] %vm352_vm0, %v1694_v46 }
 0x701   :  { %v1409_v32 = vpop.permute.xlu1 %1408 }
 0x702   :  { %1419 = vst.msk [vmem:[#allocation2 + $0x18] sm:$0xff] %vm375_vm5, %v1409_v32 }
 0x709   :  { %v1423_v33 = vld [vmem:[#allocation2 + $0x18] sm:$0xff] }
 0x70a   :  { %1649 = vmatmul.msk.f32.gmra.mxu2 %vm352_vm0, %v1423_v33  ;;  %1484 = vst.msk [vmem:[#allocation2 + $0x18] sm:$0xff] %vm352_vm0, %v1694_v46 }
 0x712   :  { %1650 = vmatmul.msk.f32.gmra.mxu2 %vm352_vm0, %v1424_v29 }
 0x717   :  { %v1413_v19 = vpop.permute.xlu0 %1412 }
 0x718   :  { %1421 = vst.msk [vmem:[#allocation2 + $0x48] sm:$0xff] %vm375_vm5, %v1413_v19 }
 0x71f   :  { %v1425_v36 = vld [vmem:[#allocation2 + $0x48] sm:$0xff] }
 0x720   :  { %1651 = vmatmul.msk.f32.gmra.mxu2 %vm352_vm0, %v1425_v36  ;;  %1486 = vst.msk [vmem:[#allocation2 + $0x48] sm:$0xff] %vm352_vm0, %v1694_v46 }
 0x783   :  { %v1467_v39 = vpop.f32.mrf.mxu2 }
 0x784   :  { %v1468_v40 = vadd.f32 %v1682_v37, %v1467_v39 }
 0x786   :  { %v1479_v34 = vmax.f32 %v1468_v40, 0.0 }
 0x788   :  { %1487 = vst.msk [vmem:[#allocation2 + $0x18] sm:$0xff] %vm438_vm3, %v1479_v34  ;;  %1493 = vrot.lane.b32.xlu1 %v1479_v34, %s1685_s27 }
 0x78d   :  { %v1470_v38 = vpop.f32.mrf.mxu2 }
 0x78e   :  { %v1471_v42 = vadd.f32 %v1682_v37, %v1470_v38 }
 0x790   :  { %v1480_v43 = vmax.f32 %v1471_v42, 0.0 }
 0x792   :  { %1495 = vrot.lane.b32.xlu2 %v1480_v43, %s1685_s27 }
 0x795   :  { %v1473_v44 = vpop.f32.mrf.mxu2 }
 0x796   :  { %v1474_v0 = vadd.f32 %v1682_v37, %v1473_v44 }
 0x798   :  { %v1481_v45 = vmax.f32 %v1474_v0, 0.0 }
 0x79a   :  { %1488 = vst.msk [vmem:[#allocation2 + $0x48] sm:$0xff] %vm438_vm3, %v1481_v45  ;;  %1497 = vrot.lane.b32.xlu0 %v1481_v45, %s1685_s27 }
 0x7a3   :  { %v1476_v46 = vpop.f32.mrf.mxu2 }
 0x7a4   :  { %v1477_v47 = vadd.f32 %v1682_v37, %v1476_v46 }
 0x7a6   :  { %v1482_v48 = vmax.f32 %v1477_v47, 0.0 }
 0x7a8   :  { %1499 = vrot.lane.b32.xlu1 %v1482_v48, %s1685_s27 }
 0x7ec   :  { %v1496_v55 = vpop.permute.xlu2 %1495 }
 0x7ed   :  { %1506 = vst.msk [vmem:[#allocation2 + $0x18] sm:$0xff] %vm375_vm5, %v1496_v55 }
 0x7f4   :  { %v1510_v31 = vld [vmem:[#allocation2 + $0x18] sm:$0xff] }
 0x7fa   :  { %v1494_v56 = vpop.permute.xlu1 %1493 }
 0x7fb   :  { %1505 = vst.msk [vmem:[#allocation2] sm:$0xff] %vm375_vm5, %v1494_v56 }
 0x802   :  { %v1509_v57 = vld [vmem:[#allocation2] sm:$0xff] }
 0x803   :  { %1652 = vmatmul.msk.f32.vlgmr.msrb.gmra.mxu3 %vm352_vm0, %v1509_v57 }
 0x80b   :  { %1653 = vmatmul.msk.f32.gmra.mxu3 %vm352_vm0, %v1510_v31 }
 0x80c   :  { %v1498_v59 = vpop.permute.xlu0 %1497 }
 0x80d   :  { %1507 = vst.msk [vmem:[#allocation2 + $0x30] sm:$0xff] %vm375_vm5, %v1498_v59 }
 0x814   :  { %v1511_v60 = vld [vmem:[#allocation2 + $0x30] sm:$0xff] }
 0x815   :  { %1654 = vmatmul.msk.f32.gmra.mxu3 %vm352_vm0, %v1511_v60 }
 0x81a   :  { %v1500_v62 = vpop.permute.xlu1 %1499 }
 0x81b   :  { %1508 = vst.msk [vmem:[#allocation2 + $0x48] sm:$0xff] %vm375_vm5, %v1500_v62 }
 0x822   :  { %v1512_v63 = vld [vmem:[#allocation2 + $0x48] sm:$0xff] }
 0x823   :  { %1655 = vmatmul.msk.f32.gmra.mxu3 %vm352_vm0, %v1512_v63  ;;  %vm1627_vm0 = vcmask 31744  }
 0x886   :  { %v1554_v9 = vpop.f32.mrf.mxu3 }
 0x887   :  { %v1555_v10 = vadd.f32 %v1683_v7, %v1554_v9 }
 0x889   :  { %v1566_v16 = vmax.f32 %v1555_v10, 0.0 }
 0x88b   :  { %v1570_v11 = vadd.f32 %v1566_v16, %v2797_v4 }
 0x88d   :  { %v1574_v14 = vmax.f32 %v1570_v11, 0.0 }
 0x88e   :  { %v1557_v15 = vpop.f32.mrf.mxu3 }
 0x88f   :  { %v1558_v61 = vadd.f32 %v1683_v7, %v1557_v15  ;;  %1656 = vmatmul.msk.f32.vlgmr.msrb.gmra.mxu0 %vm438_vm3, %v1574_v14 }
 0x891   :  { %v1567_v3 = vmax.f32 %v1558_v61, 0.0 }
 0x893   :  { %v1571_v25 = vadd.f32 %v1567_v3, %v1393_v12 }
 0x895   :  { %v1575_v18 = vmax.f32 %v1571_v25, 0.0 }
 0x897   :  { %1657 = vmatmul.msk.f32.gmra.mxu0 %vm438_vm3, %v1575_v18 }
 0x898   :  { %v1560_v20 = vpop.f32.mrf.mxu3 }
 0x899   :  { %v1561_v35 = vadd.f32 %v1683_v7, %v1560_v20 }
 0x89b   :  { %v1568_v23 = vmax.f32 %v1561_v35, 0.0 }
 0x89d   :  { %v1572_v41 = vadd.f32 %v1568_v23, %v2820_v17 }
 0x89f   :  { %v1576_v24 = vmax.f32 %v1572_v41, 0.0 }
 0x8a1   :  { %1658 = vmatmul.msk.f32.gmra.mxu0 %vm438_vm3, %v1576_v24 }
 0x8a6   :  { %v1563_v4 = vpop.f32.mrf.mxu3 }
 0x8a7   :  { %v1564_v26 = vadd.f32 %v1683_v7, %v1563_v4 }
 0x8a9   :  { %v1569_v27 = vmax.f32 %v1564_v26, 0.0 }
 0x8ab   :  { %v1573_v28 = vadd.f32 %v1569_v27, %v1395_v5 }
 0x8ad   :  { %v1577_v29 = vmax.f32 %v1573_v28, 0.0 }
 0x8af   :  { %1659 = vmatmul.msk.f32.vlgmr.msrb.gmra.mxu1 %vm438_vm3, %v1577_v29 }
 0x90c   :  { %v1615_v12 = vpop.f32.mrf.mxu0 }
 0x90d   :  { %v1616_v30 = vadd.f32 %v1684_v13, %v1615_v12 }
 0x90f   :  { %1628 = vst.msk [vmem:[%s2966_s21] sm:$0xff] %vm1627_vm0, %v1616_v30 }
 0x914   :  { %v1618_v17 = vpop.f32.mrf.mxu0 }
 0x915   :  { %v1619_v32 = vadd.f32 %v1684_v13, %v1618_v17 }
 0x917   :  { %1629 = vst.msk [vmem:[%s2966_s21 + $0x8] sm:$0xff] %vm1627_vm0, %v1619_v32 }
 0x91e   :  { %v1621_v21 = vpop.f32.mrf.mxu0 }
 0x91f   :  { %v1622_v5 = vadd.f32 %v1684_v13, %v1621_v21 }
 0x921   :  { %1630 = vst.msk [vmem:[%s2966_s21 + $0x10] sm:$0xff] %vm1627_vm0, %v1622_v5 }
 0x92c   :  { %v1624_v33 = vpop.f32.mrf.mxu1 }
 0x92d   :  { %v1625_v19 = vadd.f32 %v1684_v13, %v1624_v33 }
 0x92f   :  { %1631 = vst.msk [vmem:[%s2966_s21 + $0x18] sm:$0xff] %vm1627_vm0, %v1625_v19 }

</bundles_post_ra>
